<compile_context>
chip_gen: v7x
topology: tpu7x:2x2x1
jax: 0.10.0
libtpu: 0.0.40
codegen_flags: <defaults>
</compile_context>

<pallas_src>
import functools

import jax
import jax.numpy as jnp
from jax import lax
from jax.experimental import pallas as pl
from jax.experimental.pallas import tpu as pltpu


# -----------------------------------------------------------------------------
# Fused kernel: (implicit concat) + conv3x3/ReLU + conv3x3/ReLU
# Grid = (N, H // TH), both axes parallel.  Inputs are pre-padded by
# (2 rows, 1 col) of zeros so every conv1 halo read is in-bounds.
# Scratch: mid_ref (TH+2, W+2, Cout) bf16 — ReLU(conv1) row-tile with halo,
# never round-trips HBM.
# -----------------------------------------------------------------------------
def _fused_upblock_kernel(up_ref, f_ref, w1u_ref, w1f_ref, w2_ref, o_ref,
                          mid_ref, *, H, W, TH, Cx, Cf, Cout):
    t = pl.program_id(1)
    r0 = pl.multiple_of(t * TH, TH)          # window start in the padded image

    w1u = w1u_ref[...]                       # (3, 3, Cx,   Cout) bf16
    w1f = w1f_ref[...]                       # (3, 3, Cf,   Cout) bf16
    w2 = w2_ref[...]                         # (3, 3, Cout, Cout) bf16

    # ---- conv1 + ReLU over TH+2 rows (1-row halo each side for conv2) -------
    up_w = up_ref[0, pl.ds(r0, TH + 4), :, :]        # (TH+4, W+2, Cx) bf16
    f_w = f_ref[0, pl.ds(r0, TH + 4), :, :]          # (TH+4, W+2, Cf) bf16

    m1 = (TH + 2) * W
    acc1 = jnp.zeros((m1, Cout), jnp.float32)
    for ky in range(3):
        for kx in range(3):
            up_tap = up_w[ky:ky + TH + 2, kx:kx + W, :].reshape(m1, Cx)
            f_tap = f_w[ky:ky + TH + 2, kx:kx + W, :].reshape(m1, Cf)
            acc1 = acc1 + jnp.dot(up_tap, w1u[ky, kx],
                                  preferred_element_type=jnp.float32)
            acc1 = acc1 + jnp.dot(f_tap, w1f[ky, kx],
                                  preferred_element_type=jnp.float32)
    mid = jnp.maximum(acc1, 0.0).reshape(TH + 2, W, Cout).astype(jnp.bfloat16)

    # stash the bf16 intermediate in VMEM with a 1-column zero halo
    zcol = jnp.zeros((TH + 2, 1, Cout), jnp.bfloat16)
    mid_ref[:, 0:1, :] = zcol
    mid_ref[:, W + 1:W + 2, :] = zcol
    mid_ref[:, 1:W + 1, :] = mid

    # halo rows outside the image must be zero (conv2's SAME zero-pad);
    # only the first / last row tiles can hit this, so gate the stores.
    @pl.when(t == 0)
    def _zero_top():
        mid_ref[0:1, :, :] = jnp.zeros((1, W + 2, Cout), jnp.bfloat16)

    @pl.when(t == pl.num_programs(1) - 1)
    def _zero_bottom():
        mid_ref[TH + 1:TH + 2, :, :] = jnp.zeros((1, W + 2, Cout), jnp.bfloat16)

    # ---- conv2 + ReLU --------------------------------------------------------
    mid_all = mid_ref[...]                           # (TH+2, W+2, Cout) bf16
    m2 = TH * W
    acc2 = jnp.zeros((m2, Cout), jnp.float32)
    for ky in range(3):
        for kx in range(3):
            tap = mid_all[ky:ky + TH, kx:kx + W, :].reshape(m2, Cout)
            acc2 = acc2 + jnp.dot(tap, w2[ky, kx],
                                  preferred_element_type=jnp.float32)
    out = jnp.maximum(acc2, 0.0).reshape(TH, W, Cout)
    o_ref[0] = out.astype(o_ref.dtype)


def _pick_row_tile(H):
    # prefer large tiles (amortize per-step overhead, shrink halo recompute)
    for th in (64, 32, 16, 8):
        if H % th == 0 and H // th >= 2:
            return th
    return H


def fused_upsample_block(up_nhwc, f_nhwc, w1_hwio, w2_hwio):
    """concat(up, f) -> conv3x3+ReLU -> conv3x3+ReLU, fused in one pallas_call."""
    N, H, W, Cx = up_nhwc.shape
    Nf, Hf, Wf, Cf = f_nhwc.shape
    assert (Nf, Hf, Wf) == (N, H, W)
    Cin, Cout = Cx + Cf, w1_hwio.shape[-1]
    assert w1_hwio.shape == (3, 3, Cin, Cout)
    assert w2_hwio.shape == (3, 3, Cout, Cout)
    assert W % 8 == 0, "layout assumes W % 8 == 0"

    TH = _pick_row_tile(H)
    T = H // TH

    # split conv1's weight over the two concat operands -> the concatenated
    # image never materializes (not in HBM, not in VMEM).
    w1u = w1_hwio[:, :, :Cx, :].astype(jnp.bfloat16)
    w1f = w1_hwio[:, :, Cx:, :].astype(jnp.bfloat16)
    w2 = w2_hwio.astype(jnp.bfloat16)

    # bf16 operands (matmuls accumulate in f32); pre-pad 2 rows / 1 col of
    # zeros so every conv1 halo window read is in-bounds (SAME padding).
    pad = ((0, 0), (2, 2), (1, 1), (0, 0))
    up_p = jnp.pad(up_nhwc.astype(jnp.bfloat16), pad)
    f_p = jnp.pad(f_nhwc.astype(jnp.bfloat16), pad)

    # per-step VMEM budget: double-buffered ins/outs + weights + scratch +
    # generous temporary headroom, capped at 48 MiB for v7x's 64 MiB VMEM.
    in_b = 2 * (H + 4) * (W + 2) * (Cx + Cf) * 2
    w_b = 2 * 9 * (Cx + Cf + Cout) * Cout * 2
    out_b = 2 * TH * W * Cout * 4
    scratch_b = (TH + 2) * (W + 2) * Cout * 2
    tmp_b = 8 * (TH + 4) * (W + 2) * max(Cx + Cf, Cout) * 4
    vmem_limit = min(max(3 * (in_b + w_b + out_b + scratch_b + tmp_b),
                         16 << 20), 48 << 20)

    kernel = functools.partial(_fused_upblock_kernel, H=H, W=W, TH=TH,
                               Cx=Cx, Cf=Cf, Cout=Cout)
    return pl.pallas_call(
        kernel,
        out_shape=jax.ShapeDtypeStruct((N, H, W, Cout), jnp.float32),
        grid_spec=pltpu.PrefetchScalarGridSpec(
            num_scalar_prefetch=0,
            grid=(N, T),
            in_specs=[
                # whole per-batch padded images; block index is constant
                # across the row-tile axis so they are not re-DMAed per tile.
                # TODO(synk): for production H*W*C that exceed v7x VMEM, switch
                # to per-row-tile blocks with a manual 2-row halo DMA.
                pl.BlockSpec((1, H + 4, W + 2, Cx), lambda n, t: (n, 0, 0, 0)),
                pl.BlockSpec((1, H + 4, W + 2, Cf), lambda n, t: (n, 0, 0, 0)),
                # constant weights (tiny here; single-buffering them is a
                # further VMEM save at large Cout).
                pl.BlockSpec((3, 3, Cx, Cout), lambda n, t: (0, 0, 0, 0)),
                pl.BlockSpec((3, 3, Cf, Cout), lambda n, t: (0, 0, 0, 0)),
                pl.BlockSpec((3, 3, Cout, Cout), lambda n, t: (0, 0, 0, 0)),
            ],
            out_specs=pl.BlockSpec((1, TH, W, Cout), lambda n, t: (n, t, 0, 0)),
            scratch_shapes=[pltpu.VMEM((TH + 2, W + 2, Cout), jnp.bfloat16)],
        ),
        compiler_params=pltpu.CompilerParams(
            dimension_semantics=("parallel", "parallel"),
            vmem_limit_bytes=vmem_limit),
    )(up_p, f_p, w1u, w1f, w2)


# -----------------------------------------------------------------------------
# Bilinear x2 upsample, align_corners=False (matches nn.Upsample), gather-free.
# even rows/cols: 0.25*prev + 0.75*cur ; odd: 0.75*cur + 0.25*next (clamped)
# TODO(synk): the even/odd sublane interleave has no clean Mosaic lowering, so
# this stays as plain-JAX wrapper glue instead of living in the kernel.
# -----------------------------------------------------------------------------
def _upsample2x_axis(x, axis):
    n = x.shape[axis]
    head = lax.slice_in_dim(x, 0, 1, axis=axis)
    tail = lax.slice_in_dim(x, n - 1, n, axis=axis)
    prev = jnp.concatenate([head, lax.slice_in_dim(x, 0, n - 1, axis=axis)], axis)
    nxt = jnp.concatenate([lax.slice_in_dim(x, 1, n, axis=axis), tail], axis)
    even = 0.25 * prev + 0.75 * x
    odd = 0.75 * x + 0.25 * nxt
    out = jnp.stack([even, odd], axis=axis + 1)
    new_shape = list(x.shape)
    new_shape[axis] = 2 * n
    return out.reshape(new_shape)


def upsample_bilinear_2x(x_nhwc):
    y = _upsample2x_axis(x_nhwc, 1)   # height
    return _upsample2x_axis(y, 2)     # width


# -----------------------------------------------------------------------------
# Module wrapper (PyTorch Conv2d default init:
# kaiming_uniform(a=sqrt(5)) -> U(-1/sqrt(fan_in), 1/sqrt(fan_in)), no bias).
# -----------------------------------------------------------------------------
@jax.jit
def _forward(x_nchw, f_nchw, w1, w2):
    # TODO(synk): accept/return NHWC end-to-end to drop these boundary transposes.
    x = jnp.transpose(x_nchw, (0, 2, 3, 1))          # -> NHWC
    f = jnp.transpose(f_nchw, (0, 2, 3, 1))          # -> NHWC
    up = upsample_bilinear_2x(x)
    y = fused_upsample_block(up, f, w1, w2)
    return jnp.transpose(y, (0, 3, 1, 2))            # -> NCHW


class UpSampleBlockPallas:
    def __init__(self, input_depth, output_depth, key):
        k1, k2 = jax.random.split(key)
        b1 = 1.0 / (input_depth * 9) ** 0.5
        b2 = 1.0 / (output_depth * 9) ** 0.5
        # HWIO weights
        self.w1 = jax.random.uniform(k1, (3, 3, input_depth, output_depth),
                                     jnp.float32, -b1, b1)
        self.w2 = jax.random.uniform(k2, (3, 3, output_depth, output_depth),
                                     jnp.float32, -b2, b2)

    def __call__(self, x_nchw, features_nchw):
        return _forward(x_nchw, features_nchw, self.w1, self.w2)


# -----------------------------------------------------------------------------
# Pure-JAX reference (XLA conv).  matmul_dtype=bf16 mirrors the kernel's
# bf16-operand / f32-accumulate matmuls; matmul_dtype=f32 mirrors the original
# PyTorch f32 semantics (compared with a looser tolerance).
# -----------------------------------------------------------------------------
def _reference_forward(x_nchw, f_nchw, w1, w2, *, matmul_dtype):
    xh = jnp.transpose(x_nchw, (0, 2, 3, 1))
    fh = jnp.transpose(f_nchw, (0, 2, 3, 1))
    cat = jnp.concatenate([upsample_bilinear_2x(xh), fh], axis=-1)
    dn = ("NHWC", "HWIO", "NHWC")

    def conv(a, w):
        return lax.conv_general_dilated(
            a.astype(matmul_dtype), w.astype(matmul_dtype), (1, 1), "SAME",
            dimension_numbers=dn, preferred_element_type=jnp.float32)

    y = jnp.maximum(conv(cat, w1), 0.0)
    y = jnp.maximum(conv(y, w2), 0.0)
    return jnp.transpose(y, (0, 3, 1, 2))


# -----------------------------------------------------------------------------
# main
# -----------------------------------------------------------------------------
if __name__ == "__main__":
    key = jax.random.PRNGKey(0)
    kx, kf, kw = jax.random.split(key, 3)

    N, Cx, Cf = 2, 4, 4          # x channels + feature channels = input_depth
    Hs, Ws = 8, 8                # x spatial; features are 2x (post-upsample size)
    Cout = 8

    x = jax.random.normal(kx, (N, Cx, Hs, Ws), jnp.float32)
    features = jax.random.normal(kf, (N, Cf, 2 * Hs, 2 * Ws), jnp.float32)

    block = UpSampleBlockPallas(input_depth=Cx + Cf, output_depth=Cout, key=kw)
    out = jax.block_until_ready(block(x, features))
    assert out.shape == (N, Cout, 2 * Hs, 2 * Ws), out.shape

    ref_bf16 = jax.block_until_ready(
        _reference_forward(x, features, block.w1, block.w2,
                           matmul_dtype=jnp.bfloat16))
    ref_f32 = jax.block_until_ready(
        _reference_forward(x, features, block.w1, block.w2,
                           matmul_dtype=jnp.float32))

    err_b = float(jnp.max(jnp.abs(out - ref_bf16)))
    err_f = float(jnp.max(jnp.abs(out - ref_f32)))
    assert err_b < 3e-3, f"max abs error vs bf16-matmul reference: {err_b}"
    assert err_f < 5e-2, f"max abs error vs f32 reference: {err_f}"

    print("KERNEL_OK")
</pallas_src>

<mosaic_0001>
module attributes {stable_mosaic.version = 11 : i64} {
  func.func @_fused_upblock_kernel(%arg0: i32, %arg1: i32, %arg2: memref<1x20x18x4xbf16, #tpu.memory_space<vmem>>, %arg3: memref<1x20x18x4xbf16, #tpu.memory_space<vmem>>, %arg4: memref<3x3x4x8xbf16, #tpu.memory_space<vmem>>, %arg5: memref<3x3x4x8xbf16, #tpu.memory_space<vmem>>, %arg6: memref<3x3x8x8xbf16, #tpu.memory_space<vmem>>, %arg7: memref<1x8x16x8xf32, #tpu.memory_space<vmem>>, %arg8: memref<10x18x8xbf16, #tpu.memory_space<vmem>>) attributes {dimension_semantics = [#tpu.dimension_semantics<parallel>, #tpu.dimension_semantics<parallel>], iteration_bounds = array<i64: 2, 2>, scalar_prefetch = 0 : i64, scratch_operands = 1 : i64, tpu.core_type = #tpu.core_type<tc>, window_params = [{transform_indices = @transform_0, window_bounds = array<i64: 1, 20, 18, 4>}, {transform_indices = @transform_1, window_bounds = array<i64: 1, 20, 18, 4>}, {pipeline_mode = #tpu.pipeline_mode<synchronous>, transform_indices = @transform_2, window_bounds = array<i64: 3, 3, 4, 8>}, {pipeline_mode = #tpu.pipeline_mode<synchronous>, transform_indices = @transform_3, window_bounds = array<i64: 3, 3, 4, 8>}, {pipeline_mode = #tpu.pipeline_mode<synchronous>, transform_indices = @transform_4, window_bounds = array<i64: 3, 3, 8, 8>}, {transform_indices = @transform_5, window_bounds = array<i64: 1, 8, 16, 8>}]} {
    %c8_i32 = arith.constant 8 : i32
    %0 = arith.muli %arg1, %c8_i32 : i32
    %1 = tpu.assume_multiple %0, 8 : i32
    %c0 = arith.constant 0 : index
    %c0_0 = arith.constant 0 : index
    %c0_1 = arith.constant 0 : index
    %c0_2 = arith.constant 0 : index
    %2 = vector.load %arg4[%c0, %c0_0, %c0_1, %c0_2] : memref<3x3x4x8xbf16, #tpu.memory_space<vmem>>, vector<3x3x4x8xbf16>
    %c0_3 = arith.constant 0 : index
    %c0_4 = arith.constant 0 : index
    %c0_5 = arith.constant 0 : index
    %c0_6 = arith.constant 0 : index
    %3 = vector.load %arg5[%c0_3, %c0_4, %c0_5, %c0_6] : memref<3x3x4x8xbf16, #tpu.memory_space<vmem>>, vector<3x3x4x8xbf16>
    %c0_7 = arith.constant 0 : index
    %c0_8 = arith.constant 0 : index
    %c0_9 = arith.constant 0 : index
    %c0_10 = arith.constant 0 : index
    %4 = vector.load %arg6[%c0_7, %c0_8, %c0_9, %c0_10] : memref<3x3x8x8xbf16, #tpu.memory_space<vmem>>, vector<3x3x8x8xbf16>
    %c0_11 = arith.constant 0 : index
    %5 = arith.index_cast %1 : i32 to index
    %c0_12 = arith.constant 0 : index
    %c0_13 = arith.constant 0 : index
    %6 = vector.load %arg2[%c0_11, %5, %c0_12, %c0_13] : memref<1x20x18x4xbf16, #tpu.memory_space<vmem>>, vector<1x12x18x4xbf16>
    %7 = vector.shape_cast %6 : vector<1x12x18x4xbf16> to vector<12x18x4xbf16>
    %c0_14 = arith.constant 0 : index
    %8 = arith.index_cast %1 : i32 to index
    %c0_15 = arith.constant 0 : index
    %c0_16 = arith.constant 0 : index
    %9 = vector.load %arg3[%c0_14, %8, %c0_15, %c0_16] : memref<1x20x18x4xbf16, #tpu.memory_space<vmem>>, vector<1x12x18x4xbf16>
    %10 = vector.shape_cast %9 : vector<1x12x18x4xbf16> to vector<12x18x4xbf16>
    %cst = arith.constant 0.000000e+00 : f32
    %11 = vector.broadcast %cst : f32 to vector<160x8xf32>
    %12 = vector.extract_strided_slice %7 {offsets = [0, 0, 0], sizes = [10, 16, 4], strides = [1, 1, 1]} : vector<12x18x4xbf16> to vector<10x16x4xbf16>
    %13 = vector.shape_cast %12 : vector<10x16x4xbf16> to vector<160x4xbf16>
    %14 = vector.extract_strided_slice %10 {offsets = [0, 0, 0], sizes = [10, 16, 4], strides = [1, 1, 1]} : vector<12x18x4xbf16> to vector<10x16x4xbf16>
    %15 = vector.shape_cast %14 : vector<10x16x4xbf16> to vector<160x4xbf16>
    %16 = vector.extract_strided_slice %2 {offsets = [0, 0, 0, 0], sizes = [1, 1, 4, 8], strides = [1, 1, 1, 1]} : vector<3x3x4x8xbf16> to vector<1x1x4x8xbf16>
    %17 = vector.shape_cast %16 : vector<1x1x4x8xbf16> to vector<4x8xbf16>
    %cst_17 = arith.constant dense<0.000000e+00> : vector<160x8xf32>
    %18 = tpu.matmul %13, %17, %cst_17 {dimension_numbers = #tpu.dot_dimension_numbers<[1], [0], [0], [1], [0, 0, 1, 1], [], []>} : vector<160x4xbf16>, vector<4x8xbf16>, vector<160x8xf32> -> vector<160x8xf32>
    %19 = arith.addf %11, %18 : vector<160x8xf32>
    %20 = vector.extract_strided_slice %3 {offsets = [0, 0, 0, 0], sizes = [1, 1, 4, 8], strides = [1, 1, 1, 1]} : vector<3x3x4x8xbf16> to vector<1x1x4x8xbf16>
    %21 = vector.shape_cast %20 : vector<1x1x4x8xbf16> to vector<4x8xbf16>
    %cst_18 = arith.constant dense<0.000000e+00> : vector<160x8xf32>
    %22 = tpu.matmul %15, %21, %cst_18 {dimension_numbers = #tpu.dot_dimension_numbers<[1], [0], [0], [1], [0, 0, 1, 1], [], []>} : vector<160x4xbf16>, vector<4x8xbf16>, vector<160x8xf32> -> vector<160x8xf32>
    %23 = arith.addf %19, %22 : vector<160x8xf32>
    %24 = vector.extract_strided_slice %7 {offsets = [0, 1, 0], sizes = [10, 16, 4], strides = [1, 1, 1]} : vector<12x18x4xbf16> to vector<10x16x4xbf16>
    %25 = vector.shape_cast %24 : vector<10x16x4xbf16> to vector<160x4xbf16>
    %26 = vector.extract_strided_slice %10 {offsets = [0, 1, 0], sizes = [10, 16, 4], strides = [1, 1, 1]} : vector<12x18x4xbf16> to vector<10x16x4xbf16>
    %27 = vector.shape_cast %26 : vector<10x16x4xbf16> to vector<160x4xbf16>
    %28 = vector.extract_strided_slice %2 {offsets = [0, 1, 0, 0], sizes = [1, 1, 4, 8], strides = [1, 1, 1, 1]} : vector<3x3x4x8xbf16> to vector<1x1x4x8xbf16>
    %29 = vector.shape_cast %28 : vector<1x1x4x8xbf16> to vector<4x8xbf16>
    %cst_19 = arith.constant dense<0.000000e+00> : vector<160x8xf32>
    %30 = tpu.matmul %25, %29, %cst_19 {dimension_numbers = #tpu.dot_dimension_numbers<[1], [0], [0], [1], [0, 0, 1, 1], [], []>} : vector<160x4xbf16>, vector<4x8xbf16>, vector<160x8xf32> -> vector<160x8xf32>
    %31 = arith.addf %23, %30 : vector<160x8xf32>
    %32 = vector.extract_strided_slice %3 {offsets = [0, 1, 0, 0], sizes = [1, 1, 4, 8], strides = [1, 1, 1, 1]} : vector<3x3x4x8xbf16> to vector<1x1x4x8xbf16>
    %33 = vector.shape_cast %32 : vector<1x1x4x8xbf16> to vector<4x8xbf16>
    %cst_20 = arith.constant dense<0.000000e+00> : vector<160x8xf32>
    %34 = tpu.matmul %27, %33, %cst_20 {dimension_numbers = #tpu.dot_dimension_numbers<[1], [0], [0], [1], [0, 0, 1, 1], [], []>} : vector<160x4xbf16>, vector<4x8xbf16>, vector<160x8xf32> -> vector<160x8xf32>
    %35 = arith.addf %31, %34 : vector<160x8xf32>
    %36 = vector.extract_strided_slice %7 {offsets = [0, 2, 0], sizes = [10, 16, 4], strides = [1, 1, 1]} : vector<12x18x4xbf16> to vector<10x16x4xbf16>
    %37 = vector.shape_cast %36 : vector<10x16x4xbf16> to vector<160x4xbf16>
    %38 = vector.extract_strided_slice %10 {offsets = [0, 2, 0], sizes = [10, 16, 4], strides = [1, 1, 1]} : vector<12x18x4xbf16> to vector<10x16x4xbf16>
    %39 = vector.shape_cast %38 : vector<10x16x4xbf16> to vector<160x4xbf16>
    %40 = vector.extract_strided_slice %2 {offsets = [0, 2, 0, 0], sizes = [1, 1, 4, 8], strides = [1, 1, 1, 1]} : vector<3x3x4x8xbf16> to vector<1x1x4x8xbf16>
    %41 = vector.shape_cast %40 : vector<1x1x4x8xbf16> to vector<4x8xbf16>
    %cst_21 = arith.constant dense<0.000000e+00> : vector<160x8xf32>
    %42 = tpu.matmul %37, %41, %cst_21 {dimension_numbers = #tpu.dot_dimension_numbers<[1], [0], [0], [1], [0, 0, 1, 1], [], []>} : vector<160x4xbf16>, vector<4x8xbf16>, vector<160x8xf32> -> vector<160x8xf32>
    %43 = arith.addf %35, %42 : vector<160x8xf32>
    %44 = vector.extract_strided_slice %3 {offsets = [0, 2, 0, 0], sizes = [1, 1, 4, 8], strides = [1, 1, 1, 1]} : vector<3x3x4x8xbf16> to vector<1x1x4x8xbf16>
    %45 = vector.shape_cast %44 : vector<1x1x4x8xbf16> to vector<4x8xbf16>
    %cst_22 = arith.constant dense<0.000000e+00> : vector<160x8xf32>
    %46 = tpu.matmul %39, %45, %cst_22 {dimension_numbers = #tpu.dot_dimension_numbers<[1], [0], [0], [1], [0, 0, 1, 1], [], []>} : vector<160x4xbf16>, vector<4x8xbf16>, vector<160x8xf32> -> vector<160x8xf32>
    %47 = arith.addf %43, %46 : vector<160x8xf32>
    %48 = vector.extract_strided_slice %7 {offsets = [1, 0, 0], sizes = [10, 16, 4], strides = [1, 1, 1]} : vector<12x18x4xbf16> to vector<10x16x4xbf16>
    %49 = vector.shape_cast %48 : vector<10x16x4xbf16> to vector<160x4xbf16>
    %50 = vector.extract_strided_slice %10 {offsets = [1, 0, 0], sizes = [10, 16, 4], strides = [1, 1, 1]} : vector<12x18x4xbf16> to vector<10x16x4xbf16>
    %51 = vector.shape_cast %50 : vector<10x16x4xbf16> to vector<160x4xbf16>
    %52 = vector.extract_strided_slice %2 {offsets = [1, 0, 0, 0], sizes = [1, 1, 4, 8], strides = [1, 1, 1, 1]} : vector<3x3x4x8xbf16> to vector<1x1x4x8xbf16>
    %53 = vector.shape_cast %52 : vector<1x1x4x8xbf16> to vector<4x8xbf16>
    %cst_23 = arith.constant dense<0.000000e+00> : vector<160x8xf32>
    %54 = tpu.matmul %49, %53, %cst_23 {dimension_numbers = #tpu.dot_dimension_numbers<[1], [0], [0], [1], [0, 0, 1, 1], [], []>} : vector<160x4xbf16>, vector<4x8xbf16>, vector<160x8xf32> -> vector<160x8xf32>
    %55 = arith.addf %47, %54 : vector<160x8xf32>
    %56 = vector.extract_strided_slice %3 {offsets = [1, 0, 0, 0], sizes = [1, 1, 4, 8], strides = [1, 1, 1, 1]} : vector<3x3x4x8xbf16> to vector<1x1x4x8xbf16>
    %57 = vector.shape_cast %56 : vector<1x1x4x8xbf16> to vector<4x8xbf16>
    %cst_24 = arith.constant dense<0.000000e+00> : vector<160x8xf32>
    %58 = tpu.matmul %51, %57, %cst_24 {dimension_numbers = #tpu.dot_dimension_numbers<[1], [0], [0], [1], [0, 0, 1, 1], [], []>} : vector<160x4xbf16>, vector<4x8xbf16>, vector<160x8xf32> -> vector<160x8xf32>
    %59 = arith.addf %55, %58 : vector<160x8xf32>
    %60 = vector.extract_strided_slice %7 {offsets = [1, 1, 0], sizes = [10, 16, 4], strides = [1, 1, 1]} : vector<12x18x4xbf16> to vector<10x16x4xbf16>
    %61 = vector.shape_cast %60 : vector<10x16x4xbf16> to vector<160x4xbf16>
    %62 = vector.extract_strided_slice %10 {offsets = [1, 1, 0], sizes = [10, 16, 4], strides = [1, 1, 1]} : vector<12x18x4xbf16> to vector<10x16x4xbf16>
    %63 = vector.shape_cast %62 : vector<10x16x4xbf16> to vector<160x4xbf16>
    %64 = vector.extract_strided_slice %2 {offsets = [1, 1, 0, 0], sizes = [1, 1, 4, 8], strides = [1, 1, 1, 1]} : vector<3x3x4x8xbf16> to vector<1x1x4x8xbf16>
    %65 = vector.shape_cast %64 : vector<1x1x4x8xbf16> to vector<4x8xbf16>
    %cst_25 = arith.constant dense<0.000000e+00> : vector<160x8xf32>
    %66 = tpu.matmul %61, %65, %cst_25 {dimension_numbers = #tpu.dot_dimension_numbers<[1], [0], [0], [1], [0, 0, 1, 1], [], []>} : vector<160x4xbf16>, vector<4x8xbf16>, vector<160x8xf32> -> vector<160x8xf32>
    %67 = arith.addf %59, %66 : vector<160x8xf32>
    %68 = vector.extract_strided_slice %3 {offsets = [1, 1, 0, 0], sizes = [1, 1, 4, 8], strides = [1, 1, 1, 1]} : vector<3x3x4x8xbf16> to vector<1x1x4x8xbf16>
    %69 = vector.shape_cast %68 : vector<1x1x4x8xbf16> to vector<4x8xbf16>
    %cst_26 = arith.constant dense<0.000000e+00> : vector<160x8xf32>
    %70 = tpu.matmul %63, %69, %cst_26 {dimension_numbers = #tpu.dot_dimension_numbers<[1], [0], [0], [1], [0, 0, 1, 1], [], []>} : vector<160x4xbf16>, vector<4x8xbf16>, vector<160x8xf32> -> vector<160x8xf32>
    %71 = arith.addf %67, %70 : vector<160x8xf32>
    %72 = vector.extract_strided_slice %7 {offsets = [1, 2, 0], sizes = [10, 16, 4], strides = [1, 1, 1]} : vector<12x18x4xbf16> to vector<10x16x4xbf16>
    %73 = vector.shape_cast %72 : vector<10x16x4xbf16> to vector<160x4xbf16>
    %74 = vector.extract_strided_slice %10 {offsets = [1, 2, 0], sizes = [10, 16, 4], strides = [1, 1, 1]} : vector<12x18x4xbf16> to vector<10x16x4xbf16>
    %75 = vector.shape_cast %74 : vector<10x16x4xbf16> to vector<160x4xbf16>
    %76 = vector.extract_strided_slice %2 {offsets = [1, 2, 0, 0], sizes = [1, 1, 4, 8], strides = [1, 1, 1, 1]} : vector<3x3x4x8xbf16> to vector<1x1x4x8xbf16>
    %77 = vector.shape_cast %76 : vector<1x1x4x8xbf16> to vector<4x8xbf16>
    %cst_27 = arith.constant dense<0.000000e+00> : vector<160x8xf32>
    %78 = tpu.matmul %73, %77, %cst_27 {dimension_numbers = #tpu.dot_dimension_numbers<[1], [0], [0], [1], [0, 0, 1, 1], [], []>} : vector<160x4xbf16>, vector<4x8xbf16>, vector<160x8xf32> -> vector<160x8xf32>
    %79 = arith.addf %71, %78 : vector<160x8xf32>
    %80 = vector.extract_strided_slice %3 {offsets = [1, 2, 0, 0], sizes = [1, 1, 4, 8], strides = [1, 1, 1, 1]} : vector<3x3x4x8xbf16> to vector<1x1x4x8xbf16>
    %81 = vector.shape_cast %80 : vector<1x1x4x8xbf16> to vector<4x8xbf16>
    %cst_28 = arith.constant dense<0.000000e+00> : vector<160x8xf32>
    %82 = tpu.matmul %75, %81, %cst_28 {dimension_numbers = #tpu.dot_dimension_numbers<[1], [0], [0], [1], [0, 0, 1, 1], [], []>} : vector<160x4xbf16>, vector<4x8xbf16>, vector<160x8xf32> -> vector<160x8xf32>
    %83 = arith.addf %79, %82 : vector<160x8xf32>
    %84 = vector.extract_strided_slice %7 {offsets = [2, 0, 0], sizes = [10, 16, 4], strides = [1, 1, 1]} : vector<12x18x4xbf16> to vector<10x16x4xbf16>
    %85 = vector.shape_cast %84 : vector<10x16x4xbf16> to vector<160x4xbf16>
    %86 = vector.extract_strided_slice %10 {offsets = [2, 0, 0], sizes = [10, 16, 4], strides = [1, 1, 1]} : vector<12x18x4xbf16> to vector<10x16x4xbf16>
    %87 = vector.shape_cast %86 : vector<10x16x4xbf16> to vector<160x4xbf16>
    %88 = vector.extract_strided_slice %2 {offsets = [2, 0, 0, 0], sizes = [1, 1, 4, 8], strides = [1, 1, 1, 1]} : vector<3x3x4x8xbf16> to vector<1x1x4x8xbf16>
    %89 = vector.shape_cast %88 : vector<1x1x4x8xbf16> to vector<4x8xbf16>
    %cst_29 = arith.constant dense<0.000000e+00> : vector<160x8xf32>
    %90 = tpu.matmul %85, %89, %cst_29 {dimension_numbers = #tpu.dot_dimension_numbers<[1], [0], [0], [1], [0, 0, 1, 1], [], []>} : vector<160x4xbf16>, vector<4x8xbf16>, vector<160x8xf32> -> vector<160x8xf32>
    %91 = arith.addf %83, %90 : vector<160x8xf32>
    %92 = vector.extract_strided_slice %3 {offsets = [2, 0, 0, 0], sizes = [1, 1, 4, 8], strides = [1, 1, 1, 1]} : vector<3x3x4x8xbf16> to vector<1x1x4x8xbf16>
    %93 = vector.shape_cast %92 : vector<1x1x4x8xbf16> to vector<4x8xbf16>
    %cst_30 = arith.constant dense<0.000000e+00> : vector<160x8xf32>
    %94 = tpu.matmul %87, %93, %cst_30 {dimension_numbers = #tpu.dot_dimension_numbers<[1], [0], [0], [1], [0, 0, 1, 1], [], []>} : vector<160x4xbf16>, vector<4x8xbf16>, vector<160x8xf32> -> vector<160x8xf32>
    %95 = arith.addf %91, %94 : vector<160x8xf32>
    %96 = vector.extract_strided_slice %7 {offsets = [2, 1, 0], sizes = [10, 16, 4], strides = [1, 1, 1]} : vector<12x18x4xbf16> to vector<10x16x4xbf16>
    %97 = vector.shape_cast %96 : vector<10x16x4xbf16> to vector<160x4xbf16>
    %98 = vector.extract_strided_slice %10 {offsets = [2, 1, 0], sizes = [10, 16, 4], strides = [1, 1, 1]} : vector<12x18x4xbf16> to vector<10x16x4xbf16>
    %99 = vector.shape_cast %98 : vector<10x16x4xbf16> to vector<160x4xbf16>
    %100 = vector.extract_strided_slice %2 {offsets = [2, 1, 0, 0], sizes = [1, 1, 4, 8], strides = [1, 1, 1, 1]} : vector<3x3x4x8xbf16> to vector<1x1x4x8xbf16>
    %101 = vector.shape_cast %100 : vector<1x1x4x8xbf16> to vector<4x8xbf16>
    %cst_31 = arith.constant dense<0.000000e+00> : vector<160x8xf32>
    %102 = tpu.matmul %97, %101, %cst_31 {dimension_numbers = #tpu.dot_dimension_numbers<[1], [0], [0], [1], [0, 0, 1, 1], [], []>} : vector<160x4xbf16>, vector<4x8xbf16>, vector<160x8xf32> -> vector<160x8xf32>
    %103 = arith.addf %95, %102 : vector<160x8xf32>
    %104 = vector.extract_strided_slice %3 {offsets = [2, 1, 0, 0], sizes = [1, 1, 4, 8], strides = [1, 1, 1, 1]} : vector<3x3x4x8xbf16> to vector<1x1x4x8xbf16>
    %105 = vector.shape_cast %104 : vector<1x1x4x8xbf16> to vector<4x8xbf16>
    %cst_32 = arith.constant dense<0.000000e+00> : vector<160x8xf32>
    %106 = tpu.matmul %99, %105, %cst_32 {dimension_numbers = #tpu.dot_dimension_numbers<[1], [0], [0], [1], [0, 0, 1, 1], [], []>} : vector<160x4xbf16>, vector<4x8xbf16>, vector<160x8xf32> -> vector<160x8xf32>
    %107 = arith.addf %103, %106 : vector<160x8xf32>
    %108 = vector.extract_strided_slice %7 {offsets = [2, 2, 0], sizes = [10, 16, 4], strides = [1, 1, 1]} : vector<12x18x4xbf16> to vector<10x16x4xbf16>
    %109 = vector.shape_cast %108 : vector<10x16x4xbf16> to vector<160x4xbf16>
    %110 = vector.extract_strided_slice %10 {offsets = [2, 2, 0], sizes = [10, 16, 4], strides = [1, 1, 1]} : vector<12x18x4xbf16> to vector<10x16x4xbf16>
    %111 = vector.shape_cast %110 : vector<10x16x4xbf16> to vector<160x4xbf16>
    %112 = vector.extract_strided_slice %2 {offsets = [2, 2, 0, 0], sizes = [1, 1, 4, 8], strides = [1, 1, 1, 1]} : vector<3x3x4x8xbf16> to vector<1x1x4x8xbf16>
    %113 = vector.shape_cast %112 : vector<1x1x4x8xbf16> to vector<4x8xbf16>
    %cst_33 = arith.constant dense<0.000000e+00> : vector<160x8xf32>
    %114 = tpu.matmul %109, %113, %cst_33 {dimension_numbers = #tpu.dot_dimension_numbers<[1], [0], [0], [1], [0, 0, 1, 1], [], []>} : vector<160x4xbf16>, vector<4x8xbf16>, vector<160x8xf32> -> vector<160x8xf32>
    %115 = arith.addf %107, %114 : vector<160x8xf32>
    %116 = vector.extract_strided_slice %3 {offsets = [2, 2, 0, 0], sizes = [1, 1, 4, 8], strides = [1, 1, 1, 1]} : vector<3x3x4x8xbf16> to vector<1x1x4x8xbf16>
    %117 = vector.shape_cast %116 : vector<1x1x4x8xbf16> to vector<4x8xbf16>
    %cst_34 = arith.constant dense<0.000000e+00> : vector<160x8xf32>
    %118 = tpu.matmul %111, %117, %cst_34 {dimension_numbers = #tpu.dot_dimension_numbers<[1], [0], [0], [1], [0, 0, 1, 1], [], []>} : vector<160x4xbf16>, vector<4x8xbf16>, vector<160x8xf32> -> vector<160x8xf32>
    %119 = arith.addf %115, %118 : vector<160x8xf32>
    %cst_35 = arith.constant 0.000000e+00 : f32
    %120 = vector.broadcast %cst_35 : f32 to vector<160x8xf32>
    %121 = arith.maximumf %119, %120 : vector<160x8xf32>
    %122 = vector.shape_cast %121 : vector<160x8xf32> to vector<10x16x8xf32>
    %123 = arith.truncf %122 : vector<10x16x8xf32> to vector<10x16x8xbf16>
    %cst_36 = arith.constant 0.000000e+00 : bf16
    %124 = vector.broadcast %cst_36 : bf16 to vector<10x1x8xbf16>
    %c0_37 = arith.constant 0 : index
    %c0_38 = arith.constant 0 : index
    %c0_39 = arith.constant 0 : index
    %125 = vector.load %arg8[%c0_37, %c0_38, %c0_39] : memref<10x18x8xbf16, #tpu.memory_space<vmem>>, vector<10x1x8xbf16>
    tpu.vector_store %arg8[%c0_37, %c0_38, %c0_39], %124 {strides = array<i32>} : memref<10x18x8xbf16, #tpu.memory_space<vmem>>, vector<10x1x8xbf16>,
    %c0_40 = arith.constant 0 : index
    %c17 = arith.constant 17 : index
    %c0_41 = arith.constant 0 : index
    %126 = vector.load %arg8[%c0_40, %c17, %c0_41] : memref<10x18x8xbf16, #tpu.memory_space<vmem>>, vector<10x1x8xbf16>
    tpu.vector_store %arg8[%c0_40, %c17, %c0_41], %124 {strides = array<i32>} : memref<10x18x8xbf16, #tpu.memory_space<vmem>>, vector<10x1x8xbf16>,
    %c0_42 = arith.constant 0 : index
    %c1 = arith.constant 1 : index
    %c0_43 = arith.constant 0 : index
    %127 = vector.load %arg8[%c0_42, %c1, %c0_43] : memref<10x18x8xbf16, #tpu.memory_space<vmem>>, vector<10x16x8xbf16>
    tpu.vector_store %arg8[%c0_42, %c1, %c0_43], %123 {strides = array<i32>} : memref<10x18x8xbf16, #tpu.memory_space<vmem>>, vector<10x16x8xbf16>,
    %c0_i32 = arith.constant 0 : i32
    %128 = arith.cmpi eq, %arg1, %c0_i32 : i32
    %129 = arith.extui %128 : i1 to i32
    %c0_i32_44 = arith.constant 0 : i32
    %130 = arith.cmpi ne, %129, %c0_i32_44 : i32
    scf.if %130 {
      %cst_64 = arith.constant 0.000000e+00 : bf16
      %196 = vector.broadcast %cst_64 : bf16 to vector<1x18x8xbf16>
      %c0_65 = arith.constant 0 : index
      %c0_66 = arith.constant 0 : index
      %c0_67 = arith.constant 0 : index
      %197 = vector.load %arg8[%c0_65, %c0_66, %c0_67] : memref<10x18x8xbf16, #tpu.memory_space<vmem>>, vector<1x18x8xbf16>
      tpu.vector_store %arg8[%c0_65, %c0_66, %c0_67], %196 {strides = array<i32>} : memref<10x18x8xbf16, #tpu.memory_space<vmem>>, vector<1x18x8xbf16>,
    } else {
    }
    %c1_i32 = arith.constant 1 : i32
    %131 = arith.cmpi eq, %arg1, %c1_i32 : i32
    %132 = arith.extui %131 : i1 to i32
    %c0_i32_45 = arith.constant 0 : i32
    %133 = arith.cmpi ne, %132, %c0_i32_45 : i32
    scf.if %133 {
      %cst_64 = arith.constant 0.000000e+00 : bf16
      %196 = vector.broadcast %cst_64 : bf16 to vector<1x18x8xbf16>
      %c9 = arith.constant 9 : index
      %c0_65 = arith.constant 0 : index
      %c0_66 = arith.constant 0 : index
      %197 = vector.load %arg8[%c9, %c0_65, %c0_66] : memref<10x18x8xbf16, #tpu.memory_space<vmem>>, vector<1x18x8xbf16>
      tpu.vector_store %arg8[%c9, %c0_65, %c0_66], %196 {strides = array<i32>} : memref<10x18x8xbf16, #tpu.memory_space<vmem>>, vector<1x18x8xbf16>,
    } else {
    }
    %c0_46 = arith.constant 0 : index
    %c0_47 = arith.constant 0 : index
    %c0_48 = arith.constant 0 : index
    %134 = vector.load %arg8[%c0_46, %c0_47, %c0_48] : memref<10x18x8xbf16, #tpu.memory_space<vmem>>, vector<10x18x8xbf16>
    %cst_49 = arith.constant 0.000000e+00 : f32
    %135 = vector.broadcast %cst_49 : f32 to vector<128x8xf32>
    %136 = vector.extract_strided_slice %134 {offsets = [0, 0, 0], sizes = [8, 16, 8], strides = [1, 1, 1]} : vector<10x18x8xbf16> to vector<8x16x8xbf16>
    %137 = vector.shape_cast %136 : vector<8x16x8xbf16> to vector<128x8xbf16>
    %138 = vector.extract_strided_slice %4 {offsets = [0, 0, 0, 0], sizes = [1, 1, 8, 8], strides = [1, 1, 1, 1]} : vector<3x3x8x8xbf16> to vector<1x1x8x8xbf16>
    %139 = vector.shape_cast %138 : vector<1x1x8x8xbf16> to vector<8x8xbf16>
    %cst_50 = arith.constant dense<0.000000e+00> : vector<128x8xf32>
    %140 = tpu.matmul %137, %139, %cst_50 {dimension_numbers = #tpu.dot_dimension_numbers<[1], [0], [0], [1], [0, 0, 1, 1], [], []>} : vector<128x8xbf16>, vector<8x8xbf16>, vector<128x8xf32> -> vector<128x8xf32>
    %141 = arith.addf %135, %140 : vector<128x8xf32>
    %142 = vector.extract_strided_slice %134 {offsets = [0, 1, 0], sizes = [8, 16, 8], strides = [1, 1, 1]} : vector<10x18x8xbf16> to vector<8x16x8xbf16>
    %143 = vector.shape_cast %142 : vector<8x16x8xbf16> to vector<128x8xbf16>
    %144 = vector.extract_strided_slice %4 {offsets = [0, 1, 0, 0], sizes = [1, 1, 8, 8], strides = [1, 1, 1, 1]} : vector<3x3x8x8xbf16> to vector<1x1x8x8xbf16>
    %145 = vector.shape_cast %144 : vector<1x1x8x8xbf16> to vector<8x8xbf16>
    %cst_51 = arith.constant dense<0.000000e+00> : vector<128x8xf32>
    %146 = tpu.matmul %143, %145, %cst_51 {dimension_numbers = #tpu.dot_dimension_numbers<[1], [0], [0], [1], [0, 0, 1, 1], [], []>} : vector<128x8xbf16>, vector<8x8xbf16>, vector<128x8xf32> -> vector<128x8xf32>
    %147 = arith.addf %141, %146 : vector<128x8xf32>
    %148 = vector.extract_strided_slice %134 {offsets = [0, 2, 0], sizes = [8, 16, 8], strides = [1, 1, 1]} : vector<10x18x8xbf16> to vector<8x16x8xbf16>
    %149 = vector.shape_cast %148 : vector<8x16x8xbf16> to vector<128x8xbf16>
    %150 = vector.extract_strided_slice %4 {offsets = [0, 2, 0, 0], sizes = [1, 1, 8, 8], strides = [1, 1, 1, 1]} : vector<3x3x8x8xbf16> to vector<1x1x8x8xbf16>
    %151 = vector.shape_cast %150 : vector<1x1x8x8xbf16> to vector<8x8xbf16>
    %cst_52 = arith.constant dense<0.000000e+00> : vector<128x8xf32>
    %152 = tpu.matmul %149, %151, %cst_52 {dimension_numbers = #tpu.dot_dimension_numbers<[1], [0], [0], [1], [0, 0, 1, 1], [], []>} : vector<128x8xbf16>, vector<8x8xbf16>, vector<128x8xf32> -> vector<128x8xf32>
    %153 = arith.addf %147, %152 : vector<128x8xf32>
    %154 = vector.extract_strided_slice %134 {offsets = [1, 0, 0], sizes = [8, 16, 8], strides = [1, 1, 1]} : vector<10x18x8xbf16> to vector<8x16x8xbf16>
    %155 = vector.shape_cast %154 : vector<8x16x8xbf16> to vector<128x8xbf16>
    %156 = vector.extract_strided_slice %4 {offsets = [1, 0, 0, 0], sizes = [1, 1, 8, 8], strides = [1, 1, 1, 1]} : vector<3x3x8x8xbf16> to vector<1x1x8x8xbf16>
    %157 = vector.shape_cast %156 : vector<1x1x8x8xbf16> to vector<8x8xbf16>
    %cst_53 = arith.constant dense<0.000000e+00> : vector<128x8xf32>
    %158 = tpu.matmul %155, %157, %cst_53 {dimension_numbers = #tpu.dot_dimension_numbers<[1], [0], [0], [1], [0, 0, 1, 1], [], []>} : vector<128x8xbf16>, vector<8x8xbf16>, vector<128x8xf32> -> vector<128x8xf32>
    %159 = arith.addf %153, %158 : vector<128x8xf32>
    %160 = vector.extract_strided_slice %134 {offsets = [1, 1, 0], sizes = [8, 16, 8], strides = [1, 1, 1]} : vector<10x18x8xbf16> to vector<8x16x8xbf16>
    %161 = vector.shape_cast %160 : vector<8x16x8xbf16> to vector<128x8xbf16>
    %162 = vector.extract_strided_slice %4 {offsets = [1, 1, 0, 0], sizes = [1, 1, 8, 8], strides = [1, 1, 1, 1]} : vector<3x3x8x8xbf16> to vector<1x1x8x8xbf16>
    %163 = vector.shape_cast %162 : vector<1x1x8x8xbf16> to vector<8x8xbf16>
    %cst_54 = arith.constant dense<0.000000e+00> : vector<128x8xf32>
    %164 = tpu.matmul %161, %163, %cst_54 {dimension_numbers = #tpu.dot_dimension_numbers<[1], [0], [0], [1], [0, 0, 1, 1], [], []>} : vector<128x8xbf16>, vector<8x8xbf16>, vector<128x8xf32> -> vector<128x8xf32>
    %165 = arith.addf %159, %164 : vector<128x8xf32>
    %166 = vector.extract_strided_slice %134 {offsets = [1, 2, 0], sizes = [8, 16, 8], strides = [1, 1, 1]} : vector<10x18x8xbf16> to vector<8x16x8xbf16>
    %167 = vector.shape_cast %166 : vector<8x16x8xbf16> to vector<128x8xbf16>
    %168 = vector.extract_strided_slice %4 {offsets = [1, 2, 0, 0], sizes = [1, 1, 8, 8], strides = [1, 1, 1, 1]} : vector<3x3x8x8xbf16> to vector<1x1x8x8xbf16>
    %169 = vector.shape_cast %168 : vector<1x1x8x8xbf16> to vector<8x8xbf16>
    %cst_55 = arith.constant dense<0.000000e+00> : vector<128x8xf32>
    %170 = tpu.matmul %167, %169, %cst_55 {dimension_numbers = #tpu.dot_dimension_numbers<[1], [0], [0], [1], [0, 0, 1, 1], [], []>} : vector<128x8xbf16>, vector<8x8xbf16>, vector<128x8xf32> -> vector<128x8xf32>
    %171 = arith.addf %165, %170 : vector<128x8xf32>
    %172 = vector.extract_strided_slice %134 {offsets = [2, 0, 0], sizes = [8, 16, 8], strides = [1, 1, 1]} : vector<10x18x8xbf16> to vector<8x16x8xbf16>
    %173 = vector.shape_cast %172 : vector<8x16x8xbf16> to vector<128x8xbf16>
    %174 = vector.extract_strided_slice %4 {offsets = [2, 0, 0, 0], sizes = [1, 1, 8, 8], strides = [1, 1, 1, 1]} : vector<3x3x8x8xbf16> to vector<1x1x8x8xbf16>
    %175 = vector.shape_cast %174 : vector<1x1x8x8xbf16> to vector<8x8xbf16>
    %cst_56 = arith.constant dense<0.000000e+00> : vector<128x8xf32>
    %176 = tpu.matmul %173, %175, %cst_56 {dimension_numbers = #tpu.dot_dimension_numbers<[1], [0], [0], [1], [0, 0, 1, 1], [], []>} : vector<128x8xbf16>, vector<8x8xbf16>, vector<128x8xf32> -> vector<128x8xf32>
    %177 = arith.addf %171, %176 : vector<128x8xf32>
    %178 = vector.extract_strided_slice %134 {offsets = [2, 1, 0], sizes = [8, 16, 8], strides = [1, 1, 1]} : vector<10x18x8xbf16> to vector<8x16x8xbf16>
    %179 = vector.shape_cast %178 : vector<8x16x8xbf16> to vector<128x8xbf16>
    %180 = vector.extract_strided_slice %4 {offsets = [2, 1, 0, 0], sizes = [1, 1, 8, 8], strides = [1, 1, 1, 1]} : vector<3x3x8x8xbf16> to vector<1x1x8x8xbf16>
    %181 = vector.shape_cast %180 : vector<1x1x8x8xbf16> to vector<8x8xbf16>
    %cst_57 = arith.constant dense<0.000000e+00> : vector<128x8xf32>
    %182 = tpu.matmul %179, %181, %cst_57 {dimension_numbers = #tpu.dot_dimension_numbers<[1], [0], [0], [1], [0, 0, 1, 1], [], []>} : vector<128x8xbf16>, vector<8x8xbf16>, vector<128x8xf32> -> vector<128x8xf32>
    %183 = arith.addf %177, %182 : vector<128x8xf32>
    %184 = vector.extract_strided_slice %134 {offsets = [2, 2, 0], sizes = [8, 16, 8], strides = [1, 1, 1]} : vector<10x18x8xbf16> to vector<8x16x8xbf16>
    %185 = vector.shape_cast %184 : vector<8x16x8xbf16> to vector<128x8xbf16>
    %186 = vector.extract_strided_slice %4 {offsets = [2, 2, 0, 0], sizes = [1, 1, 8, 8], strides = [1, 1, 1, 1]} : vector<3x3x8x8xbf16> to vector<1x1x8x8xbf16>
    %187 = vector.shape_cast %186 : vector<1x1x8x8xbf16> to vector<8x8xbf16>
    %cst_58 = arith.constant dense<0.000000e+00> : vector<128x8xf32>
    %188 = tpu.matmul %185, %187, %cst_58 {dimension_numbers = #tpu.dot_dimension_numbers<[1], [0], [0], [1], [0, 0, 1, 1], [], []>} : vector<128x8xbf16>, vector<8x8xbf16>, vector<128x8xf32> -> vector<128x8xf32>
    %189 = arith.addf %183, %188 : vector<128x8xf32>
    %cst_59 = arith.constant 0.000000e+00 : f32
    %190 = vector.broadcast %cst_59 : f32 to vector<128x8xf32>
    %191 = arith.maximumf %189, %190 : vector<128x8xf32>
    %192 = vector.shape_cast %191 : vector<128x8xf32> to vector<8x16x8xf32>
    %c0_60 = arith.constant 0 : index
    %c0_61 = arith.constant 0 : index
    %c0_62 = arith.constant 0 : index
    %c0_63 = arith.constant 0 : index
    %193 = vector.load %arg7[%c0_60, %c0_61, %c0_62, %c0_63] : memref<1x8x16x8xf32, #tpu.memory_space<vmem>>, vector<1x8x16x8xf32>
    %194 = vector.shape_cast %193 : vector<1x8x16x8xf32> to vector<8x16x8xf32>
    %195 = vector.shape_cast %192 : vector<8x16x8xf32> to vector<1x8x16x8xf32>
    tpu.vector_store %arg7[%c0_60, %c0_61, %c0_62, %c0_63], %195 {strides = array<i32>} : memref<1x8x16x8xf32, #tpu.memory_space<vmem>>, vector<1x8x16x8xf32>,
    return
  }
  func.func @transform_0(%arg0: i32, %arg1: i32) -> (i32, i32, i32, i32) {
    %c0_i32 = arith.constant 0 : i32
    %c0_i32_0 = arith.constant 0 : i32
    %c0_i32_1 = arith.constant 0 : i32
    %c0_i32_2 = arith.constant 0 : i32
    return %arg0, %c0_i32, %c0_i32_0, %c0_i32_1 : i32, i32, i32, i32
  }
  func.func @transform_1(%arg0: i32, %arg1: i32) -> (i32, i32, i32, i32) {
    %c0_i32 = arith.constant 0 : i32
    %c0_i32_0 = arith.constant 0 : i32
    %c0_i32_1 = arith.constant 0 : i32
    %c0_i32_2 = arith.constant 0 : i32
    return %arg0, %c0_i32, %c0_i32_0, %c0_i32_1 : i32, i32, i32, i32
  }
  func.func @transform_2(%arg0: i32, %arg1: i32) -> (i32, i32, i32, i32) {
    %c0_i32 = arith.constant 0 : i32
    %c0_i32_0 = arith.constant 0 : i32
    %c0_i32_1 = arith.constant 0 : i32
    %c0_i32_2 = arith.constant 0 : i32
    %c0_i32_3 = arith.constant 0 : i32
    return %c0_i32, %c0_i32_0, %c0_i32_1, %c0_i32_2 : i32, i32, i32, i32
  }
  func.func @transform_3(%arg0: i32, %arg1: i32) -> (i32, i32, i32, i32) {
    %c0_i32 = arith.constant 0 : i32
    %c0_i32_0 = arith.constant 0 : i32
    %c0_i32_1 = arith.constant 0 : i32
    %c0_i32_2 = arith.constant 0 : i32
    %c0_i32_3 = arith.constant 0 : i32
    return %c0_i32, %c0_i32_0, %c0_i32_1, %c0_i32_2 : i32, i32, i32, i32
  }
  func.func @transform_4(%arg0: i32, %arg1: i32) -> (i32, i32, i32, i32) {
    %c0_i32 = arith.constant 0 : i32
    %c0_i32_0 = arith.constant 0 : i32
    %c0_i32_1 = arith.constant 0 : i32
    %c0_i32_2 = arith.constant 0 : i32
    %c0_i32_3 = arith.constant 0 : i32
    return %c0_i32, %c0_i32_0, %c0_i32_1, %c0_i32_2 : i32, i32, i32, i32
  }
  func.func @transform_5(%arg0: i32, %arg1: i32) -> (i32, i32, i32, i32) {
    %c0_i32 = arith.constant 0 : i32
    %c0_i32_0 = arith.constant 0 : i32
    %c0_i32_1 = arith.constant 0 : i32
    return %arg0, %arg1, %c0_i32, %c0_i32_0 : i32, i32, i32, i32
  }
}

</mosaic_0001>

<bundles_post_ra>
// kernel: _forward.1
= control target key start
LH: loop header
LB: loop body
LE: loop exit
PB: predicated region body
PF: predicated region fallthrough
CT: control target
= control target key end

     0   :  { %s8142_s18 = smov 0   ;;  %s8144_s19 = smov 0   ;;  %s10302_s0 = inlined_call_operand.vmem [shape: bf16[2,20,18,4], index: 0, kind: input, shape index: {}]   ;;  %s10303_s1 = inlined_call_operand.vmem [shape: bf16[2,20,18,4], index: 1, kind: input, shape index: {}]   ;;  %s10304_s2 = inlined_call_operand.vmem [shape: bf16[3,3,4,8], index: 2, kind: input, shape index: {}]   ;;  %s10305_s3 = inlined_call_operand.vmem [shape: bf16[3,3,4,8], index: 3, kind: input, shape index: {}]   ;;  %s10306_s4 = inlined_call_operand.vmem [shape: bf16[3,3,8,8], index: 4, kind: input, shape index: {}]   ;;  %s10307_s5 = inlined_call_operand.vmem [shape: f32[2,16,16,8], index: 5, kind: output, shape index: {}]  }
   0x1   :  { %s8146_s20 = smov 0   ;;  %s8148_s21 = smov 0  }
   0x2   :  { %s8150_s22 = smov 0  }
   0x3 LB: > { %s24_s23 = sadd.s32 1, %s8100_s20  ;;  %s27_s24 = sadd.s32 1, %s8104_s21  ;;  %s8108_s22 = sphi %s8150_s22, %s15_s22   ;;  %s8104_s21 = sphi %s8148_s21, %s10528_s21   ;;  %s8100_s20 = sphi %s8146_s20, %s10527_s20   ;;  %s8096_s19 = sphi %s8144_s19, %s10526_s19   ;;  %s8092_s18 = sphi %s8142_s18, %s10525_s18  }
   0x4   : > { %p25_p0 = scmp.ge.s32.totalorder %s24_s23, 2  ;;  %p6183_p1 = scmp.ge.s32.totalorder %s8108_s22, 1 }
   0x5   : > { %p211_p2 = scmp.lt.s32.totalorder %s8108_s22, 5 }
   0x6   : > { %s10530_s23 = smov (%p25_p0, %s24_s23), 0  ;;  %s10532_s24 = smov (!%p25_p0, %s27_s24), %s8104_s21 }
   0x7   : > { %p212_p3 = pnand %p6183_p1, %p211_p2  ;;  %p29_p4 = scmp.ge.s32.totalorder %s10532_s24, 2 }
   0x9   : > { %s10534_s24 = smov (%p29_p4, %s10532_s24), 0  ;;  %215 = sbr.rel (%p212_p3) target bundleno = 1294 (0x50e), region = 40 }
  0x10   : > { %v283_v0 = vld [vmem:[%s10305_s3 + $0x4] sm:$0x3]  ;;  %vm457_vm0 = vcmask 1041408   ;;  %p249_p5 = scmp.lt.s32.totalorder %s8096_s19, 1  ;;  %s6186_s27 = sshll.u32 %s8092_s18, 3  ;;  %vm1655_vm1 = vcmask 1042432  }
  0x11   : > { %7940 = vmatprep.subr.msk.bf16.mxu0 %vm457_vm0, %v283_v0  ;;  %v8180_v1 = vsel %vm457_vm0, %v283_v0, 0  ;;  %p262_p6 = scmp.lt.s32.totalorder %s6186_s27, 15  ;;  %s6606_s28 = smul.u32 96, %s8092_s18  ;;  %v275_v2 = vld [vmem:[%s10304_s2 + $0x6] sm:$0x3]  ;;  %vm1656_vm2 = vcmask 1046532  }
  0x12   : > { %10382 = vst [vmem:[#allocation3_spill] sm:$0xff] %v8180_v1  ;;  %7018 = vmatpush3.bf16.msra.mxu0 %v8180_v1  ;;  %s10536_s19 = smov (!%p249_p5, %s8096_s19), 1  ;;  %v281_v3 = vld [vmem:[%s10305_s3] sm:$0x3]  ;;  %v8212_v5 = vld [vmem:[%s10306_s4 + $0x4] sm:$0xf]  ;;  %vm8236_vm3 = vmor %vm1655_vm1, %vm1656_vm2 }
  0x13   : > { %s10538_s27 = smov (!%p262_p6, %s6186_s27), 15  ;;  %7942 = vmatprep.subr.msk.bf16.mxu0 %vm457_vm0, %v275_v2  ;;  %s7963_s6 = smul.u32 240, %s10536_s19  ;;  %v8203_v4 = vld [vmem:[%s10306_s4] sm:$0xf]  ;;  %10384 = vst [vmem:[#allocation5_spill] sm:$0xff] %v8212_v5  ;;  %7935 = vmatprep.subr.msk.bf16.mxu1 %vm457_vm0, %v281_v3  ;;  %v459_v7 = vsel %vm457_vm0, %v281_v3, 0 }
  0x14   : > { %s6188_s7 = sshll.u32 %s10536_s19, 5  ;;  %s6187_s8 = sshll.u32 %s10538_s27, 1  ;;  %10383 = vst [vmem:[#allocation4_spill] sm:$0xff] %v8203_v4  ;;  %v8217_v6 = vld [vmem:[%s10306_s4 + $0x8] sm:$0xf]  ;;  %6908 = vmatpush3.bf16.msra.mxu1 %v459_v7  ;;  %v10386_v11 = vmov 0 }
  0x15   : > { %s258_s11 = scalar_lea.vmem %s10303_s1, %s7963_s6  ;;  %s266_s12 = sadd.s32 %s6188_s7, %s6187_s8  ;;  %10385 = vst [vmem:[#allocation6_spill] sm:$0xff] %v8217_v6  ;;  %v10387_v11 = vsel %vm8236_vm3, 4294967295, %v10386_v11  ;;  %vm426_vm4 = vcmask 31744   ;;  %v2209_v38 = vsel %vm457_vm0, %v275_v2, 0  ;;  %v284_v40 = vld [vmem:[%s10305_s3 + $0x6] sm:$0x3] }
  0x16   : > { %s6189_s17 = sshll.u32 %s266_s12, 3  ;;  %s8207_s25 = scalar_lea.vmem %s258_s11, %s6606_s28  ;;  %10388 = vst [vmem:[#allocation7_spill] sm:$0xff] %v10387_v11  ;;  %vm770_vm5 = vsmask.f32 3328  ;;  %vm771_vm6 = vsmask.f32 7440 }
  0x17   : > { %s8224_s9 = scalar_lea.vmem %s10307_s5, %s6189_s17  ;;  %v8227_v8 = vld [vmem:[%s8207_s25] sm:$0xf]  ;;  %v8230_v9 = vld [vmem:[%s8207_s25 + $0x4] sm:$0xf]  ;;  %v8233_v10 = vld [vmem:[%s8207_s25 + $0x8] sm:$0x1]  ;;  %s253_s14 = scalar_lea.vmem %s10302_s0, %s7963_s6 }
  0x18   : > { %v8241_v12 = vld [vmem:[%s8207_s25 + $0xc] sm:$0xf]  ;;  %v6284_v13 = vrot.slane %v8227_v8, 9  ;;  %v1740_v14 = vrot.slane %v8230_v9, 5  ;;  %v1743_v15 = vrot.slane %v8233_v10, 5  ;;  %v6194_v20 = vcombine.low %v8227_v8, %v8230_v9  ;;  %s8363_s15 = scalar_lea.vmem %s253_s14, %s6606_s28  ;;  %vm8625_vm7 = vmor %vm770_vm5, %vm771_vm6  ;;  %p6490_p7 = scmp.ne.s32.totalorder %s8092_s18, 0 }
  0x19   : > { %v8247_v16 = vld [vmem:[%s8207_s25 + $0x10] sm:$0xf]  ;;  %v6285_v17 = vrot.slane %v8241_v12, 9  ;;  %v8251_v18 = vld [vmem:[%s8207_s25 + $0x14] sm:$0x1]  ;;  %vm4070_vm8 = vcmask 57344  }
  0x1a   : > { %v1747_v19 = vrot.slane %v8247_v16, 5  ;;  %v1741_v21 = vsel %vm8236_vm3, %v6284_v13, %v1740_v14  ;;  %v1742_v22 = vrot.slane %v1740_v14, 4  ;;  %v1750_v23 = vrot.slane %v8251_v18, 5  ;;  %v8266_v27 = vld [vmem:[%s8207_s25 + $0x18] sm:$0xf]  ;;  %6909 = vmatprep.mubr.msk.bf16.mxu1 %vm426_vm4, %v6194_v20 }
  0x1b   : > { %v8261_v24 = vcombine.low %v8241_v12, %v8247_v16  ;;  %v8272_v29 = vld [vmem:[%s8207_s25 + $0x1c] sm:$0xf]  ;;  %v8275_v30 = vld [vmem:[%s8207_s25 + $0x20] sm:$0x1]  ;;  %v8278_v31 = vld [vmem:[%s8207_s25 + $0x24] sm:$0xf] }
  0x1c   : > { %v1748_v25 = vsel %vm8236_vm3, %v6285_v17, %v1747_v19  ;;  %v1749_v26 = vrot.slane %v1747_v19, 4  ;;  %v1744_v28 = vsel %vm8236_vm3, %v1742_v22, %v1743_v15  ;;  %v8285_v34 = vld [vmem:[%s8207_s25 + $0x28] sm:$0xf]  ;;  %v8288_v35 = vld [vmem:[%s8207_s25 + $0x2c] sm:$0x1]  ;;  %v6286_v41 = vrot.slane %v8266_v27, 9 }
  0x1d   : > { %6910 = vmatmul.mubr.msk.bf16.vlgmr.msra.gmra.mrb[0].mxu1 %vm426_vm4, %v8261_v24  ;;  %v6314_v32 = vcombine.low %v1741_v21, %v1744_v28  ;;  %10389 = vst [vmem:[#allocation8_spill] sm:$0xff] %v8285_v34  ;;  %10390 = vst [vmem:[#allocation9_spill] sm:$0xff] %v8288_v35  ;;  %v8291_v36 = vld [vmem:[%s8207_s25 + $0x30] sm:$0xf]  ;;  %v8297_v39 = vld [vmem:[%s8207_s25 + $0x34] sm:$0xf]  ;;  %v8327_v55 = vcombine.low %v8266_v27, %v8272_v29 }
  0x1e   : > { %v1751_v33 = vsel %vm8236_vm3, %v1749_v26, %v1750_v23  ;;  %10391 = vst [vmem:[#allocation10_spill] sm:$0xff] %v8291_v36  ;;  %10393 = vst [vmem:[#allocation12_spill] sm:$0xff] %v8297_v39  ;;  %v1754_v42 = vrot.slane %v8272_v29, 5  ;;  %v1757_v43 = vrot.slane %v8275_v30, 5  ;;  %v6287_v44 = vrot.slane %v8278_v31, 9 }
  0x1f   : > { %v8293_v37 = vcombine.low %v1748_v25, %v1751_v33  ;;  %7019 = vmatprep.mubr.msk.bf16.mxu0 %vm426_vm4, %v6314_v32  ;;  %v8308_v45 = vld [vmem:[%s8207_s25 + $0x38] sm:$0x1]  ;;  %v1761_v46 = vrot.slane %v8285_v34, 5  ;;  %v1764_v47 = vrot.slane %v8288_v35, 5  ;;  %v6288_v48 = vrot.slane %v8291_v36, 9  ;;  %10397 = vst [vmem:[#allocation16_spill] sm:$0xff] %v8327_v55  ;;  %6913 = vmatprep.mubr.msk.bf16.mxu1 %vm426_vm4, %v8327_v55 }
  0x20   : > { %10394 = vst [vmem:[#allocation13_spill] sm:$0xff] %v8308_v45  ;;  %v1768_v49 = vrot.slane %v8297_v39, 5  ;;  %v1755_v50 = vsel %vm8236_vm3, %v6286_v41, %v1754_v42  ;;  %v1756_v51 = vrot.slane %v1754_v42, 4  ;;  %v1771_v52 = vrot.slane %v8308_v45, 5  ;;  %v8320_v53 = vld [vmem:[%s8207_s25 + $0x3c] sm:$0xf] }
  0x21   : > { %10392 = vst [vmem:[#allocation11_spill] sm:$0xff] %v8293_v37  ;;  %7020 = vmatmul.mubr.msk.bf16.vlgmr.msra.gmra.mrb[0].mxu0 %vm426_vm4, %v8293_v37  ;;  %10395 = vst [vmem:[#allocation14_spill] sm:$0xff] %v8320_v53  ;;  %v8323_v54 = vld [vmem:[%s8207_s25 + $0x40] sm:$0xf]  ;;  %v1762_v56 = vsel %vm8236_vm3, %v6287_v44, %v1761_v46  ;;  %v1763_v57 = vrot.slane %v1761_v46, 4  ;;  %v6289_v3 = vrot.slane %v8320_v53, 9  ;;  %v8387_v25 = vcombine.low %v8278_v31, %v8285_v34 }
  0x22   : > { %7040 = vmatpush3.bf16.msra.mxu0 %v2209_v38  ;;  %10396 = vst [vmem:[#allocation15_spill] sm:$0xff] %v8323_v54  ;;  %v1769_v58 = vsel %vm8236_vm3, %v6288_v48, %v1768_v49  ;;  %v1770_v59 = vrot.slane %v1768_v49, 4  ;;  %v8334_v60 = vld [vmem:[%s8207_s25 + $0x44] sm:$0x1]  ;;  %v1758_v61 = vsel %vm8236_vm3, %v1756_v51, %v1757_v43  ;;  %v1775_v62 = vrot.slane %v8323_v54, 5 }
  0x23   : > { %10398 = vst [vmem:[#allocation17_spill] sm:$0xff] %v8334_v60  ;;  %7943 = vmatprep.subr.msk.bf16.mxu0 %vm457_vm0, %v284_v40  ;;  %v8342_v63 = vcombine.low %v1755_v50, %v1758_v61  ;;  %v1765_v0 = vsel %vm8236_vm3, %v1763_v57, %v1764_v47  ;;  %v1778_v15 = vrot.slane %v8334_v60, 5  ;;  %v8374_v20 = vld [vmem:[%s8363_s15 + $0xc] sm:$0xf]  ;;  %v8377_v21 = vld [vmem:[%s8363_s15 + $0x10] sm:$0xf]  ;;  %v8391_v26 = vcombine.low %v8291_v36, %v8297_v39 }
  0x24   : > { %v1772_v2 = vsel %vm8236_vm3, %v1770_v59, %v1771_v52  ;;  %v8354_v7 = vcombine.low %v1762_v56, %v1765_v0  ;;  %v1777_v14 = vrot.slane %v1775_v62, 4  ;;  %v1776_v17 = vsel %vm8236_vm3, %v6289_v3, %v1775_v62  ;;  %10403 = vst [vmem:[#allocation22_spill] sm:$0xff] %v8387_v25  ;;  %v8400_v28 = vld [vmem:[%s8363_s15 + $0x18] sm:$0xf]  ;;  %v8403_v32 = vld [vmem:[%s8363_s15 + $0x1c] sm:$0xf] }
  0x25   : > { %10399 = vst [vmem:[#allocation18_spill] sm:$0xff] %v8342_v63  ;;  %v8356_v13 = vcombine.low %v1769_v58, %v1772_v2  ;;  %7023 = vmatprep.mubr.msk.bf16.mxu0 %vm426_vm4, %v8342_v63  ;;  %v8383_v23 = vcombine.low %v8374_v20, %v8377_v21  ;;  %10404 = vst [vmem:[#allocation23_spill] sm:$0xff] %v8391_v26  ;;  %6914 = vmatmul.mubr.msk.bf16.gmra.mrb[4].mxu1 %vm426_vm4, %v8387_v25  ;;  %v8408_v33 = vld [vmem:[%s8363_s15 + $0x24] sm:$0xf]  ;;  %v8411_v38 = vld [vmem:[%s8363_s15 + $0x28] sm:$0xf] }
  0x26   : > { %10400 = vst [vmem:[#allocation19_spill] sm:$0xff] %v8354_v7  ;;  %v1779_v19 = vsel %vm8236_vm3, %v1777_v14, %v1778_v15  ;;  %6917 = vmatprep.mubr.msk.bf16.mxu1 %vm426_vm4, %v8391_v26  ;;  %v8415_v41 = vcombine.low %v8400_v28, %v8403_v32  ;;  %v8419_v42 = vcombine.low %v8408_v33, %v8411_v38  ;;  %v8422_v43 = vld [vmem:[%s8207_s25 + $0x48] sm:$0xf]  ;;  %v8425_v44 = vld [vmem:[%s8207_s25 + $0x4c] sm:$0xf]  ;;  %v2353_v46 = vsel %vm457_vm0, %v284_v40, 0 }
  0x27   : > { %10401 = vst [vmem:[#allocation20_spill] sm:$0xff] %v8356_v13  ;;  %v8379_v22 = vcombine.low %v1776_v17, %v1779_v19  ;;  %10407 = vst [vmem:[#allocation26_spill] sm:$0xff] %v8422_v43  ;;  %v8430_v47 = vcombine.low %v8320_v53, %v8323_v54  ;;  %v8435_v48 = vld [vmem:[%s10304_s2 + $0x8] sm:$0x3]  ;;  %v8440_v49 = vld [vmem:[%s8363_s15 + $0x30] sm:$0xf]  ;;  %v8447_v40 = vcombine.low %v8422_v43, %v8425_v44 }
  0x28   : > { %10405 = vst [vmem:[#allocation24_spill] sm:$0xff] %v8415_v41  ;;  %10406 = vst [vmem:[#allocation25_spill] sm:$0xff] %v8419_v42  ;;  %v8443_v50 = vld [vmem:[%s8363_s15 + $0x34] sm:$0xf]  ;;  %v8454_v51 = vld [vmem:[%s8363_s15 + $0x3c] sm:$0xf] }
  0x29   : > { %7024 = vmatmul.mubr.msk.bf16.gmra.mrb[4].mxu0 %vm426_vm4, %v8354_v7  ;;  %10402 = vst [vmem:[#allocation21_spill] sm:$0xff] %v8379_v22  ;;  %10408 = vst [vmem:[#allocation27_spill] sm:$0xff] %v8425_v44  ;;  %v8457_v52 = vld [vmem:[%s8363_s15 + $0x40] sm:$0xf]  ;;  %v8462_v56 = vld [vmem:[%s10306_s4 + $0xc] sm:$0xf]  ;;  %v8496_v2 = vcombine.low %v8440_v49, %v8443_v50 }
  0x2a   : > { %7027 = vmatprep.mubr.msk.bf16.mxu0 %vm426_vm4, %v8356_v13  ;;  %10409 = vst [vmem:[#allocation28_spill] sm:$0xff] %v8430_v47  ;;  %10410 = vst [vmem:[#allocation29_spill] sm:$0xff] %v8447_v40  ;;  %v8467_v57 = vld [vmem:[%s8207_s25 + $0x54] sm:$0xf]  ;;  %v8472_v58 = vld [vmem:[%s10306_s4 + $0x10] sm:$0xf]  ;;  %v8511_v17 = vcombine.low %v8454_v51, %v8457_v52 }
  0x2b   : > { %10411 = vst [vmem:[#allocation30_spill] sm:$0xff] %v8462_v56  ;;  %10412 = vst [vmem:[#allocation31_spill] sm:$0xff] %v8467_v57  ;;  %v8477_v59 = vld [vmem:[%s10306_s4 + $0x14] sm:$0xf]  ;;  %v8482_v61 = vld [vmem:[%s8207_s25 + $0x58] sm:$0xf] }
  0x2c   : > { %10413 = vst [vmem:[#allocation32_spill] sm:$0xff] %v8472_v58  ;;  %10414 = vst [vmem:[#allocation33_spill] sm:$0xff] %v8477_v59  ;;  %v8487_v62 = vld [vmem:[%s10306_s4 + $0x18] sm:$0xf]  ;;  %v8492_v0 = vld [vmem:[%s10306_s4 + $0x1c] sm:$0xf]  ;;  %v8515_v19 = vcombine.low %v8467_v57, %v8482_v61 }
  0x2d   : > { %6918 = vmatmul.mubr.msk.bf16.gmra.mrb[8].mxu1 %vm426_vm4, %v8430_v47  ;;  %10415 = vst [vmem:[#allocation34_spill] sm:$0xff] %v8482_v61  ;;  %10416 = vst [vmem:[#allocation35_spill] sm:$0xff] %v8487_v62  ;;  %v8499_v3 = vld [vmem:[%s8207_s25 + $0x60] sm:$0xf]  ;;  %v8502_v14 = vld [vmem:[%s8207_s25 + $0x64] sm:$0xf] }
  0x2e   : > { %6921 = vmatprep.mubr.msk.bf16.mxu1 %vm426_vm4, %v8447_v40  ;;  %10417 = vst [vmem:[#allocation36_spill] sm:$0xff] %v8492_v0  ;;  %10418 = vst [vmem:[#allocation37_spill] sm:$0xff] %v8496_v2  ;;  %v8507_v15 = vld [vmem:[%s10306_s4 + $0x20] sm:$0xf]  ;;  %v8531_v0 = vld [vmem:[%s8363_s15 + $0x4c] sm:$0xf] }
  0x2f   : > { %10419 = vst [vmem:[#allocation38_spill] sm:$0xff] %v8499_v3  ;;  %10420 = vst [vmem:[#allocation39_spill] sm:$0xff] %v8502_v14  ;;  %v8536_v62 = vld [vmem:[%s8363_s15 + $0x54] sm:$0xf]  ;;  %v8539_v59 = vld [vmem:[%s8363_s15 + $0x58] sm:$0xf] }
  0x30   : > { %10421 = vst [vmem:[#allocation40_spill] sm:$0xff] %v8507_v15  ;;  %10422 = vst [vmem:[#allocation41_spill] sm:$0xff] %v8515_v19  ;;  %v8528_v15 = vld [vmem:[%s8363_s15 + $0x48] sm:$0xf]  ;;  %v272_v58 = vld [vmem:[%s10304_s2] sm:$0x3]  ;;  %v8557_v5 = vcombine.low %v8536_v62, %v8539_v59 }
  0x31   : > { %7028 = vmatmul.mubr.msk.bf16.gmra.mrb[8].mxu0 %vm426_vm4, %v8379_v22  ;;  %v8545_v56 = vld [vmem:[%s8207_s25 + $0x6c] sm:$0xf]  ;;  %v8548_v6 = vld [vmem:[%s8207_s25 + $0x70] sm:$0xf]  ;;  %7936 = vmatprep.subr.msk.bf16.mxu1 %vm457_vm0, %v272_v58  ;;  %v8553_v4 = vcombine.low %v8528_v15, %v8531_v0  ;;  %v8570_v13 = vld [vmem:[%s8363_s15 + $0x60] sm:$0xf] }
  0x32   : > { %7041 = vmatprep.mubr.msk.bf16.mxu0 %vm426_vm4, %v8383_v23  ;;  %10424 = vst [vmem:[#allocation43_spill] sm:$0xff] %v8545_v56  ;;  %10425 = vst [vmem:[#allocation44_spill] sm:$0xff] %v8548_v6  ;;  %v8561_v22 = vcombine.low %v8545_v56, %v8548_v6  ;;  %v8573_v7 = vld [vmem:[%s8363_s15 + $0x64] sm:$0xf]  ;;  %v8576_v63 = vld [vmem:[%s8363_s15 + $0x6c] sm:$0xf] }
  0x33   : > { %10426 = vst [vmem:[#allocation45_spill] sm:$0xff] %v8553_v4  ;;  %10427 = vst [vmem:[#allocation46_spill] sm:$0xff] %v8557_v5  ;;  %v8579_v37 = vld [vmem:[%s8363_s15 + $0x70] sm:$0xf]  ;;  %v8583_v1 = vcombine.low %v8570_v13, %v8573_v7  ;;  %v1062_v6 = vshrl.u32 %v8266_v27, 16  ;;  %v1065_v56 = vshll.u32 %v8266_v27, 16 }
  0x34   : > { %10428 = vst [vmem:[#allocation47_spill] sm:$0xff] %v8561_v22  ;;  %v8587_v11 = vcombine.low %v8576_v63, %v8579_v37  ;;  %v8598_v61 = vld [vmem:[%s8363_s15 + $0x78] sm:$0xf]  ;;  %v8601_v57 = vld [vmem:[%s8363_s15 + $0x7c] sm:$0xf]  ;;  %v1081_v35 = vshll.u32 %v8275_v30, 16 }
  0x35   : > { %6922 = vmatmul.mubr.msk.bf16.gmra.mrb[12].mxu1 %vm426_vm4, %v8515_v19  ;;  %10429 = vst [vmem:[#allocation48_spill] sm:$0xff] %v8583_v1  ;;  %v8605_v60 = vcombine.low %v8598_v61, %v8601_v57  ;;  %v1064_v27 = vrot.slane %v1062_v6, 4  ;;  %v1067_v44 = vrot.slane %v1065_v56, 5  ;;  %v8613_v39 = vld [vmem:[%s8363_s15] sm:$0xf]  ;;  %vm4387_vm13 = vcmask 60416  }
  0x36   : > { %10430 = vst [vmem:[#allocation49_spill] sm:$0xff] %v8587_v11  ;;  %v1083_v53 = vrot.slane %v1081_v35, 5  ;;  %v8616_v56 = vld [vmem:[%s8363_s15 + $0x4] sm:$0xf]  ;;  %v8621_v30 = vld [vmem:[%s10304_s2 + $0x2] sm:$0x3] }
  0x37   : > { %10431 = vst [vmem:[#allocation50_spill] sm:$0xff] %v8605_v60  ;;  %v655_v35 = vsel %vm457_vm0, %v272_v58, 0  ;;  %v801_v58 = vshll.u32 %v8374_v20, 16  ;;  %vm4071_vm9 = vsmask.f32 256 }
  0x38   : > { %6930 = vmatpush3.bf16.msra.mxu1 %v655_v35  ;;  %v831_v35 = vshll.u32 %v8403_v32, 16  ;;  %vm9666_vm10 = vmand %vm4070_vm8, %vm4071_vm9  ;;  %vm4103_vm11 = vsmask.f32 7938  ;;  %vm4185_vm14 = vsmask.f32 4368 }
  0x39   : > { %7042 = vmatmul.mubr.msk.bf16.vlgmr.msra.gmra.mrb[0].mxu0 %vm426_vm4, %v8415_v41  ;;  %7937 = vmatprep.subr.msk.bf16.mxu1 %vm457_vm0, %v8621_v30  ;;  %vm9674_vm12 = vmand %vm4070_vm8, %vm4103_vm11 }
  0x3a   : > { %7062 = vmatpush3.bf16.msra.mxu0 %v2353_v46  ;;  %7045 = vmatprep.mubr.msk.bf16.mxu0 %vm426_vm4, %v8419_v42  ;;  %v8519_v46 = vcombine.low %v8499_v3, %v8502_v14  ;;  %v1071_v14 = vshll.u32 %v8272_v29, 16  ;;  %v1075_v3 = vshrl.u32 %v8272_v29, 16  ;;  %v1068_v29 = vor.u32 %v1067_v44, %v1064_v27  ;;  %vm9723_vm15 = vmand %vm4387_vm13, %vm4103_vm11 }
  0x3b   : > { %7944 = vmatprep.subr.msk.bf16.mxu0 %vm457_vm0, %v8435_v48  ;;  %v822_v27 = vshrl.u32 %v8400_v28, 16 }
  0x3c   : > { %10423 = vst [vmem:[#allocation42_spill] sm:$0xff] %v8519_v46  ;;  %6925 = vmatprep.mubr.msk.bf16.mxu1 %vm426_vm4, %v8519_v46  ;;  %v1073_v45 = vrot.slane %v1071_v14, 5  ;;  %v1077_v43 = vrot.slane %v1075_v3, 4  ;;  %v1069_v36 = vrot.slane %v1068_v29, 4  ;;  %v2543_v3 = vsel %vm457_vm0, %v8435_v48, 0 }
  0x3d   : > { %6926 = vmatmul.mubr.msk.bf16.gmra.mrb[16].mxu1 %vm426_vm4, %v8561_v22  ;;  %v6214_v14 = vcombine.low %v8613_v39, %v8616_v56  ;;  %v825_v29 = vshll.u32 %v8400_v28, 16  ;;  %v849_v28 = vshll.u32 %v8408_v33, 16 }
  0x3e   : > { %v1078_v54 = vor.u32 %v1077_v43, %v1073_v45  ;;  %v1074_v43 = vsel %vm8625_vm7, %v1069_v36, %v1073_v45  ;;  %v803_v36 = vrot.slane %v801_v58, 5 }
  0x3f   : > { %6931 = vmatprep.mubr.msk.bf16.mxu1 %vm426_vm4, %v6214_v14  ;;  %v859_v14 = vshrl.u32 %v8411_v38, 16 }
  0x40   : > { %v1079_v6 = vrot.slane %v1078_v54, 4  ;;  %v285_v54 = vld [vmem:[%s10305_s3 + $0x8] sm:$0x3] }
  0x41   : > { %7046 = vmatmul.mubr.msk.bf16.gmra.mrb[4].mxu0 %vm426_vm4, %v8496_v2  ;;  %v8655_v45 = vsel %vm457_vm0, %v285_v54, 0 }
  0x42   : > { %7049 = vmatprep.mubr.msk.bf16.mxu0 %vm426_vm4, %v8511_v17  ;;  %v1084_v44 = vsel %vm8625_vm7, %v1079_v6, %v1083_v53  ;;  %v798_v53 = vshrl.u32 %v8374_v20, 16  ;;  %v811_v6 = vshrl.u32 %v8377_v21, 16  ;;  %v824_v20 = vrot.slane %v822_v27, 4 }
  0x43   : > { %v8639_v48 = vcombine.low %v1074_v43, %v1084_v44  ;;  %v846_v44 = vshrl.u32 %v8408_v33, 16  ;;  %v8678_v43 = vld [vmem:[%s8363_s15 + $0x14] sm:$0x1]  ;;  %v8685_v33 = vrot.slane %v831_v35, 5 }
  0x44   : > { %v817_v35 = vshll.u32 %v8678_v43, 16 }
  0x45   : > { %10434 = vst [vmem:[#allocation51_spill] sm:$0xff] %v8639_v48  ;;  %6932 = vmatmul.mubr.msk.bf16.vlgmr.msra.gmra.mrb[0].mxu1 %vm426_vm4, %v8383_v23  ;;  %v835_v23 = vshrl.u32 %v8403_v32, 16  ;;  %v873_v32 = vshll.u32 %v8440_v49, 16  ;;  %v848_v34 = vrot.slane %v846_v44, 4 }
  0x46   : > { %6935 = vmatprep.mubr.msk.bf16.mxu1 %vm426_vm4, %v8415_v41  ;;  %v819_v44 = vrot.slane %v817_v35, 5 }
  0x47   : > { %v837_v41 = vrot.slane %v835_v23, 4  ;;  %v855_v23 = vshll.u32 %v8411_v38, 16  ;;  %v861_v38 = vrot.slane %v859_v14, 4 }
  0x49   : > { %7050 = vmatmul.mubr.msk.bf16.gmra.mrb[8].mxu0 %vm426_vm4, %v8553_v4  ;;  %v838_v58 = vor.u32 %v837_v41, %v8685_v33 }
  0x4a   : > { %7053 = vmatprep.mubr.msk.bf16.mxu0 %vm426_vm4, %v8557_v5 }
  0x4b   : > { %v839_v27 = vrot.slane %v838_v58, 4 }
  0x4d   : > { %6936 = vmatmul.mubr.msk.bf16.gmra.mrb[4].mxu1 %vm426_vm4, %v8419_v42 }
  0x4e   : > { %6939 = vmatprep.mubr.msk.bf16.mxu1 %vm426_vm4, %v8496_v2  ;;  %v851_v2 = vrot.slane %v849_v28, 5 }
  0x51   : > { %7054 = vmatmul.mubr.msk.bf16.gmra.mrb[12].mxu0 %vm426_vm4, %v8583_v1 }
  0x52   : > { %7057 = vmatprep.mubr.msk.bf16.mxu0 %vm426_vm4, %v8587_v11 }
  0x55   : > { %6940 = vmatmul.mubr.msk.bf16.gmra.mrb[8].mxu1 %vm426_vm4, %v8511_v17 }
  0x56   : > { %6943 = vmatprep.mubr.msk.bf16.mxu1 %vm426_vm4, %v8553_v4 }
  0x59   : > { %7058 = vmatmul.mubr.msk.bf16.gmra.mrb[16].mxu0 %vm426_vm4, %v8605_v60  ;;  %v8683_v60 = vld [vmem:[%s8363_s15 + $0x20] sm:$0x1] }
  0x5a   : > { %7063 = vmatprep.mubr.msk.bf16.mxu0 %vm426_vm4, %v8261_v24  ;;  %v841_v48 = vshll.u32 %v8683_v60, 16 }
  0x5d   : > { %6944 = vmatmul.mubr.msk.bf16.gmra.mrb[12].mxu1 %vm426_vm4, %v8557_v5 }
  0x5e   : > { %6947 = vmatprep.mubr.msk.bf16.mxu1 %vm426_vm4, %v8583_v1  ;;  %v783_v1 = vshll.u32 %v8616_v56, 16 }
  0x61   : > { %7064 = vmatmul.mubr.msk.bf16.vlgmr.msra.gmra.mrb[0].mxu0 %vm426_vm4, %v8327_v55 }
  0x62   : > { %7084 = vmatpush3.bf16.msra.mxu0 %v2543_v3  ;;  %7067 = vmatprep.mubr.msk.bf16.mxu0 %vm426_vm4, %v8387_v25  ;;  %v807_v3 = vshll.u32 %v8377_v21, 16  ;;  %v870_v21 = vshrl.u32 %v8440_v49, 16  ;;  %v827_v25 = vrot.slane %v825_v29, 5  ;;  %v883_v49 = vshrl.u32 %v8443_v50, 16 }
  0x63   : > { %7945 = vmatprep.subr.msk.bf16.mxu0 %vm457_vm0, %v285_v54  ;;  %v800_v54 = vrot.slane %v798_v53, 4  ;;  %v897_v53 = vshll.u32 %v8454_v51, 16 }
  0x64   : > { %v8680_v55 = vrot.slane %v807_v3, 5  ;;  %v828_v42 = vor.u32 %v827_v25, %v824_v20  ;;  %v879_v25 = vshll.u32 %v8443_v50, 16  ;;  %v872_v41 = vrot.slane %v870_v21, 4 }
  0x65   : > { %v804_v3 = vor.u32 %v803_v36, %v800_v54  ;;  %v875_v36 = vrot.slane %v873_v32, 5  ;;  %v852_v50 = vor.u32 %v851_v2, %v848_v34  ;;  %v8729_v2 = vld [vmem:[%s8363_s15 + $0x38] sm:$0x1]  ;;  %v899_v21 = vrot.slane %v897_v53, 5  ;;  %6948 = vmatmul.mubr.msk.bf16.gmra.mrb[16].mxu1 %vm426_vm4, %v8587_v11 }
  0x66   : > { %v829_v28 = vrot.slane %v828_v42, 4  ;;  %v8721_v32 = vrot.slane %v879_v25, 5  ;;  %v8738_v25 = vld [vmem:[%s8207_s25 + $0x78] sm:$0xf] }
  0x67   : > { %v805_v20 = vrot.slane %v804_v3, 4  ;;  %v876_v58 = vor.u32 %v875_v36, %v872_v41  ;;  %v853_v35 = vrot.slane %v852_v50, 4  ;;  %v889_v3 = vshll.u32 %v8729_v2, 16 }
  0x68   : > { %v834_v41 = vsel %vm8625_vm7, %v829_v28, %v8685_v33 }
  0x69   : > { %7068 = vmatmul.mubr.msk.bf16.gmra.mrb[4].mxu0 %vm426_vm4, %v8391_v26  ;;  %v813_v26 = vrot.slane %v811_v6, 4  ;;  %v8715_v6 = vld [vmem:[%s8363_s15 + $0x2c] sm:$0x1] }
  0x6a   : > { %7071 = vmatprep.mubr.msk.bf16.mxu0 %vm426_vm4, %v8430_v47  ;;  %v894_v47 = vshrl.u32 %v8454_v51, 16  ;;  %v865_v34 = vshll.u32 %v8715_v6, 16 }
  0x6b   : > { %v814_v51 = vor.u32 %v813_v26, %v8680_v55  ;;  %v8711_v26 = vrot.slane %v855_v23, 5  ;;  %v885_v23 = vrot.slane %v883_v49, 4  ;;  %v810_v49 = vsel %vm8625_vm7, %v805_v20, %v8680_v55  ;;  %v8750_v55 = vld [vmem:[%s8207_s25 + $0x7c] sm:$0xf] }
  0x6c   : > { %v896_v42 = vrot.slane %v894_v47, 4  ;;  %v927_v47 = vshll.u32 %v8531_v0, 16  ;;  %v8770_v53 = vcombine.low %v8738_v25, %v8750_v55 }
  0x6d   : > { %v815_v29 = vrot.slane %v814_v51, 4  ;;  %v903_v51 = vshll.u32 %v8457_v52, 16  ;;  %v886_v20 = vor.u32 %v885_v23, %v8721_v32  ;;  %v10435_v23 = vshrl.u32 %v8457_v52, 16 }
  0x6e   : > { %10436 = vst [vmem:[#allocation52_spill] sm:$0xff] %v8770_v53 }
  0x6f   : > { %v8763_v50 = vrot.slane %v903_v51, 5  ;;  %v909_v14 = vrot.slane %v10435_v23, 4  ;;  %v8781_v52 = vrot.slane %v886_v20, 4  ;;  %v8783_v51 = vrot.slane %v889_v3, 5 }
  0x70   : > { %v900_v23 = vor.u32 %v899_v21, %v896_v42  ;;  %v951_v3 = vshll.u32 %v8539_v59, 16  ;;  %v8799_v42 = vld [vmem:[%s8363_s15 + $0x50] sm:$0x1]  ;;  %v8803_v20 = vrot.slane %v927_v47, 5 }
  0x71   : > { %7072 = vmatmul.mubr.msk.bf16.gmra.mrb[8].mxu0 %vm426_vm4, %v8447_v40  ;;  %v843_v40 = vrot.slane %v841_v48, 5  ;;  %v862_v48 = vor.u32 %v861_v38, %v8711_v26  ;;  %v820_v38 = vsel %vm8625_vm7, %v815_v29, %v819_v44  ;;  %v867_v44 = vrot.slane %v865_v34, 5 }
  0x72   : > { %7075 = vmatprep.mubr.msk.bf16.mxu0 %vm426_vm4, %v8515_v19  ;;  %v910_v21 = vor.u32 %v909_v14, %v8763_v50  ;;  %v10440_v29 = vshrl.u32 %v8536_v62, 16  ;;  %v777_v14 = vshll.u32 %v8613_v39, 16  ;;  %v901_v47 = vrot.slane %v900_v23, 4  ;;  %v8841_v23 = vld [vmem:[%s10305_s3 + $0x2] sm:$0x3] }
  0x73   : > { %v844_v36 = vsel %vm8625_vm7, %v839_v27, %v843_v40  ;;  %v863_v33 = vrot.slane %v862_v48, 4  ;;  %v8757_v40 = vrot.slane %v876_v58, 4  ;;  %v8760_v27 = vld [vmem:[%s8363_s15 + $0x44] sm:$0x1]  ;;  %v8772_v48 = vcombine.low %v810_v49, %v820_v38 }
  0x74   : > { %v8774_v34 = vcombine.low %v834_v41, %v844_v36  ;;  %v858_v58 = vsel %vm8625_vm7, %v853_v35, %v8711_v26  ;;  %v913_v28 = vshll.u32 %v8760_v27, 16  ;;  %v10437_v35 = vshrl.u32 %v8528_v15, 16 }
  0x75   : > { %v868_v49 = vsel %vm8625_vm7, %v863_v33, %v867_v44  ;;  %v10438_v41 = vshll.u32 %v8528_v15, 16  ;;  %v10439_v33 = vshrl.u32 %v8531_v0, 16  ;;  %v944_v26 = vrot.slane %v10440_v29, 4 }
  0x76   : > { %v920_v38 = vrot.slane %v10437_v35, 4  ;;  %v10441_v35 = vshll.u32 %v8536_v62, 16  ;;  %v8815_v15 = vcombine.low %v858_v58, %v868_v49  ;;  %v892_v0 = vsel %vm8625_vm7, %v8781_v52, %v8783_v51  ;;  %v8836_v51 = vld [vmem:[%s8363_s15 + $0x8] sm:$0x1] }
  0x77   : > { %v923_v36 = vrot.slane %v10438_v41, 5  ;;  %v933_v44 = vrot.slane %v10439_v33, 4  ;;  %v915_v29 = vrot.slane %v913_v28, 5  ;;  %v8822_v41 = vld [vmem:[%s8363_s15 + $0x5c] sm:$0x1]  ;;  %v937_v62 = vshll.u32 %v8799_v42, 16 }
  0x78   : > { %v947_v54 = vrot.slane %v10441_v35, 5  ;;  %v8827_v33 = vrot.slane %v951_v3, 5  ;;  %v10442_v35 = vshrl.u32 %v8539_v59, 16  ;;  %v787_v49 = vshrl.u32 %v8616_v56, 16 }
  0x79   : > { %7076 = vmatmul.mubr.msk.bf16.gmra.mrb[12].mxu0 %vm426_vm4, %v8519_v46  ;;  %v924_v46 = vor.u32 %v923_v36, %v920_v38  ;;  %v934_v52 = vor.u32 %v933_v44, %v8803_v20  ;;  %v1314_v28 = vsel %vm457_vm0, %v8621_v30, 0  ;;  %v961_v59 = vshll.u32 %v8822_v41, 16 }
  0x7a   : > { %7079 = vmatprep.mubr.msk.bf16.mxu0 %vm426_vm4, %v8561_v22  ;;  %v774_v22 = vshrl.u32 %v8613_v39, 16  ;;  %v957_v58 = vrot.slane %v10442_v35, 4  ;;  %v948_v3 = vor.u32 %v947_v54, %v944_v26  ;;  %v779_v38 = vrot.slane %v777_v14, 5  ;;  %6952 = vmatpush3.bf16.msra.mxu1 %v1314_v28 }
  0x7b   : > { %v10443_v36 = vshrl.u32 %v8570_v13, 16  ;;  %v10444_v30 = vshll.u32 %v8570_v13, 16  ;;  %v975_v19 = vshll.u32 %v8573_v7, 16  ;;  %v789_v5 = vrot.slane %v787_v49, 4  ;;  %7938 = vmatprep.subr.msk.bf16.mxu1 %vm457_vm0, %v8841_v23  ;;  %v8865_v49 = vld [vmem:[%s10304_s2 + $0xa] sm:$0x3] }
  0x7c   : > { %v958_v54 = vor.u32 %v957_v58, %v8827_v33  ;;  %v793_v4 = vshll.u32 %v8836_v51, 16  ;;  %v939_v14 = vrot.slane %v937_v62, 5  ;;  %v785_v28 = vrot.slane %v783_v1, 5 }
  0x7d   : > { %v968_v44 = vrot.slane %v10443_v36, 4  ;;  %v971_v35 = vrot.slane %v10444_v30, 5  ;;  %v925_v36 = vrot.slane %v924_v46, 4  ;;  %v935_v30 = vrot.slane %v934_v52, 4 }
  0x7e   : > { %v999_v58 = vshll.u32 %v8579_v37, 16  ;;  %v790_v1 = vor.u32 %v789_v5, %v785_v28  ;;  %v949_v46 = vrot.slane %v948_v3, 4  ;;  %v959_v62 = vrot.slane %v958_v54, 4 }
  0x7f   : > { %v963_v52 = vrot.slane %v961_v59, 5  ;;  %v10448_v3 = vsel %vm8625_vm7, %v8757_v40, %v8721_v32  ;;  %v930_v32 = vsel %vm8625_vm7, %v925_v36, %v8803_v20  ;;  %v940_v40 = vsel %vm8625_vm7, %v935_v30, %v939_v14 }
  0x80   : > { %v791_v5 = vrot.slane %v790_v1, 4  ;;  %v8893_v59 = vcombine.low %v10448_v3, %v892_v0  ;;  %v1038_v20 = vshrl.u32 %v8241_v12, 16  ;;  %v1041_v14 = vshll.u32 %v8241_v12, 16 }
  0x81   : > { %7080 = vmatmul.mubr.msk.bf16.gmra.mrb[16].mxu0 %vm426_vm4, %v8770_v53  ;;  %v911_v53 = vrot.slane %v910_v21, 4  ;;  %v776_v21 = vrot.slane %v774_v22, 4  ;;  %v906_v22 = vsel %vm8625_vm7, %v901_v47, %v8763_v50  ;;  %v8869_v50 = vrot.slane %v975_v19, 5 }
  0x82   : > { %7085 = vmatprep.mubr.msk.bf16.mxu0 %vm426_vm4, %v8772_v48  ;;  %v10446_v19 = vshrl.u32 %v8576_v63, 16  ;;  %v10450_v30 = vshll.u32 %v8233_v10, 16  ;;  %v8936_v12 = vcombine.low %v930_v32, %v940_v40  ;;  %v8947_v10 = vld [vmem:[%s8363_s15 + $0x80] sm:$0x1] }
  0x83   : > { %v780_v26 = vor.u32 %v779_v38, %v776_v21  ;;  %v916_v13 = vsel %vm8625_vm7, %v911_v53, %v915_v29  ;;  %v10445_v53 = vshrl.u32 %v8573_v7, 16  ;;  %v795_v29 = vrot.slane %v793_v4, 5  ;;  %v8877_v38 = vld [vmem:[%s8363_s15 + $0x68] sm:$0x1] }
  0x84   : > { %v992_v11 = vrot.slane %v10446_v19, 4  ;;  %v10447_v7 = vshll.u32 %v8576_v63, 16  ;;  %v10449_v63 = vshrl.u32 %v8579_v37, 16  ;;  %v8899_v54 = vcombine.low %v906_v22, %v916_v13  ;;  %10451 = vst [vmem:[#allocation53_spill] sm:$0xff] %v8936_v12 }
  0x85   : > { %v781_v21 = vrot.slane %v780_v26, 4  ;;  %v981_v47 = vrot.slane %v10445_v53, 4  ;;  %v972_v26 = vor.u32 %v971_v35, %v968_v44  ;;  %v8895_v44 = vrot.slane %v999_v58, 5 }
  0x86   : > { %v995_v53 = vrot.slane %v10447_v7, 5  ;;  %v1005_v35 = vrot.slane %v10449_v63, 4  ;;  %v796_v1 = vsel %vm8625_vm7, %v791_v5, %v795_v29  ;;  %v954_v37 = vsel %vm8625_vm7, %v949_v46, %v8827_v33 }
  0x87   : > { %v786_v4 = vsel %vm8625_vm7, %v781_v21, %v785_v28  ;;  %v982_v19 = vor.u32 %v981_v47, %v8869_v50  ;;  %v985_v28 = vshll.u32 %v8877_v38, 16  ;;  %v8904_v21 = vld [vmem:[%s8363_s15 + $0x74] sm:$0x1]  ;;  %v964_v22 = vsel %vm8625_vm7, %v959_v62, %v963_v52 }
  0x88   : > { %v6234_v0 = vcombine.low %v786_v4, %v796_v1  ;;  %v973_v13 = vrot.slane %v972_v26, 4  ;;  %v996_v58 = vor.u32 %v995_v53, %v992_v11  ;;  %v2498_v47 = vshll.u32 %v8601_v57, 16 }
  0x89   : > { %7086 = vmatmul.mubr.msk.bf16.vlgmr.msra.gmra.mrb[0].mxu0 %vm426_vm4, %v8774_v34  ;;  %v1006_v29 = vor.u32 %v1005_v35, %v8895_v44  ;;  %v1009_v7 = vshll.u32 %v8904_v21, 16  ;;  %v983_v33 = vrot.slane %v982_v19, 4  ;;  %v987_v36 = vrot.slane %v985_v28, 5 }
  0x8a   : > { %7106 = vmatpush3.bf16.msra.mxu0 %v8655_v45  ;;  %7089 = vmatprep.mubr.msk.bf16.mxu0 %vm426_vm4, %v8815_v15  ;;  %v2502_v45 = vshrl.u32 %v8601_v57, 16  ;;  %v1047_v11 = vshll.u32 %v8247_v16, 16  ;;  %v1051_v57 = vshrl.u32 %v8247_v16, 16  ;;  %v8932_v46 = vrot.slane %v10450_v30, 5 }
  0x8b   : > { %7946 = vmatprep.subr.msk.bf16.mxu0 %vm457_vm0, %v8865_v49  ;;  %6953 = vmatprep.mubr.msk.bf16.mxu1 %vm426_vm4, %v6234_v0  ;;  %v10452_v62 = vshrl.u32 %v8598_v61, 16  ;;  %v10453_v26 = vshll.u32 %v8598_v61, 16  ;;  %v8944_v16 = vcombine.low %v954_v37, %v964_v22  ;;  %v8949_v4 = vrot.slane %v2498_v47, 5 }
  0x8c   : > { %6954 = vmatmul.mubr.msk.bf16.vlgmr.msra.gmra.mrb[0].mxu1 %vm426_vm4, %v8772_v48  ;;  %v997_v48 = vrot.slane %v996_v58, 4  ;;  %v2504_v5 = vrot.slane %v2502_v45, 4  ;;  %v1007_v3 = vrot.slane %v1006_v29, 4  ;;  %v1011_v63 = vrot.slane %v1009_v7, 5 }
  0x8d   : > { %v2491_v52 = vrot.slane %v10452_v62, 4  ;;  %v2494_v53 = vrot.slane %v10453_v26, 5  ;;  %6957 = vmatprep.mubr.msk.bf16.mxu1 %vm426_vm4, %v8774_v34  ;;  %10454 = vst [vmem:[#allocation54_spill] sm:$0xff] %v8944_v16  ;;  %v1040_v35 = vrot.slane %v1038_v20, 4  ;;  %v1043_v19 = vrot.slane %v1041_v14, 5 }
  0x8e   : > { %v978_v61 = vsel %vm8625_vm7, %v973_v13, %v8869_v50  ;;  %v988_v28 = vsel %vm8625_vm7, %v983_v33, %v987_v36  ;;  %v8956_v1 = vrot.slane %v1047_v11, 5  ;;  %v1053_v32 = vrot.slane %v1051_v57, 4 }
  0x8f   : > { %v2495_v40 = vor.u32 %v2494_v53, %v2491_v52  ;;  %v2508_v37 = vshll.u32 %v8947_v10, 16  ;;  %v1510_v45 = vsel %vm457_vm0, %v8841_v23, 0  ;;  %v10455_v0 = vshrl.u32 %v8227_v8, 16 }
  0x90   : > { %v1002_v58 = vsel %vm8625_vm7, %v997_v48, %v8895_v44  ;;  %v2505_v50 = vor.u32 %v2504_v5, %v8949_v4  ;;  %6974 = vmatpush3.bf16.msra.mxu1 %v1510_v45  ;;  %v10456_v13 = vshll.u32 %v8227_v8, 16  ;;  %v1023_v29 = vshll.u32 %v8230_v9, 16 }
  0x91   : > { %7090 = vmatmul.mubr.msk.bf16.gmra.mrb[4].mxu0 %vm426_vm4, %v8893_v59  ;;  %v1016_v22 = vrot.slane %v10455_v0, 4  ;;  %v1012_v7 = vsel %vm8625_vm7, %v1007_v3, %v1011_v63  ;;  %v1044_v20 = vor.u32 %v1043_v19, %v1040_v35  ;;  %v1057_v23 = vshll.u32 %v8251_v18, 16  ;;  %v10459_v18 = vld [vmem:[#allocation8_spill] sm:$0xff] }
  0x92   : > { %7093 = vmatprep.mubr.msk.bf16.mxu0 %vm426_vm4, %v8899_v54  ;;  %v1019_v47 = vrot.slane %v10456_v13, 5  ;;  %v10457_v14 = vshrl.u32 %v8230_v9, 16  ;;  %v1054_v44 = vor.u32 %v1053_v32, %v8956_v1  ;;  %v1086_v36 = vshrl.u32 %v8278_v31, 16  ;;  %v10462_v13 = vld [vmem:[#allocation12_spill] sm:$0xff] }
  0x93   : > { %v1025_v11 = vrot.slane %v1023_v29, 5  ;;  %v8983_v57 = vcombine.low %v978_v61, %v988_v28  ;;  %v1089_v9 = vshll.u32 %v8278_v31, 16  ;;  %v1095_v30 = vshll.u32 %v10459_v18, 16 }
  0x94   : > { %v1029_v33 = vrot.slane %v10457_v14, 4  ;;  %6958 = vmatmul.mubr.msk.bf16.gmra.mrb[4].mxu1 %vm426_vm4, %v8815_v15  ;;  %v1020_v8 = vor.u32 %v1019_v47, %v1016_v22  ;;  %v1099_v62 = vshrl.u32 %v10459_v18, 16  ;;  %v2496_v52 = vrot.slane %v2495_v40, 4  ;;  %v10461_v22 = vld [vmem:[#allocation10_spill] sm:$0xff] }
  0x95   : > { %10458 = vst [vmem:[#allocation55_spill] sm:$0xff] %v8983_v57  ;;  %6961 = vmatprep.mubr.msk.bf16.mxu1 %vm426_vm4, %v8893_v59  ;;  %v2510_v26 = vrot.slane %v2508_v37, 5  ;;  %v8990_v5 = vcombine.low %v1002_v58, %v1012_v7  ;;  %v2506_v3 = vrot.slane %v2505_v50, 4  ;;  %v1045_v63 = vrot.slane %v1044_v20, 4  ;;  %v10463_v7 = vld [vmem:[#allocation14_spill] sm:$0xff] }
  0x96   : > { %v1021_v53 = vrot.slane %v1020_v8, 4  ;;  %v1030_v48 = vor.u32 %v1029_v33, %v1025_v11  ;;  %v1059_v35 = vrot.slane %v1057_v23, 5  ;;  %v1055_v19 = vrot.slane %v1054_v44, 4  ;;  %v10464_v44 = vld [vmem:[#allocation15_spill] sm:$0xff] }
  0x97   : > { %10460 = vst [vmem:[#allocation8_spill] sm:$0xff] %v8990_v5  ;;  %v1088_v61 = vrot.slane %v1086_v36, 4  ;;  %v1091_v32 = vrot.slane %v1089_v9, 5  ;;  %v8994_v45 = vrot.slane %v1095_v30, 5  ;;  %v1101_v0 = vrot.slane %v1099_v62, 4  ;;  %v10465_v9 = vld [vmem:[#allocation9_spill] sm:$0xff] }
  0x98   : > { %v1026_v31 = vsel %vm8625_vm7, %v1021_v53, %v1025_v11  ;;  %v1031_v28 = vrot.slane %v1030_v48, 4  ;;  %v1110_v40 = vshrl.u32 %v10461_v22, 16  ;;  %v1113_v37 = vshll.u32 %v10461_v22, 16 }
  0x99   : > { %7094 = vmatmul.mubr.msk.bf16.gmra.mrb[8].mxu0 %vm426_vm4, %v8936_v12  ;;  %v1119_v58 = vshll.u32 %v10462_v13, 16  ;;  %v1123_v50 = vshrl.u32 %v10462_v13, 16  ;;  %v2501_v29 = vsel %vm8625_vm7, %v2496_v52, %v8949_v4  ;;  %v1134_v20 = vshrl.u32 %v10463_v7, 16 }
  0x9a   : > { %7097 = vmatprep.mubr.msk.bf16.mxu0 %vm426_vm4, %v8944_v16  ;;  %v1036_v47 = vsel %vm8625_vm7, %v1031_v28, %v8932_v46  ;;  %v1137_v23 = vshll.u32 %v10463_v7, 16  ;;  %v2511_v33 = vsel %vm8625_vm7, %v2506_v3, %v2510_v26  ;;  %v1050_v46 = vsel %vm8625_vm7, %v1045_v63, %v8956_v1  ;;  %v10470_v7 = vld [vmem:[#allocation17_spill] sm:$0xff] }
  0x9b   : > { %v9008_v14 = vcombine.low %v1026_v31, %v1036_v47  ;;  %v1143_v36 = vshll.u32 %v10464_v44, 16  ;;  %v1147_v4 = vshrl.u32 %v10464_v44, 16  ;;  %v1060_v8 = vsel %vm8625_vm7, %v1055_v19, %v1059_v35  ;;  %v10467_v19 = vld [vmem:[#allocation26_spill] sm:$0xff] }
  0x9c   : > { %6962 = vmatmul.mubr.msk.bf16.gmra.mrb[8].mxu1 %vm426_vm4, %v8899_v54  ;;  %v1092_v11 = vor.u32 %v1091_v32, %v1088_v61  ;;  %v1105_v18 = vshll.u32 %v10465_v9, 16  ;;  %v1112_v30 = vrot.slane %v1110_v40, 4  ;;  %v1102_v1 = vor.u32 %v1101_v0, %v8994_v45  ;;  %v10468_v32 = vld [vmem:[#allocation13_spill] sm:$0xff] }
  0x9d   : > { %6965 = vmatprep.mubr.msk.bf16.mxu1 %vm426_vm4, %v8936_v12  ;;  %v1115_v62 = vrot.slane %v1113_v37, 5  ;;  %v9029_v52 = vrot.slane %v1119_v58, 5  ;;  %v1125_v26 = vrot.slane %v1123_v50, 4  ;;  %v1136_v53 = vrot.slane %v1134_v20, 4  ;;  %v10469_v50 = vld [vmem:[#allocation27_spill] sm:$0xff] }
  0x9e   : > { %v1139_v48 = vrot.slane %v1137_v23, 5  ;;  %v9031_v3 = vcombine.low %v2501_v29, %v2511_v33  ;;  %v9033_v63 = vrot.slane %v1143_v36, 5  ;;  %v1149_v35 = vrot.slane %v1147_v4, 4  ;;  %v10471_v23 = vld [vmem:[#allocation31_spill] sm:$0xff]  ;;  %v9054_v4 = vld [vmem:[%s10304_s2 + $0x4] sm:$0x3] }
  0x9f   : > { %v1158_v61 = vshrl.u32 %v10467_v19, 16  ;;  %v9036_v31 = vcombine.low %v1050_v46, %v1060_v8  ;;  %v1093_v28 = vrot.slane %v1092_v11, 4  ;;  %v1129_v22 = vshll.u32 %v10468_v32, 16  ;;  %v10472_v8 = vld [vmem:[#allocation34_spill] sm:$0xff]  ;;  %7939 = vmatprep.subr.msk.bf16.mxu1 %vm457_vm0, %v9054_v4 }
  0xa0   : > { %10466 = vst [vmem:[#allocation10_spill] sm:$0xff] %v9031_v3  ;;  %v1103_v40 = vrot.slane %v1102_v1, 4  ;;  %v1107_v0 = vrot.slane %v1105_v18, 5  ;;  %v1116_v37 = vor.u32 %v1115_v62, %v1112_v30  ;;  %v1126_v13 = vor.u32 %v1125_v26, %v9029_v52  ;;  %v9070_v32 = vld [vmem:[%s8207_s25 + $0x50] sm:$0x1] }
  0xa1   : > { %7098 = vmatmul.mubr.msk.bf16.gmra.mrb[12].mxu0 %vm426_vm4, %v8983_v57  ;;  %v1161_v58 = vshll.u32 %v10467_v19, 16  ;;  %v1171_v47 = vshrl.u32 %v10469_v50, 16  ;;  %v1140_v29 = vor.u32 %v1139_v48, %v1136_v53  ;;  %v1153_v20 = vshll.u32 %v10470_v7, 16 }
  0xa2   : > { %7101 = vmatprep.mubr.msk.bf16.mxu0 %vm426_vm4, %v8990_v5  ;;  %v1182_v33 = vshrl.u32 %v10471_v23, 16  ;;  %v1185_v46 = vshll.u32 %v10471_v23, 16  ;;  %v1150_v44 = vor.u32 %v1149_v35, %v9033_v63  ;;  %v1167_v36 = vshll.u32 %v10469_v50, 16 }
  0xa3   : > { %v1195_v11 = vshrl.u32 %v10472_v8, 16  ;;  %v1098_v9 = vsel %vm8625_vm7, %v1093_v28, %v8994_v45  ;;  %v1131_v18 = vrot.slane %v1129_v22, 5  ;;  %v1191_v30 = vshll.u32 %v10472_v8, 16 }
  0xa4   : > { %6966 = vmatmul.mubr.msk.bf16.gmra.mrb[12].mxu1 %vm426_vm4, %v8944_v16  ;;  %v1108_v1 = vsel %vm8625_vm7, %v1103_v40, %v1107_v0  ;;  %v1117_v62 = vrot.slane %v1116_v37, 4  ;;  %v1127_v26 = vrot.slane %v1126_v13, 4  ;;  %v1160_v53 = vrot.slane %v1158_v61, 4  ;;  %v10473_v0 = vld [vmem:[#allocation38_spill] sm:$0xff] }
  0xa5   : > { %6969 = vmatprep.mubr.msk.bf16.mxu1 %vm426_vm4, %v8983_v57  ;;  %v1141_v48 = vrot.slane %v1140_v29, 4  ;;  %v1155_v35 = vrot.slane %v1153_v20, 5  ;;  %v1163_v19 = vrot.slane %v1161_v58, 5  ;;  %v1173_v45 = vrot.slane %v1171_v47, 4  ;;  %v9085_v47 = vld [vmem:[%s8207_s25 + $0x5c] sm:$0x1] }
  0xa6   : > { %v1151_v28 = vrot.slane %v1150_v44, 4  ;;  %v9072_v22 = vrot.slane %v1167_v36, 5  ;;  %v1184_v50 = vrot.slane %v1182_v33, 4  ;;  %v1187_v7 = vrot.slane %v1185_v46, 5 }
  0xa7   : > { %v9074_v23 = vcombine.low %v1098_v9, %v1108_v1  ;;  %v9076_v40 = vrot.slane %v1191_v30, 5  ;;  %v1197_v61 = vrot.slane %v1195_v11, 4  ;;  %v1206_v37 = vshrl.u32 %v10473_v0, 16 }
  0xa8   : > { %v2843_v13 = vsel %vm457_vm0, %v8865_v49, 0  ;;  %v1122_v58 = vsel %vm8625_vm7, %v1117_v62, %v9029_v52  ;;  %v1132_v29 = vsel %vm8625_vm7, %v1127_v26, %v1131_v18  ;;  %v1146_v20 = vsel %vm8625_vm7, %v1141_v48, %v9033_v63  ;;  %v9096_v49 = vld [vmem:[%s10305_s3 + $0xa] sm:$0x3]  ;;  %v10474_v52 = vld [vmem:[#allocation51_spill] sm:$0xff]  ;;  %v10477_v48 = vld [vmem:[#allocation44_spill] sm:$0xff] }
  0xa9   : > { %7102 = vmatmul.mubr.msk.bf16.gmra.mrb[16].mxu0 %vm426_vm4, %v9031_v3  ;;  %v1164_v33 = vor.u32 %v1163_v19, %v1160_v53  ;;  %v1177_v46 = vshll.u32 %v9070_v32, 16  ;;  %v1209_v44 = vshll.u32 %v10473_v0, 16  ;;  %v1156_v36 = vsel %vm8625_vm7, %v1151_v28, %v1155_v35  ;;  %v10475_v63 = vld [vmem:[#allocation39_spill] sm:$0xff] }
  0xaa   : > { %7107 = vmatprep.mubr.msk.bf16.mxu0 %vm426_vm4, %v9036_v31  ;;  %v1174_v8 = vor.u32 %v1173_v45, %v9072_v22  ;;  %v1188_v11 = vor.u32 %v1187_v7, %v1184_v50  ;;  %v1219_v9 = vshrl.u32 %v10475_v63, 16  ;;  %v1198_v18 = vor.u32 %v1197_v61, %v9076_v40  ;;  %v10476_v62 = vld [vmem:[#allocation43_spill] sm:$0xff] }
  0xab   : > { %v1201_v30 = vshll.u32 %v9085_v47, 16  ;;  %v1215_v1 = vshll.u32 %v10475_v63, 16  ;;  %v1230_v26 = vshrl.u32 %v10476_v62, 16  ;;  %v1233_v53 = vshll.u32 %v10476_v62, 16 }
  0xac   : > { %6970 = vmatmul.mubr.msk.bf16.gmra.mrb[16].mxu1 %vm426_vm4, %v8990_v5  ;;  %v1243_v35 = vshrl.u32 %v10477_v48, 16  ;;  %v1239_v19 = vshll.u32 %v10477_v48, 16  ;;  %v9120_v45 = vcombine.low %v1122_v58, %v1132_v29  ;;  %v9122_v28 = vcombine.low %v1146_v20, %v1156_v36  ;;  %v9125_v48 = vld [vmem:[%s8207_s25 + $0x68] sm:$0x1] }
  0xad   : > { %6975 = vmatprep.mubr.msk.bf16.mxu1 %vm426_vm4, %v9008_v14  ;;  %v1165_v50 = vrot.slane %v1164_v33, 4  ;;  %v1179_v7 = vrot.slane %v1177_v46, 5  ;;  %v1175_v61 = vrot.slane %v1174_v8, 4  ;;  %v1189_v0 = vrot.slane %v1188_v11, 4  ;;  %v9131_v46 = vld [vmem:[%s8207_s25 + $0x74] sm:$0x1] }
  0xae   : > { %v1211_v63 = vrot.slane %v1209_v44, 5  ;;  %v1199_v62 = vrot.slane %v1198_v18, 4  ;;  %v1203_v3 = vrot.slane %v1201_v30, 5  ;;  %v1217_v5 = vrot.slane %v1215_v1, 5 }
  0xaf   : > { %v1221_v57 = vrot.slane %v1219_v9, 4  ;;  %v1232_v16 = vrot.slane %v1230_v26, 4  ;;  %v1235_v12 = vrot.slane %v1233_v53, 5  ;;  %v1241_v14 = vrot.slane %v1239_v19, 5 }
  0xb0   : > { %v1245_v58 = vrot.slane %v1243_v35, 4  ;;  %v2513_v29 = vshrl.u32 %v8738_v25, 16  ;;  %v2516_v20 = vshll.u32 %v8738_v25, 16  ;;  %v2526_v33 = vshrl.u32 %v8750_v55, 16 }
  0xb1   : > { %7108 = vmatmul.mubr.msk.bf16.vlgmr.msra.gmra.mrb[0].mxu0 %vm426_vm4, %v10474_v52  ;;  %v1170_v44 = vsel %vm8625_vm7, %v1165_v50, %v9072_v22  ;;  %v1180_v36 = vsel %vm8625_vm7, %v1175_v61, %v1179_v7  ;;  %v1225_v25 = vshll.u32 %v9125_v48, 16  ;;  %v1204_v11 = vsel %vm8625_vm7, %v1199_v62, %v1203_v3 }
  0xb2   : > { %7128 = vmatpush3.bf16.msra.mxu0 %v2843_v13  ;;  %7111 = vmatprep.mubr.msk.bf16.mxu0 %vm426_vm4, %v9074_v23  ;;  %v1208_v13 = vrot.slane %v1206_v37, 4  ;;  %v1869_v37 = vsel %vm457_vm0, %v9054_v4, 0  ;;  %v1194_v4 = vsel %vm8625_vm7, %v1189_v0, %v9076_v40  ;;  %v1222_v22 = vor.u32 %v1221_v57, %v1217_v5  ;;  %v8030_v40 = vld [vmem:[%s10305_s3 + $0x4] sm:$0x3]  ;;  %v9165_v0 = vld [vmem:[%s8207_s25 + $0x80] sm:$0x1] }
  0xb3   : > { %7947 = vmatprep.subr.msk.bf16.mxu0 %vm457_vm0, %v9096_v49  ;;  %v2522_v9 = vshll.u32 %v8750_v55, 16  ;;  %v1236_v18 = vor.u32 %v1235_v12, %v1232_v16  ;;  %v1246_v30 = vor.u32 %v1245_v58, %v1241_v14  ;;  %v9156_v1 = vcombine.low %v1170_v44, %v1180_v36 }
  0xb4   : > { %v1212_v8 = vor.u32 %v1211_v63, %v1208_v13  ;;  %6976 = vmatmul.mubr.msk.bf16.vlgmr.msra.gmra.mrb[0].mxu1 %vm426_vm4, %v9036_v31  ;;  %v1249_v31 = vshll.u32 %v9131_v46, 16  ;;  %v9162_v57 = vcombine.low %v1194_v4, %v1204_v11  ;;  %v1227_v26 = vrot.slane %v1225_v25, 5  ;;  %v8032_v11 = vld [vmem:[%s8363_s15 + $0xc] sm:$0xf] }
  0xb5   : > { %6979 = vmatprep.mubr.msk.bf16.mxu1 %vm426_vm4, %v10474_v52  ;;  %6996 = vmatpush3.bf16.msra.mxu1 %v1869_v37  ;;  %v2515_v53 = vrot.slane %v2513_v29, 4  ;;  %v1223_v35 = vrot.slane %v1222_v22, 4  ;;  %v2518_v12 = vrot.slane %v2516_v20, 5  ;;  %v2524_v16 = vrot.slane %v2522_v9, 5 }
  0xb6   : > { %7941 = vmatprep.subr.msk.bf16.mxu1 %vm457_vm0, %v8030_v40  ;;  %v1213_v3 = vrot.slane %v1212_v8, 4  ;;  %v2528_v19 = vrot.slane %v2526_v33, 4  ;;  %v1237_v50 = vrot.slane %v1236_v18, 4  ;;  %v1247_v7 = vrot.slane %v1246_v30, 4  ;;  %v8031_v33 = vld [vmem:[%s8363_s15 + $0x10] sm:$0xf] }
  0xb7   : > { %v1251_v61 = vrot.slane %v1249_v31, 5  ;;  %v1228_v63 = vsel %vm8625_vm7, %v1223_v35, %v1227_v26  ;;  %v2519_v62 = vor.u32 %v2518_v12, %v2515_v53  ;;  %v2532_v29 = vshll.u32 %v9165_v0, 16  ;;  %v8033_v31 = vld [vmem:[%s8363_s15 + $0x1c] sm:$0xf]  ;;  %v8034_v53 = vld [vmem:[%s8363_s15 + $0x28] sm:$0xf] }
  0xb8   : > { %v1218_v13 = vsel %vm8625_vm7, %v1213_v3, %v1217_v5  ;;  %v2529_v58 = vor.u32 %v2528_v19, %v2524_v16  ;;  %v1242_v5 = vsel %vm8625_vm7, %v1237_v50, %v1241_v14  ;;  %v1667_v37 = vrot.slane %v8031_v33, 5  ;;  %v8035_v50 = vld [vmem:[%s8363_s15 + $0x18] sm:$0xf] }
  0xb9   : > { %7112 = vmatmul.mubr.msk.bf16.gmra.mrb[4].mxu0 %vm426_vm4, %v9120_v45  ;;  %v1252_v20 = vsel %vm8625_vm7, %v1247_v7, %v1251_v61  ;;  %v9185_v44 = vcombine.low %v1218_v13, %v1228_v63  ;;  %v2520_v8 = vrot.slane %v2519_v62, 4  ;;  %v2534_v4 = vrot.slane %v2532_v29, 5  ;;  %v8036_v63 = vld [vmem:[%s8363_s15 + $0x24] sm:$0xf] }
  0xba   : > { %7115 = vmatprep.mubr.msk.bf16.mxu0 %vm426_vm4, %v9122_v28  ;;  %v9187_v36 = vcombine.low %v1242_v5, %v1252_v20  ;;  %v2530_v25 = vrot.slane %v2529_v58, 4  ;;  %v6275_v22 = vrot.slane %v8032_v11, 9  ;;  %v1669_v9 = vrot.slane %v1667_v37, 4 }
  0xbb   : > { %v1670_v18 = vrot.slane %v8678_v43, 5  ;;  %v2525_v14 = vsel %vm8625_vm7, %v2520_v8, %v2524_v16  ;;  %v1674_v40 = vrot.slane %v8033_v31, 5  ;;  %v1681_v35 = vrot.slane %v8034_v53, 5  ;;  %v8038_v8 = vld [vmem:[%s8363_s15 + $0x40] sm:$0xf] }
  0xbc   : > { %6980 = vmatmul.mubr.msk.bf16.gmra.mrb[4].mxu1 %vm426_vm4, %v9074_v23  ;;  %v2535_v30 = vsel %vm8625_vm7, %v2530_v25, %v2534_v4  ;;  %v1668_v3 = vsel %vm8236_vm3, %v6275_v22, %v1667_v37  ;;  %v1660_v12 = vrot.slane %v8616_v56, 5  ;;  %v6276_v7 = vrot.slane %v8035_v50, 9  ;;  %v9255_v50 = vld [vmem:[%s10304_s2 + $0xc] sm:$0x3] }
  0xbd   : > { %6983 = vmatprep.mubr.msk.bf16.mxu1 %vm426_vm4, %v9120_v45  ;;  %v1671_v26 = vsel %vm8236_vm3, %v1669_v9, %v1670_v18  ;;  %v9210_v16 = vcombine.low %v2525_v14, %v2535_v30  ;;  %v1676_v61 = vrot.slane %v1674_v40, 4  ;;  %v1677_v13 = vrot.slane %v8683_v60, 5  ;;  %v8039_v14 = vld [vmem:[%s8363_s15 + $0x30] sm:$0xf] }
  0xbe   : > { %v9212_v19 = vcombine.low %v1668_v3, %v1671_v26  ;;  %v6277_v62 = vrot.slane %v8036_v63, 9  ;;  %v1683_v58 = vrot.slane %v1681_v35, 4  ;;  %v1684_v29 = vrot.slane %v8715_v6, 5  ;;  %v8040_v3 = vld [vmem:[%s8363_s15 + $0x3c] sm:$0xf] }
  0xbf   : > { %v6274_v5 = vrot.slane %v8613_v39, 9  ;;  %v1662_v20 = vrot.slane %v1660_v12, 4  ;;  %v1663_v56 = vrot.slane %v8836_v51, 5  ;;  %v1675_v60 = vsel %vm8236_vm3, %v6276_v7, %v1674_v40  ;;  %v8037_v39 = vld [vmem:[%s8363_s15 + $0x34] sm:$0xf] }
  0xc0   : > { %v1678_v6 = vsel %vm8236_vm3, %v1676_v61, %v1677_v13  ;;  %v1688_v33 = vrot.slane %v8037_v39, 5  ;;  %v1682_v51 = vsel %vm8236_vm3, %v6277_v62, %v1681_v35  ;;  %v1685_v37 = vsel %vm8236_vm3, %v1683_v58, %v1684_v29  ;;  %v8042_v63 = vld [vmem:[%s8363_s15 + $0x58] sm:$0xf] }
  0xc1   : > { %7116 = vmatmul.mubr.msk.bf16.gmra.mrb[8].mxu0 %vm426_vm4, %v9156_v1  ;;  %v1695_v25 = vrot.slane %v8038_v8, 5  ;;  %v1661_v4 = vsel %vm8236_vm3, %v6274_v5, %v1660_v12  ;;  %v1664_v11 = vsel %vm8236_vm3, %v1662_v20, %v1663_v56  ;;  %v9242_v22 = vcombine.low %v1675_v60, %v1678_v6  ;;  %v8043_v5 = vld [vmem:[%s8363_s15 + $0x48] sm:$0xf]  ;;  %v8044_v6 = vld [vmem:[%s8363_s15 + $0x54] sm:$0xf] }
  0xc2   : > { %7119 = vmatprep.mubr.msk.bf16.mxu0 %vm426_vm4, %v9162_v57  ;;  %v2985_v9 = vsel %vm457_vm0, %v9096_v49, 0  ;;  %v9246_v18 = vcombine.low %v1682_v51, %v1685_v37  ;;  %v6278_v30 = vrot.slane %v8039_v14, 9  ;;  %v1690_v31 = vrot.slane %v1688_v33, 4  ;;  %v8041_v49 = vld [vmem:[%s8363_s15 + $0x4c] sm:$0xf] }
  0xc3   : > { %v1691_v40 = vrot.slane %v8729_v2, 5  ;;  %v6279_v26 = vrot.slane %v8040_v3, 9  ;;  %v1697_v53 = vrot.slane %v1695_v25, 4  ;;  %v1698_v35 = vrot.slane %v8760_v27, 5  ;;  %v8045_v8 = vld [vmem:[%s8363_s15 + $0x64] sm:$0xf] }
  0xc4   : > { %6984 = vmatmul.mubr.msk.bf16.gmra.mrb[8].mxu1 %vm426_vm4, %v9122_v28  ;;  %v6294_v12 = vcombine.low %v1661_v4, %v1664_v11  ;;  %v1689_v2 = vsel %vm8236_vm3, %v6278_v30, %v1688_v33  ;;  %v1702_v7 = vrot.slane %v8041_v49, 5  ;;  %v1709_v62 = vrot.slane %v8042_v63, 5  ;;  %v8046_v4 = vld [vmem:[%s8363_s15 + $0x70] sm:$0xf]  ;;  %v8049_v49 = vld [vmem:[%s8363_s15 + $0x7c] sm:$0xf] }
  0xc5   : > { %6987 = vmatprep.mubr.msk.bf16.mxu1 %vm426_vm4, %v9156_v1  ;;  %v1692_v27 = vsel %vm8236_vm3, %v1690_v31, %v1691_v40  ;;  %v1696_v61 = vsel %vm8236_vm3, %v6279_v26, %v1695_v25  ;;  %v1699_v13 = vsel %vm8236_vm3, %v1697_v53, %v1698_v35  ;;  %v6280_v20 = vrot.slane %v8043_v5, 9  ;;  %v8047_v31 = vld [vmem:[%s8363_s15 + $0x60] sm:$0xf]  ;;  %v8048_v53 = vld [vmem:[%s8363_s15 + $0x6c] sm:$0xf] }
  0xc6   : > { %v9276_v58 = vcombine.low %v1689_v2, %v1692_v27  ;;  %v9278_v29 = vcombine.low %v1696_v61, %v1699_v13  ;;  %v1704_v56 = vrot.slane %v1702_v7, 4  ;;  %v1705_v60 = vrot.slane %v8799_v42, 5 }
  0xc7   : > { %v6281_v39 = vrot.slane %v8044_v6, 9  ;;  %v1711_v33 = vrot.slane %v1709_v62, 4  ;;  %v1712_v51 = vrot.slane %v8822_v41, 5  ;;  %v1703_v37 = vsel %vm8236_vm3, %v6280_v20, %v1702_v7 }
  0xc8   : > { %v1706_v42 = vsel %vm8236_vm3, %v1704_v56, %v1705_v60  ;;  %v1716_v25 = vrot.slane %v8045_v8, 5  ;;  %v1723_v11 = vrot.slane %v8046_v4, 5  ;;  %v6282_v40 = vrot.slane %v8047_v31, 9  ;;  %v8054_v4 = vld [vmem:[%s8207_s25 + $0x64] sm:$0xf] }
  0xc9   : > { %7120 = vmatmul.mubr.msk.bf16.gmra.mrb[12].mxu0 %vm426_vm4, %v9185_v44  ;;  %v1710_v41 = vsel %vm8236_vm3, %v6281_v39, %v1709_v62  ;;  %v9303_v14 = vcombine.low %v1703_v37, %v1706_v42  ;;  %v1719_v26 = vrot.slane %v8877_v38, 5  ;;  %v6283_v35 = vrot.slane %v8048_v53, 9  ;;  %v8050_v62 = vld [vmem:[%s8363_s15 + $0x78] sm:$0xf]  ;;  %v8051_v39 = vld [vmem:[%s8207_s25 + $0x4c] sm:$0xf] }
  0xca   : > { %7123 = vmatprep.mubr.msk.bf16.mxu0 %vm426_vm4, %v9187_v36  ;;  %v1718_v3 = vrot.slane %v1716_v25, 4  ;;  %v1726_v2 = vrot.slane %v8904_v21, 5  ;;  %v1717_v27 = vsel %vm8236_vm3, %v6282_v40, %v1716_v25  ;;  %v2823_v7 = vrot.slane %v8049_v49, 5  ;;  %v8052_v37 = vld [vmem:[%s8207_s25 + $0x48] sm:$0xf] }
  0xcb   : > { %v1724_v21 = vsel %vm8236_vm3, %v6283_v35, %v1723_v11  ;;  %v6378_v5 = vrot.slane %v8050_v62, 9  ;;  %v2826_v56 = vrot.slane %v8947_v10, 5  ;;  %v6290_v42 = vrot.slane %v8052_v37, 9  ;;  %v287_v35 = vld [vmem:[%s10305_s3 + $0xc] sm:$0x3] }
  0xcc   : > { %6988 = vmatmul.mubr.msk.bf16.gmra.mrb[12].mxu1 %vm426_vm4, %v9162_v57  ;;  %v1720_v38 = vsel %vm8236_vm3, %v1718_v3, %v1719_v26  ;;  %v2825_v20 = vrot.slane %v2823_v7, 4  ;;  %v1785_v25 = vrot.slane %v9070_v32, 5  ;;  %v3129_v40 = vsel %vm457_vm0, %v9255_v50, 0  ;;  %v8055_v3 = vld [vmem:[%s8207_s25 + $0x54] sm:$0xf]  ;;  %v10484_v37 = vld [vmem:[#allocation21_spill] sm:$0xff] }
  0xcd   : > { %6991 = vmatprep.mubr.msk.bf16.mxu1 %vm426_vm4, %v9185_v44  ;;  %v9328_v13 = vcombine.low %v1717_v27, %v1720_v38  ;;  %v2824_v60 = vsel %vm8236_vm3, %v6378_v5, %v2823_v7  ;;  %v6291_v26 = vrot.slane %v8055_v3, 9  ;;  %v1792_v53 = vrot.slane %v9085_v47, 5  ;;  %v8056_v27 = vld [vmem:[%s8207_s25 + $0x60] sm:$0xf]  ;;  %v10482_v47 = vld [vmem:[#allocation19_spill] sm:$0xff] }
  0xce   : > { %v2827_v6 = vsel %vm8236_vm3, %v2825_v20, %v2826_v56  ;;  %v6292_v38 = vrot.slane %v8056_v27, 9  ;;  %v279_v3 = vld [vmem:[%s10304_s2 + $0xe] sm:$0x3]  ;;  %v10490_v27 = vld [vmem:[#allocation48_spill] sm:$0xff] }
  0xcf   : > { %v9346_v10 = vcombine.low %v2824_v60, %v2827_v6  ;;  %v8058_v60 = vld [vmem:[%s8207_s25 + $0x6c] sm:$0xf] }
  0xd0   : > { %v6293_v6 = vrot.slane %v8058_v60, 9  ;;  %v10496_v60 = vld [vmem:[#allocation28_spill] sm:$0xff] }
  0xd1   : > { %7124 = vmatmul.mubr.msk.bf16.gmra.mrb[16].mxu0 %vm426_vm4, %v9210_v16 }
  0xd2   : > { %7129 = vmatprep.mubr.msk.bf16.mxu0 %vm426_vm4, %v9212_v19 }
  0xd4   : > { %6992 = vmatmul.mubr.msk.bf16.gmra.mrb[16].mxu1 %vm426_vm4, %v9187_v36 }
  0xd5   : > { %6997 = vmatprep.mubr.msk.bf16.mxu1 %vm426_vm4, %v6294_v12  ;;  %v1725_v12 = vrot.slane %v1723_v11, 4  ;;  %v1796_v11 = vrot.slane %v8054_v4, 5 }
  0xd7   : > { %v1727_v61 = vsel %vm8236_vm3, %v1725_v12, %v1726_v2  ;;  %v10481_v12 = vld [vmem:[#allocation18_spill] sm:$0xff]  ;;  %v1798_v49 = vrot.slane %v1796_v11, 4  ;;  %v1797_v62 = vsel %vm8236_vm3, %v6292_v38, %v1796_v11  ;;  %v2834_v11 = vrot.slane %v9165_v0, 5  ;;  %v10491_v38 = vld [vmem:[#allocation49_spill] sm:$0xff] }
  0xd8   : > { %v9330_v63 = vcombine.low %v1724_v21, %v1727_v61  ;;  %v8057_v61 = vld [vmem:[%s8207_s25 + $0x70] sm:$0xf]  ;;  %v3273_v0 = vsel %vm457_vm0, %v287_v35, 0 }
  0xd9   : > { %7130 = vmatmul.mubr.msk.bf16.vlgmr.msra.gmra.mrb[0].mxu0 %vm426_vm4, %v9242_v22 }
  0xda   : > { %7150 = vmatpush3.bf16.msra.mxu0 %v2985_v9  ;;  %7133 = vmatprep.mubr.msk.bf16.mxu0 %vm426_vm4, %v9246_v18  ;;  %v10479_v9 = vld [vmem:[#allocation3_spill] sm:$0xff] }
  0xdb   : > { %7948 = vmatprep.subr.msk.bf16.mxu0 %vm457_vm0, %v9255_v50  ;;  %v1799_v50 = vrot.slane %v9125_v48, 5  ;;  %v1803_v48 = vrot.slane %v8057_v61, 5  ;;  %v3463_v61 = vsel %vm457_vm0, %v279_v3, 0 }
  0xdc   : > { %6998 = vmatmul.mubr.msk.bf16.vlgmr.msra.gmra.mrb[0].mxu1 %vm426_vm4, %v9212_v19  ;;  %v1713_v19 = vsel %vm8236_vm3, %v1711_v33, %v1712_v51  ;;  %v1782_v33 = vrot.slane %v8051_v39, 5  ;;  %v10480_v51 = vld [vmem:[#allocation11_spill] sm:$0xff] }
  0xdd   : > { %7001 = vmatprep.mubr.msk.bf16.mxu1 %vm426_vm4, %v9242_v22  ;;  %7466 = vmatpush3.bf16.msra.mxu1 %v10479_v9  ;;  %v9305_v30 = vcombine.low %v1710_v41, %v1713_v19  ;;  %v8053_v41 = vld [vmem:[%s8207_s25 + $0x58] sm:$0xf]  ;;  %v1800_v5 = vsel %vm8236_vm3, %v1798_v49, %v1799_v50  ;;  %v1805_v39 = vrot.slane %v1803_v48, 4  ;;  %v10492_v49 = vld [vmem:[#allocation50_spill] sm:$0xff]  ;;  %v9459_v50 = vld [vmem:[%s8363_s15 + $0x84] sm:$0xf] }
  0xde   : > { %v1784_v8 = vrot.slane %v1782_v33, 4  ;;  %v1789_v19 = vrot.slane %v8053_v41, 5  ;;  %v1783_v9 = vsel %vm8236_vm3, %v6290_v42, %v1782_v33  ;;  %v9396_v56 = vcombine.low %v1797_v62, %v1800_v5  ;;  %v8059_v41 = vld [vmem:[%s8207_s25 + $0x78] sm:$0xf]  ;;  %v10494_v62 = vld [vmem:[#allocation22_spill] sm:$0xff] }
  0xdf   : > { %v1806_v33 = vrot.slane %v9131_v46, 5  ;;  %v1804_v42 = vsel %vm8236_vm3, %v6293_v6, %v1803_v48  ;;  %v2831_v46 = vrot.slane %v8750_v55, 5  ;;  %v10485_v55 = vld [vmem:[#allocation24_spill] sm:$0xff]  ;;  %v288_v48 = vld [vmem:[%s10305_s3 + $0xe] sm:$0x3]  ;;  %v10495_v5 = vld [vmem:[#allocation23_spill] sm:$0xff] }
  0xe0   : > { %v1786_v31 = vsel %vm8236_vm3, %v1784_v8, %v1785_v25  ;;  %v1791_v32 = vrot.slane %v1789_v19, 4  ;;  %v1790_v7 = vsel %vm8236_vm3, %v6291_v26, %v1789_v19  ;;  %v6379_v19 = vrot.slane %v8059_v41, 9  ;;  %v10486_v26 = vld [vmem:[#allocation25_spill] sm:$0xff] }
  0xe1   : > { %7134 = vmatmul.mubr.msk.bf16.gmra.mrb[4].mxu0 %vm426_vm4, %v9276_v58  ;;  %v9374_v2 = vcombine.low %v1783_v9, %v1786_v31  ;;  %v1807_v8 = vsel %vm8236_vm3, %v1805_v39, %v1806_v33  ;;  %v2833_v4 = vrot.slane %v2831_v46, 4  ;;  %v10497_v6 = vld [vmem:[#allocation29_spill] sm:$0xff]  ;;  %v10499_v33 = vld [vmem:[#allocation42_spill] sm:$0xff] }
  0xe2   : > { %7137 = vmatprep.mubr.msk.bf16.mxu0 %vm426_vm4, %v9278_v29  ;;  %v1793_v21 = vsel %vm8236_vm3, %v1791_v32, %v1792_v53  ;;  %v9412_v25 = vcombine.low %v1804_v42, %v1807_v8  ;;  %v2832_v9 = vsel %vm8236_vm3, %v6379_v19, %v2831_v46  ;;  %v10487_v32 = vld [vmem:[#allocation37_spill] sm:$0xff]  ;;  %v10500_v42 = vld [vmem:[#allocation47_spill] sm:$0xff]  ;;  %v10501_v8 = vld [vmem:[#allocation52_spill] sm:$0xff] }
  0xe3   : > { %v9394_v20 = vcombine.low %v1790_v7, %v1793_v21  ;;  %v2835_v31 = vsel %vm8236_vm3, %v2833_v4, %v2834_v11  ;;  %v10488_v53 = vld [vmem:[#allocation45_spill] sm:$0xff]  ;;  %v10493_v21 = vld [vmem:[#allocation16_spill] sm:$0xff]  ;;  %v3605_v4 = vsel %vm457_vm0, %v288_v48, 0  ;;  %v280_v11 = vld [vmem:[%s10304_s2 + $0x10] sm:$0x3] }
  0xe4   : > { %7002 = vmatmul.mubr.msk.bf16.gmra.mrb[4].mxu1 %vm426_vm4, %v9246_v18  ;;  %v9462_v7 = vld [vmem:[%s8363_s15 + $0x88] sm:$0xf]  ;;  %v9491_v46 = vld [vmem:[%s8207_s25 + $0x84] sm:$0xf] }
  0xe5   : > { %7005 = vmatprep.mubr.msk.bf16.mxu1 %vm426_vm4, %v9276_v58  ;;  %v10498_v39 = vld [vmem:[#allocation41_spill] sm:$0xff] }
  0xe6   : > { %v9494_v41 = vld [vmem:[%s8207_s25 + $0x88] sm:$0xf] }
  0xe7   : > { %v6413_v19 = vcombine.low %v9491_v46, %v9494_v41 }
  0xe9   : > { %7138 = vmatmul.mubr.msk.bf16.gmra.mrb[8].mxu0 %vm426_vm4, %v9303_v14 }
  0xea   : > { %7141 = vmatprep.mubr.msk.bf16.mxu0 %vm426_vm4, %v9305_v30 }
  0xec   : > { %7006 = vmatmul.mubr.msk.bf16.gmra.mrb[8].mxu1 %vm426_vm4, %v9278_v29 }
  0xed   : > { %7009 = vmatprep.mubr.msk.bf16.mxu1 %vm426_vm4, %v9303_v14 }
  0xf1   : > { %7142 = vmatmul.mubr.msk.bf16.gmra.mrb[12].mxu0 %vm426_vm4, %v9328_v13 }
  0xf2   : > { %7145 = vmatprep.mubr.msk.bf16.mxu0 %vm426_vm4, %v9330_v63 }
  0xf4   : > { %7010 = vmatmul.mubr.msk.bf16.gmra.mrb[12].mxu1 %vm426_vm4, %v9305_v30 }
  0xf5   : > { %7013 = vmatprep.mubr.msk.bf16.mxu1 %vm426_vm4, %v9328_v13 }
  0xf9   : > { %7146 = vmatmul.mubr.msk.bf16.gmra.mrb[16].mxu0 %vm426_vm4, %v9346_v10 }
  0xfa   : > { %7151 = vmatprep.mubr.msk.bf16.mxu0 %vm426_vm4, %v10480_v51  ;;  %v10483_v51 = vld [vmem:[#allocation20_spill] sm:$0xff] }
  0xfc   : > { %7014 = vmatmul.mubr.msk.bf16.gmra.mrb[16].mxu1 %vm426_vm4, %v9330_v63 }
  0xfd   : > { %7031 = vmatprep.mubr.msk.bf16.mxu1 %vm426_vm4, %v9374_v2 }
 0x101   : > { %7152 = vmatmul.mubr.msk.bf16.vlgmr.msra.gmra.mrb[0].mxu0 %vm426_vm4, %v10481_v12 }
 0x102   : > { %7172 = vmatpush3.bf16.msra.mxu0 %v3129_v40  ;;  %7155 = vmatprep.mubr.msk.bf16.mxu0 %vm426_vm4, %v10482_v47  ;;  %v9431_v40 = vcombine.low %v2832_v9, %v2835_v31  ;;  %v3412_v9 = vshll.u32 %v9459_v50, 16  ;;  %v3422_v31 = vshrl.u32 %v9462_v7, 16 }
 0x103   : > { %7949 = vmatprep.subr.msk.bf16.mxu0 %vm457_vm0, %v287_v35  ;;  %v10489_v35 = vld [vmem:[#allocation46_spill] sm:$0xff] }
 0x104   : > { %7032 = vmatmul.mubr.msk.bf16.vlgmr.msra.gmra.mrb[12].mxu1 %vm426_vm4, %v9394_v20 }
 0x105   : > { %7035 = vmatprep.mubr.msk.bf16.mxu1 %vm426_vm4, %v9396_v56 }
 0x109   : > { %7156 = vmatmul.mubr.msk.bf16.gmra.mrb[4].mxu0 %vm426_vm4, %v10483_v51 }
 0x10a   : > { %7159 = vmatprep.mubr.msk.bf16.mxu0 %vm426_vm4, %v10484_v37 }
 0x10c   : > { %7036 = vmatmul.mubr.msk.bf16.gmra.mrb[16].mxu1 %vm426_vm4, %v9412_v25 }
 0x111   : > { %7160 = vmatmul.mubr.msk.bf16.gmra.mrb[8].mxu0 %vm426_vm4, %v9374_v2 }
 0x112   : > { %7163 = vmatprep.mubr.msk.bf16.mxu0 %vm426_vm4, %v9394_v20 }
 0x119   : > { %7164 = vmatmul.mubr.msk.bf16.gmra.mrb[12].mxu0 %vm426_vm4, %v9396_v56 }
 0x11a   : > { %7167 = vmatprep.mubr.msk.bf16.mxu0 %vm426_vm4, %v9412_v25 }
 0x121   : > { %7168 = vmatmul.mubr.msk.bf16.gmra.mrb[16].mxu0 %vm426_vm4, %v9431_v40 }
 0x122   : > { %7173 = vmatprep.mubr.msk.bf16.mxu0 %vm426_vm4, %v10485_v55  ;;  %v10502_v55 = vld [vmem:[#allocation53_spill] sm:$0xff] }
 0x129   : > { %7174 = vmatmul.mubr.msk.bf16.vlgmr.msra.gmra.mrb[0].mxu0 %vm426_vm4, %v10486_v26 }
 0x12a   : > { %7194 = vmatpush3.bf16.msra.mxu0 %v3273_v0  ;;  %7177 = vmatprep.mubr.msk.bf16.mxu0 %vm426_vm4, %v10487_v32  ;;  %v9519_v32 = vld [vmem:[%s8363_s15 + $0x8c] sm:$0x1] }
 0x12b   : > { %7950 = vmatprep.subr.msk.bf16.mxu0 %vm457_vm0, %v279_v3  ;;  %v3414_v3 = vrot.slane %v3412_v9, 5 }
 0x131   : > { %7178 = vmatmul.mubr.msk.bf16.gmra.mrb[4].mxu0 %vm426_vm4, %v8511_v17  ;;  %v6402_v17 = vcombine.low %v9459_v50, %v9462_v7 }
 0x132   : > { %7181 = vmatprep.mubr.msk.bf16.mxu0 %vm426_vm4, %v10488_v53  ;;  %v10503_v53 = vld [vmem:[#allocation54_spill] sm:$0xff] }
 0x139   : > { %7182 = vmatmul.mubr.msk.bf16.gmra.mrb[8].mxu0 %vm426_vm4, %v10489_v35 }
 0x13a   : > { %7185 = vmatprep.mubr.msk.bf16.mxu0 %vm426_vm4, %v10490_v27 }
 0x141   : > { %7186 = vmatmul.mubr.msk.bf16.gmra.mrb[12].mxu0 %vm426_vm4, %v10491_v38  ;;  %v3428_v38 = vshll.u32 %v9519_v32, 16 }
 0x142   : > { %7189 = vmatprep.mubr.msk.bf16.mxu0 %vm426_vm4, %v10492_v49 }
 0x149   : > { %7190 = vmatmul.mubr.msk.bf16.gmra.mrb[16].mxu0 %vm426_vm4, %v6402_v17 }
 0x14a   : > { %7195 = vmatprep.mubr.msk.bf16.mxu0 %vm426_vm4, %v10493_v21  ;;  %v3430_v21 = vrot.slane %v3428_v38, 5 }
 0x151   : > { %7196 = vmatmul.mubr.msk.bf16.vlgmr.msra.gmra.mrb[0].mxu0 %vm426_vm4, %v10494_v62 }
 0x152   : > { %7216 = vmatpush3.bf16.msra.mxu0 %v3463_v61  ;;  %7199 = vmatprep.mubr.msk.bf16.mxu0 %vm426_vm4, %v10495_v5  ;;  %v10505_v61 = vld [vmem:[#allocation8_spill] sm:$0xff] }
 0x153   : > { %7951 = vmatprep.subr.msk.bf16.mxu0 %vm457_vm0, %v288_v48  ;;  %v10506_v48 = vld [vmem:[#allocation10_spill] sm:$0xff] }
 0x159   : > { %7200 = vmatmul.mubr.msk.bf16.gmra.mrb[4].mxu0 %vm426_vm4, %v10496_v60 }
 0x15a   : > { %7203 = vmatprep.mubr.msk.bf16.mxu0 %vm426_vm4, %v10497_v6  ;;  %v3763_v6 = vsel %vm457_vm0, %v280_v11, 0 }
 0x161   : > { %7204 = vmatmul.mubr.msk.bf16.gmra.mrb[8].mxu0 %vm426_vm4, %v10498_v39  ;;  %v289_v39 = vld [vmem:[%s10305_s3 + $0x10] sm:$0x3] }
 0x162   : > { %7207 = vmatprep.mubr.msk.bf16.mxu0 %vm426_vm4, %v10499_v33  ;;  %v3436_v33 = vshll.u32 %v9491_v46, 16 }
 0x169   : > { %7208 = vmatmul.mubr.msk.bf16.gmra.mrb[12].mxu0 %vm426_vm4, %v10500_v42  ;;  %v3446_v42 = vshrl.u32 %v9494_v41, 16 }
 0x16a   : > { %7211 = vmatprep.mubr.msk.bf16.mxu0 %vm426_vm4, %v10501_v8 }
 0x171   : > { %7212 = vmatmul.mubr.msk.bf16.gmra.mrb[16].mxu0 %vm426_vm4, %v6413_v19  ;;  %v3438_v19 = vrot.slane %v3436_v33, 5 }
 0x172   : > { %7217 = vmatprep.mubr.msk.bf16.mxu0 %vm426_vm4, %v8774_v34  ;;  %v3409_v34 = vshrl.u32 %v9459_v50, 16 }
 0x174   : > { %v3411_v0 = vrot.slane %v3409_v34, 4 }
 0x176   : > { %v3415_v35 = vor.u32 %v3414_v3, %v3411_v0 }
 0x178   : > { %v3416_v49 = vrot.slane %v3415_v35, 4 }
 0x179   : > { %7218 = vmatmul.mubr.msk.bf16.vlgmr.msra.gmra.mrb[0].mxu0 %vm426_vm4, %v8815_v15  ;;  %v3418_v15 = vshll.u32 %v9462_v7, 16 }
 0x17a   : > { %7238 = vmatpush3.bf16.msra.mxu0 %v3605_v4  ;;  %7221 = vmatprep.mubr.msk.bf16.mxu0 %vm426_vm4, %v8893_v59  ;;  %v3424_v59 = vrot.slane %v3422_v31, 4 }
 0x17b   : > { %7952 = vmatprep.subr.msk.bf16.mxu0 %vm457_vm0, %v280_v11  ;;  %v3420_v26 = vrot.slane %v3418_v15, 5  ;;  %v9555_v11 = vld [vmem:[%s8207_s25 + $0x8c] sm:$0x1] }
 0x17c   : > { %v3452_v9 = vshll.u32 %v9555_v11, 16 }
 0x17d   : > { %v3425_v27 = vor.u32 %v3424_v59, %v3420_v26  ;;  %v3421_v62 = vsel %vm8625_vm7, %v3416_v49, %v3420_v26  ;;  %v3905_v49 = vsel %vm457_vm0, %v289_v39, 0 }
 0x17e   : > { %v3454_v0 = vrot.slane %v3452_v9, 5 }
 0x17f   : > { %v3426_v17 = vrot.slane %v3425_v27, 4 }
 0x181   : > { %7222 = vmatmul.mubr.msk.bf16.gmra.mrb[4].mxu0 %vm426_vm4, %v8899_v54  ;;  %v10504_v54 = vld [vmem:[#allocation55_spill] sm:$0xff]  ;;  %v3431_v5 = vsel %vm8625_vm7, %v3426_v17, %v3430_v21 }
 0x182   : > { %7225 = vmatprep.mubr.msk.bf16.mxu0 %vm426_vm4, %v10502_v55  ;;  %v6424_v60 = vcombine.low %v3421_v62, %v3431_v5 }
 0x189   : > { %7226 = vmatmul.mubr.msk.bf16.gmra.mrb[8].mxu0 %vm426_vm4, %v10503_v53 }
 0x18a   : > { %7229 = vmatprep.mubr.msk.bf16.mxu0 %vm426_vm4, %v10504_v54 }
 0x191   : > { %7230 = vmatmul.mubr.msk.bf16.gmra.mrb[12].mxu0 %vm426_vm4, %v10505_v61 }
 0x192   : > { %7233 = vmatprep.mubr.msk.bf16.mxu0 %vm426_vm4, %v10506_v48 }
 0x199   : > { %7234 = vmatmul.mubr.msk.bf16.gmra.mrb[16].mxu0 %vm426_vm4, %v6424_v60 }
 0x19a   : > { %7239 = vmatprep.mubr.msk.bf16.mxu0 %vm426_vm4, %v10474_v52  ;;  %v3433_v52 = vshrl.u32 %v9491_v46, 16 }
 0x19c   : > { %v3435_v8 = vrot.slane %v3433_v52, 4  ;;  %v4082_v52 = vld [vmem:[#allocation2 + $0x24] sm:$0x1] }
 0x19d   : > { %v4083_v33 = vsel %vm9666_vm10, 0, %v4082_v52 }
 0x19e   : > { %4084 = vst [vmem:[#allocation2 + $0x24] sm:$0x1] %v4083_v33 }
 0x1a1   : > { %7240 = vmatmul.mubr.msk.bf16.vlgmr.msra.gmra.mrb[0].mxu0 %vm426_vm4, %v9074_v23  ;;  %v3442_v23 = vshll.u32 %v9494_v41, 16 }
 0x1a2   : > { %7260 = vmatpush3.bf16.msra.mxu0 %v3763_v6  ;;  %7243 = vmatprep.mubr.msk.bf16.mxu0 %vm426_vm4, %v9120_v45  ;;  %v3448_v45 = vrot.slane %v3446_v42, 4  ;;  %v4105_v6 = vld [vmem:[#allocation2 + $0x8] sm:$0x1]  ;;  %v4079_v42 = vld [vmem:[#allocation2 + $0x18] sm:$0x1] }
 0x1a3   : > { %7953 = vmatprep.subr.msk.bf16.mxu0 %vm457_vm0, %v289_v39  ;;  %v3444_v4 = vrot.slane %v3442_v23, 5  ;;  %v4106_v39 = vsel %vm9674_vm12, 0, %v4105_v6  ;;  %v4080_v23 = vsel %vm9666_vm10, 0, %v4079_v42  ;;  %vm9730_vm0 = vmor %vm4071_vm9, %vm4185_vm14 }
 0x1a4   : > { %4107 = vst [vmem:[#allocation2 + $0x8] sm:$0x1] %v4106_v39  ;;  %4081 = vst [vmem:[#allocation2 + $0x18] sm:$0x1] %v4080_v23 }
 0x1a5   : > { %v3449_v34 = vor.u32 %v3448_v45, %v3444_v4 }
 0x1a7   : > { %v3450_v15 = vrot.slane %v3449_v34, 4  ;;  %v4085_v34 = vld [vmem:[#allocation2 + $0x30] sm:$0x1] }
 0x1a8   : > { %v4086_v9 = vsel %vm9666_vm10, 0, %v4085_v34 }
 0x1a9   : > { %7244 = vmatmul.mubr.msk.bf16.gmra.mrb[4].mxu0 %vm426_vm4, %v9122_v28  ;;  %v3439_v28 = vor.u32 %v3438_v19, %v3435_v8  ;;  %v4114_v8 = vld [vmem:[#allocation2 + $0x2c] sm:$0x1]  ;;  %4087 = vst [vmem:[#allocation2 + $0x30] sm:$0x1] %v4086_v9 }
 0x1aa   : > { %7247 = vmatprep.mubr.msk.bf16.mxu0 %vm426_vm4, %v9156_v1  ;;  %v4115_v19 = vsel %vm9674_vm12, 0, %v4114_v8 }
 0x1ab   : > { %v3440_v55 = vrot.slane %v3439_v28, 4  ;;  %4116 = vst [vmem:[#allocation2 + $0x2c] sm:$0x1] %v4115_v19 }
 0x1af   : > { %v9562_v31 = vpop.f32.mrb[0].mxu1 }
 0x1b0   : > { %v9564_v1 = vpop.f32.mrb[1].mxu1 }
 0x1b1   : > { %7248 = vmatmul.mubr.msk.bf16.gmra.mrb[8].mxu0 %vm426_vm4, %v9162_v57  ;;  %v9566_v3 = vpop.f32.mrb[2].mxu1  ;;  %v3445_v57 = vsel %vm8625_vm7, %v3440_v55, %v3444_v4  ;;  %v4111_v4 = vld [vmem:[#allocation2 + $0x20] sm:$0x1]  ;;  %v4120_v55 = vld [vmem:[#allocation2 + $0x44] sm:$0x1] }
 0x1b2   : > { %7251 = vmatprep.mubr.msk.bf16.mxu0 %vm426_vm4, %v9185_v44  ;;  %v9568_v26 = vpop.f32.mrb[3].mxu1  ;;  %v3455_v44 = vsel %vm8625_vm7, %v3450_v15, %v3454_v0  ;;  %v4112_v45 = vsel %vm9674_vm12, 0, %v4111_v4  ;;  %v4121_v15 = vsel %vm9674_vm12, 0, %v4120_v55  ;;  %v4117_v0 = vld [vmem:[#allocation2 + $0x38] sm:$0x1] }
 0x1b3   : > { %v6435_v53 = vcombine.low %v3445_v57, %v3455_v44  ;;  %4113 = vst [vmem:[#allocation2 + $0x20] sm:$0x1] %v4112_v45  ;;  %4122 = vst [vmem:[#allocation2 + $0x44] sm:$0x1] %v4121_v15  ;;  %v4118_v57 = vsel %vm9674_vm12, 0, %v4117_v0 }
 0x1b4   : > { %4119 = vst [vmem:[#allocation2 + $0x38] sm:$0x1] %v4118_v57  ;;  %v4094_v44 = vld [vmem:[#allocation2 + $0x54] sm:$0x1] }
 0x1b7   : > { %v9578_v59 = vpop.f32.mrb[4].mxu1 }
 0x1b8   : > { %v9580_v54 = vpop.f32.mrb[5].mxu1 }
 0x1b9   : > { %7252 = vmatmul.mubr.msk.bf16.gmra.mrb[12].mxu0 %vm426_vm4, %v9187_v36  ;;  %v9582_v35 = vpop.f32.mrb[6].mxu1 }
 0x1ba   : > { %7255 = vmatprep.mubr.msk.bf16.mxu0 %vm426_vm4, %v9210_v16  ;;  %v9584_v27 = vpop.f32.mrb[7].mxu1 }
 0x1bf   : > { %v9589_v36 = vpop.f32.mrb[8].mxu1 }
 0x1c0   : > { %v9591_v16 = vpop.f32.mrb[9].mxu1 }
 0x1c1   : > { %7256 = vmatmul.mubr.msk.bf16.gmra.mrb[16].mxu0 %vm426_vm4, %v6435_v53  ;;  %v9593_v38 = vpop.f32.mrb[10].mxu1  ;;  %v4095_v53 = vsel %vm9666_vm10, 0, %v4094_v44 }
 0x1c2   : > { %7261 = vmatprep.mubr.msk.bf16.mxu0 %vm426_vm4, %v9242_v22  ;;  %v9596_v17 = vpop.f32.mrb[11].mxu1  ;;  %v3743_v22 = vrot.slane %v9462_v7, 5  ;;  %4096 = vst [vmem:[#allocation2 + $0x54] sm:$0x1] %v4095_v53 }
 0x1c4   : > { %v3745_v61 = vrot.slane %v3743_v22, 4 }
 0x1c9   : > { %7262 = vmatmul.mubr.msk.bf16.vlgmr.msra.gmra.mrb[0].mxu0 %vm426_vm4, %v9246_v18 }
 0x1ca   : > { %7282 = vmatpush3.bf16.msra.mxu0 %v3905_v49  ;;  %7265 = vmatprep.mubr.msk.bf16.mxu0 %vm426_vm4, %v9276_v58  ;;  %v6446_v58 = vrot.slane %v9459_v50, 9  ;;  %v4091_v49 = vld [vmem:[#allocation2 + $0x48] sm:$0x1] }
 0x1d1   : > { %7266 = vmatmul.mubr.msk.bf16.gmra.mrb[4].mxu0 %vm426_vm4, %v9278_v29  ;;  %v3746_v29 = vrot.slane %v9519_v32, 5 }
 0x1d2   : > { %7269 = vmatprep.mubr.msk.bf16.mxu0 %vm426_vm4, %v9303_v14 }
 0x1d7   : > { %v9611_v21 = vpop.f32.mrb[12].mxu1 }
 0x1d8   : > { %v9613_v18 = vpop.f32.mrb[13].mxu1 }
 0x1d9   : > { %7270 = vmatmul.mubr.msk.bf16.gmra.mrb[8].mxu0 %vm426_vm4, %v9305_v30  ;;  %v9617_v48 = vpop.f32.mrb[14].mxu1  ;;  %v3744_v30 = vsel %vm8236_vm3, %v6446_v58, %v3743_v22  ;;  %v4092_v22 = vsel %vm9666_vm10, 0, %v4091_v49  ;;  %v4126_v58 = vld [vmem:[#allocation2 + $0x5c] sm:$0x1] }
 0x1da   : > { %7273 = vmatprep.mubr.msk.bf16.mxu0 %vm426_vm4, %v9328_v13  ;;  %v9619_v14 = vpop.f32.mrb[15].mxu1  ;;  %v3747_v13 = vsel %vm8236_vm3, %v3745_v61, %v3746_v29  ;;  %4093 = vst [vmem:[#allocation2 + $0x48] sm:$0x1] %v4092_v22  ;;  %v4127_v61 = vsel %vm9674_vm12, 0, %v4126_v58  ;;  %v4123_v29 = vld [vmem:[#allocation2 + $0x50] sm:$0x1] }
 0x1db   : > { %v6448_v7 = vcombine.low %v3744_v30, %v3747_v13  ;;  %4128 = vst [vmem:[#allocation2 + $0x5c] sm:$0x1] %v4127_v61  ;;  %v4124_v30 = vsel %vm9674_vm12, 0, %v4123_v29  ;;  %v4100_v13 = vld [vmem:[#allocation2 + $0x6c] sm:$0x1] }
 0x1dc   : > { %4125 = vst [vmem:[#allocation2 + $0x50] sm:$0x1] %v4124_v30 }
 0x1df   : > { %v9629_v50 = vpop.f32.mrb[16].mxu1 }
 0x1e0   : > { %v9631_v32 = vpop.f32.mrb[17].mxu1 }
 0x1e1   : > { %7274 = vmatmul.mubr.msk.bf16.gmra.mrb[12].mxu0 %vm426_vm4, %v9330_v63  ;;  %v9633_v62 = vpop.f32.mrb[18].mxu1  ;;  %v3751_v63 = vrot.slane %v9494_v41, 5  ;;  %v4108_v41 = vld [vmem:[#allocation2 + $0x14] sm:$0x1] }
 0x1e2   : > { %7277 = vmatprep.mubr.msk.bf16.mxu0 %vm426_vm4, %v9346_v10  ;;  %v9635_v5 = vpop.f32.mrb[19].mxu1  ;;  %v6447_v10 = vrot.slane %v9491_v46, 9  ;;  %v4109_v60 = vsel %vm9674_vm12, 0, %v4108_v41 }
 0x1e3   : > { %4110 = vst [vmem:[#allocation2 + $0x14] sm:$0x1] %v4109_v60 }
 0x1e9   : > { %7278 = vmatmul.mubr.msk.bf16.gmra.mrb[16].mxu0 %vm426_vm4, %v6448_v7  ;;  %v4101_v7 = vsel %vm9666_vm10, 0, %v4100_v13 }
 0x1ea   : > { %7283 = vmatprep.mubr.msk.bf16.mxu0 %vm426_vm4, %v10481_v12  ;;  %v3753_v12 = vrot.slane %v3751_v63, 4  ;;  %4102 = vst [vmem:[#allocation2 + $0x6c] sm:$0x1] %v4101_v7 }
 0x1f1   : > { %7284 = vmatmul.mubr.msk.bf16.vlgmr.msra.gmra.mrb[0].mxu0 %vm426_vm4, %v10482_v47  ;;  %v3754_v47 = vrot.slane %v9555_v11, 5  ;;  %v4088_v11 = vld [vmem:[#allocation2 + $0x3c] sm:$0x1] }
 0x1f2   : > { %7287 = vmatprep.mubr.msk.bf16.mxu0 %vm426_vm4, %v10483_v51  ;;  %v4089_v28 = vsel %vm9666_vm10, 0, %v4088_v11 }
 0x1f3   : > { %4090 = vst [vmem:[#allocation2 + $0x3c] sm:$0x1] %v4089_v28 }
 0x1f9   : > { %7288 = vmatmul.mubr.msk.bf16.gmra.mrb[4].mxu0 %vm426_vm4, %v10484_v37  ;;  %v4076_v37 = vld [vmem:[#allocation2 + $0xc] sm:$0x1] }
 0x1fa   : > { %7291 = vmatprep.mubr.msk.bf16.mxu0 %vm426_vm4, %v9374_v2  ;;  %v3752_v2 = vsel %vm8236_vm3, %v6447_v10, %v3751_v63  ;;  %v4097_v63 = vld [vmem:[#allocation2 + $0x60] sm:$0x1] }
 0x1fb   : > { %v4098_v10 = vsel %vm9666_vm10, 0, %v4097_v63 }
 0x1fc   : > { %4099 = vst [vmem:[#allocation2 + $0x60] sm:$0x1] %v4098_v10  ;;  %v4401_v10 = vld [vmem:[#allocation2 + $0x14] sm:$0x1] }
 0x201   : > { %7292 = vmatmul.mubr.msk.bf16.gmra.mrb[8].mxu0 %vm426_vm4, %v9394_v20  ;;  %v3755_v20 = vsel %vm8236_vm3, %v3753_v12, %v3754_v47  ;;  %v4132_v12 = vld [vmem:[#allocation2 + $0x74] sm:$0x1] }
 0x202   : > { %7295 = vmatprep.mubr.msk.bf16.mxu0 %vm426_vm4, %v9396_v56  ;;  %v6459_v56 = vcombine.low %v3752_v2, %v3755_v20  ;;  %v4133_v47 = vsel %vm9674_vm12, 0, %v4132_v12  ;;  %v4129_v2 = vld [vmem:[#allocation2 + $0x68] sm:$0x1] }
 0x203   : > { %4134 = vst [vmem:[#allocation2 + $0x74] sm:$0x1] %v4133_v47  ;;  %v4130_v20 = vsel %vm9674_vm12, 0, %v4129_v2 }
 0x204   : > { %4131 = vst [vmem:[#allocation2 + $0x68] sm:$0x1] %v4130_v20 }
 0x209   : > { %7296 = vmatmul.mubr.msk.bf16.gmra.mrb[12].mxu0 %vm426_vm4, %v9412_v25  ;;  %v4077_v25 = vsel %vm9666_vm10, 0, %v4076_v37 }
 0x20a   : > { %7299 = vmatprep.mubr.msk.bf16.mxu0 %vm426_vm4, %v9431_v40  ;;  %v4073_v40 = vld [vmem:[#allocation2] sm:$0x1]  ;;  %4078 = vst [vmem:[#allocation2 + $0xc] sm:$0x1] %v4077_v25 }
 0x20b   : > { %v4074_v46 = vsel %vm9666_vm10, 0, %v4073_v40 }
 0x20c   : > { %4075 = vst [vmem:[#allocation2] sm:$0x1] %v4074_v46 }
 0x211   : > { %7300 = vmatmul.mubr.msk.bf16.gmra.mrb[16].mxu0 %vm426_vm4, %v6459_v56  ;;  %v4397_v15 = vld [vmem:[#allocation2 + $0xc] sm:$0xf] }
 0x213   : > { %v4389_v61 = vld [vmem:[#allocation2] sm:$0xf] }
 0x2c4   : > { %v7285_v56 = vpop.f32.mrb[0].mxu0 }
 0x2c5   : > { %v7467_v37 = vadd.f32 %v7285_v56, %v9562_v31  ;;  %v3941_v25 = vpop.f32.mrb[1].mxu0  ;;  %v4394_v56 = vld [vmem:[#allocation2 + $0x8] sm:$0x1] }
 0x2c6   : > { %v7468_v40 = vadd.f32 %v3941_v25, %v9564_v1  ;;  %v7286_v46 = vpop.f32.mrb[2].mxu0 }
 0x2c7   : > { %v4042_v41 = vmax.f32 %v7467_v37, 0.0  ;;  %v7469_v60 = vadd.f32 %v7286_v46, %v9566_v3  ;;  %v3944_v6 = vpop.f32.mrb[3].mxu0 }
 0x2c8   : > { %v4040_v39 = vmax.f32 %v7468_v40, 0.0  ;;  %v7470_v52 = vadd.f32 %v3944_v6, %v9568_v26 }
 0x2c9   : > { %v6610_v33 = vpack.c.bf16 %v4042_v41, %v4042_v41  ;;  %v4043_v42 = vmax.f32 %v7469_v60, 0.0 }
 0x2ca   : > { %v6608_v23 = vpack.c.bf16 %v4040_v39, %v4040_v39  ;;  %v4041_v43 = vmax.f32 %v7470_v52, 0.0 }
 0x2cb   : > { %v4205_v8 = vshrl.u32 %v6610_v33, 16  ;;  %v6611_v19 = vpack.c.bf16 %v4043_v42, %v4043_v42  ;;  %v4208_v31 = vshll.u32 %v6610_v33, 16 }
 0x2cc   : > { %v4188_v4 = vshrl.u32 %v6608_v23, 16  ;;  %v4191_v45 = vshll.u32 %v6608_v23, 16  ;;  %v6609_v1 = vpack.c.bf16 %v4041_v43, %v4041_v43  ;;  %v7289_v11 = vpop.f32.mrb[4].mxu0 }
 0x2cd   : > { %v4207_v28 = vrot.slane %v4205_v8, 7  ;;  %v4213_v34 = vshrl.u32 %v6611_v19, 16  ;;  %v4216_v3 = vshll.u32 %v6611_v19, 16  ;;  %v7471_v9 = vadd.f32 %v7289_v11, %v9578_v59  ;;  %v3957_v55 = vpop.f32.mrb[5].mxu0 }
 0x2ce   : > { %v4190_v0 = vrot.slane %v4188_v4, 7  ;;  %v4196_v57 = vshrl.u32 %v6609_v1, 16  ;;  %v4199_v44 = vshll.u32 %v6609_v1, 16  ;;  %v7472_v53 = vadd.f32 %v3957_v55, %v9580_v54  ;;  %v7290_v49 = vpop.f32.mrb[6].mxu0  ;;  %v4411_v1 = vld [vmem:[#allocation2 + $0x24] sm:$0xf] }
 0x2cf   : > { %v4210_v22 = vor.u32 %v4208_v31, %v4207_v28  ;;  %v4211_v58 = vrot.slane %v4207_v28, 4  ;;  %v4215_v29 = vrot.slane %v4213_v34, 7  ;;  %v4046_v30 = vmax.f32 %v7471_v9, 0.0  ;;  %v3960_v59 = vpop.f32.mrb[7].mxu0 }
 0x2d0   : > { %v4193_v13 = vor.u32 %v4191_v45, %v4190_v0  ;;  %v4194_v7 = vrot.slane %v4190_v0, 4  ;;  %v4198_v12 = vrot.slane %v4196_v57, 7  ;;  %v4044_v47 = vmax.f32 %v7472_v53, 0.0 }
 0x2d1   : > { %v4398_v54 = vsel %vm9723_vm15, %v4210_v22, %v4397_v15  ;;  %v4218_v2 = vor.u32 %v4216_v3, %v4215_v29  ;;  %v4220_v20 = vrot.slane %v4215_v29, 4  ;;  %v6614_v37 = vpack.c.bf16 %v4046_v30, %v4046_v30  ;;  %v4404_v15 = vld [vmem:[#allocation2 + $0x18] sm:$0xf] }
 0x2d2   : > { %4399 = vst [vmem:[#allocation2 + $0xc] sm:$0xf] %v4398_v54  ;;  %v4390_v25 = vsel %vm9723_vm15, %v4193_v13, %v4389_v61  ;;  %v4201_v40 = vor.u32 %v4199_v44, %v4198_v12  ;;  %v4203_v46 = vrot.slane %v4198_v12, 4  ;;  %v6612_v41 = vpack.c.bf16 %v4044_v47, %v4044_v47  ;;  %v4415_v47 = vld [vmem:[#allocation2 + $0x2c] sm:$0x1] }
 0x2d3   : > { %4391 = vst [vmem:[#allocation2] sm:$0xf] %v4390_v25  ;;  %v4219_v60 = vsel %vm9730_vm0, %v4211_v58, %v4218_v2  ;;  %v4402_v6 = vsel %vm9666_vm10, %v4220_v20, %v4401_v10  ;;  %v4239_v39 = vshrl.u32 %v6614_v37, 16  ;;  %v4242_v42 = vshll.u32 %v6614_v37, 16  ;;  %v4408_v54 = vld [vmem:[#allocation2 + $0x20] sm:$0x1] }
 0x2d4   : > { %4400 = vst.msk [vmem:[#allocation2 + $0x10] sm:$0xf] %vm4387_vm13, %v4219_v60  ;;  %4403 = vst [vmem:[#allocation2 + $0x14] sm:$0x1] %v4402_v6  ;;  %v4202_v52 = vsel %vm9730_vm0, %v4194_v7, %v4201_v40  ;;  %v4395_v33 = vsel %vm9666_vm10, %v4203_v46, %v4394_v56  ;;  %v4222_v23 = vshrl.u32 %v6612_v41, 16  ;;  %v7293_v43 = vpop.f32.mrb[8].mxu0  ;;  %v7473_v19 = vadd.f32 %v7290_v49, %v9582_v35 }
 0x2d5   : > { %4393 = vst.msk [vmem:[#allocation2 + $0x4] sm:$0xf] %vm4387_vm13, %v4202_v52  ;;  %4396 = vst [vmem:[#allocation2 + $0x8] sm:$0x1] %v4395_v33  ;;  %v9748_v8 = vrot.slane %v4239_v39, 7  ;;  %v7474_v31 = vadd.f32 %v3960_v59, %v9584_v27  ;;  %v7475_v4 = vadd.f32 %v7293_v43, %v9589_v36  ;;  %v3973_v45 = vpop.f32.mrb[9].mxu0 }
 0x2d6   : > { %v4224_v11 = vrot.slane %v4222_v23, 7  ;;  %v4225_v28 = vshll.u32 %v6612_v41, 16  ;;  %v7476_v34 = vadd.f32 %v3973_v45, %v9591_v16  ;;  %v7294_v3 = vpop.f32.mrb[10].mxu0  ;;  %v4047_v0 = vmax.f32 %v7473_v19, 0.0 }
 0x2d7   : > { %v4244_v9 = vor.u32 %v4242_v42, %v9748_v8  ;;  %v4245_v55 = vrot.slane %v9748_v8, 4  ;;  %v4045_v57 = vmax.f32 %v7474_v31, 0.0  ;;  %v3976_v44 = vpop.f32.mrb[11].mxu0  ;;  %v4050_v27 = vmax.f32 %v7475_v4, 0.0  ;;  %v4418_v31 = vld [vmem:[#allocation2 + $0x30] sm:$0xf] }
 0x2d8   : > { %v4227_v35 = vor.u32 %v4225_v28, %v4224_v11  ;;  %v4228_v53 = vrot.slane %v4224_v11, 4  ;;  %v4048_v49 = vmax.f32 %v7476_v34, 0.0  ;;  %v6615_v22 = vpack.c.bf16 %v4047_v0, %v4047_v0 }
 0x2d9   : > { %v4412_v36 = vsel %vm9723_vm15, %v4244_v9, %v4411_v1  ;;  %v6613_v58 = vpack.c.bf16 %v4045_v57, %v4045_v57  ;;  %v7477_v16 = vadd.f32 %v7294_v3, %v9593_v38  ;;  %v6618_v29 = vpack.c.bf16 %v4050_v27, %v4050_v27 }
 0x2da   : > { %4413 = vst [vmem:[#allocation2 + $0x24] sm:$0xf] %v4412_v36  ;;  %v4405_v61 = vsel %vm9723_vm15, %v4227_v35, %v4404_v15  ;;  %v6616_v30 = vpack.c.bf16 %v4048_v49, %v4048_v49  ;;  %v7478_v59 = vadd.f32 %v3976_v44, %v9596_v17  ;;  %v4247_v13 = vshrl.u32 %v6615_v22, 16  ;;  %v4425_v17 = vld [vmem:[#allocation2 + $0x3c] sm:$0xf] }
 0x2db   : > { %4406 = vst [vmem:[#allocation2 + $0x18] sm:$0xf] %v4405_v61  ;;  %v4250_v7 = vshll.u32 %v6615_v22, 16  ;;  %v4230_v10 = vshrl.u32 %v6613_v58, 16  ;;  %v4233_v12 = vshll.u32 %v6613_v58, 16  ;;  %v4273_v2 = vshrl.u32 %v6618_v29, 16 }
 0x2dc   : > { %v4276_v20 = vshll.u32 %v6618_v29, 16  ;;  %v4256_v56 = vshrl.u32 %v6616_v30, 16  ;;  %v4259_v37 = vshll.u32 %v6616_v30, 16  ;;  %v7297_v38 = vpop.f32.mrb[12].mxu0  ;;  %v4249_v25 = vrot.slane %v4247_v13, 7 }
 0x2dd   : > { %v4232_v40 = vrot.slane %v4230_v10, 7  ;;  %v4051_v46 = vmax.f32 %v7477_v16, 0.0  ;;  %v4049_v41 = vmax.f32 %v7478_v59, 0.0  ;;  %v3989_v60 = vpop.f32.mrb[13].mxu0  ;;  %v9762_v6 = vrot.slane %v4273_v2, 7 }
 0x2de   : > { %v9764_v39 = vrot.slane %v4256_v56, 7  ;;  %v7479_v52 = vadd.f32 %v7297_v38, %v9611_v21  ;;  %v7480_v33 = vadd.f32 %v3989_v60, %v9613_v18  ;;  %v7298_v42 = vpop.f32.mrb[14].mxu0  ;;  %v4252_v23 = vor.u32 %v4250_v7, %v4249_v25  ;;  %v4429_v16 = vld [vmem:[#allocation2 + $0x44] sm:$0x1] }
 0x2df   : > { %v4254_v43 = vrot.slane %v4249_v25, 4  ;;  %v4235_v8 = vor.u32 %v4233_v12, %v4232_v40  ;;  %v4237_v19 = vrot.slane %v4232_v40, 4  ;;  %v3992_v4 = vpop.f32.mrb[15].mxu0  ;;  %v4278_v45 = vor.u32 %v4276_v20, %v9762_v6  ;;  %v4422_v12 = vld [vmem:[#allocation2 + $0x38] sm:$0x1] }
 0x2e0   : > { %v4279_v1 = vrot.slane %v9762_v6, 4  ;;  %v4261_v11 = vor.u32 %v4259_v37, %v9764_v39  ;;  %v4262_v28 = vrot.slane %v9764_v39, 4  ;;  %v4253_v21 = vsel %vm9730_vm0, %v4245_v55, %v4252_v23 }
 0x2e1   : > { %v4416_v18 = vsel %vm9666_vm10, %v4254_v43, %v4415_v47  ;;  %v4236_v34 = vsel %vm9730_vm0, %v4228_v53, %v4235_v8  ;;  %v4409_v3 = vsel %vm9666_vm10, %v4237_v19, %v4408_v54  ;;  %4414 = vst.msk [vmem:[#allocation2 + $0x28] sm:$0xf] %vm4387_vm13, %v4253_v21  ;;  %v4426_v9 = vsel %vm9723_vm15, %v4278_v45, %v4425_v17 }
 0x2e2   : > { %4417 = vst [vmem:[#allocation2 + $0x2c] sm:$0x1] %v4416_v18  ;;  %4407 = vst.msk [vmem:[#allocation2 + $0x1c] sm:$0xf] %vm4387_vm13, %v4236_v34  ;;  %v4419_v55 = vsel %vm9723_vm15, %v4261_v11, %v4418_v31  ;;  %v6619_v15 = vpack.c.bf16 %v4051_v46, %v4051_v46  ;;  %v6617_v0 = vpack.c.bf16 %v4049_v41, %v4049_v41  ;;  %v4054_v57 = vmax.f32 %v7479_v52, 0.0 }
 0x2e3   : > { %4410 = vst [vmem:[#allocation2 + $0x20] sm:$0x1] %v4409_v3  ;;  %4427 = vst [vmem:[#allocation2 + $0x3c] sm:$0xf] %v4426_v9  ;;  %v4052_v44 = vmax.f32 %v7480_v33, 0.0  ;;  %v7481_v35 = vadd.f32 %v7298_v42, %v9617_v48  ;;  %v7482_v53 = vadd.f32 %v3992_v4, %v9619_v14 }
 0x2e4   : > { %4420 = vst [vmem:[#allocation2 + $0x30] sm:$0xf] %v4419_v55  ;;  %v4281_v27 = vshrl.u32 %v6619_v15, 16  ;;  %v4284_v49 = vshll.u32 %v6619_v15, 16  ;;  %v4264_v36 = vshrl.u32 %v6617_v0, 16  ;;  %v4267_v22 = vshll.u32 %v6617_v0, 16 }
 0x2e5   : > { %v7301_v58 = vpop.f32.mrb[16].mxu0  ;;  %v6622_v61 = vpack.c.bf16 %v4054_v57, %v4054_v57  ;;  %v6620_v29 = vpack.c.bf16 %v4052_v44, %v4052_v44  ;;  %v4055_v30 = vmax.f32 %v7481_v35, 0.0  ;;  %v4053_v59 = vmax.f32 %v7482_v53, 0.0  ;;  %v4439_v33 = vld [vmem:[#allocation2 + $0x54] sm:$0xf] }
 0x2e6   : > { %v4005_v13 = vpop.f32.mrb[17].mxu0  ;;  %v4283_v7 = vrot.slane %v4281_v27, 7  ;;  %v4266_v10 = vrot.slane %v4264_v36, 7  ;;  %v7483_v47 = vadd.f32 %v7301_v58, %v9629_v50  ;;  %v4432_v42 = vld [vmem:[#allocation2 + $0x48] sm:$0xf] }
 0x2e7   : > { %v7484_v48 = vadd.f32 %v4005_v13, %v9631_v32  ;;  %v7302_v54 = vpop.f32.mrb[18].mxu0  ;;  %v4307_v14 = vshrl.u32 %v6622_v61, 16  ;;  %v4310_v2 = vshll.u32 %v6622_v61, 16  ;;  %v4290_v20 = vshrl.u32 %v6620_v29, 16  ;;  %v4443_v15 = vld [vmem:[#allocation2 + $0x5c] sm:$0x1] }
 0x2e8   : > { %v4293_v56 = vshll.u32 %v6620_v29, 16  ;;  %v4008_v37 = vpop.f32.mrb[19].mxu0  ;;  %v4286_v38 = vor.u32 %v4284_v49, %v4283_v7  ;;  %v4288_v25 = vrot.slane %v4283_v7, 4  ;;  %v4269_v40 = vor.u32 %v4267_v22, %v4266_v10  ;;  %v4436_v0 = vld [vmem:[#allocation2 + $0x50] sm:$0x1] }
 0x2e9   : > { %v4271_v46 = vrot.slane %v4266_v10, 4  ;;  %v4309_v41 = vrot.slane %v4307_v14, 7  ;;  %v4292_v60 = vrot.slane %v4290_v20, 7  ;;  %v6623_v6 = vpack.c.bf16 %v4055_v30, %v4055_v30  ;;  %v4453_v10 = vld [vmem:[#allocation2 + $0x6c] sm:$0xf] }
 0x2ea   : > { %v6621_v17 = vpack.c.bf16 %v4053_v59, %v4053_v59  ;;  %v4287_v39 = vsel %vm9730_vm0, %v4279_v1, %v4286_v38  ;;  %v4430_v50 = vsel %vm9666_vm10, %v4288_v25, %v4429_v16  ;;  %v4270_v32 = vsel %vm9730_vm0, %v4262_v28, %v4269_v40 }
 0x2eb   : > { %v4423_v52 = vsel %vm9666_vm10, %v4271_v46, %v4422_v12  ;;  %4428 = vst.msk [vmem:[#allocation2 + $0x40] sm:$0xf] %vm4387_vm13, %v4287_v39  ;;  %4431 = vst [vmem:[#allocation2 + $0x44] sm:$0x1] %v4430_v50  ;;  %v4312_v23 = vor.u32 %v4310_v2, %v4309_v41  ;;  %v4295_v43 = vor.u32 %v4293_v56, %v4292_v60  ;;  %v4315_v8 = vshrl.u32 %v6623_v6, 16 }
 0x2ec   : > { %4421 = vst.msk [vmem:[#allocation2 + $0x34] sm:$0xf] %vm4387_vm13, %v4270_v32  ;;  %4424 = vst [vmem:[#allocation2 + $0x38] sm:$0x1] %v4423_v52  ;;  %v4318_v19 = vshll.u32 %v6623_v6, 16  ;;  %v4298_v31 = vshrl.u32 %v6621_v17, 16  ;;  %v7485_v34 = vadd.f32 %v7302_v54, %v9633_v62  ;;  %v7486_v3 = vadd.f32 %v4008_v37, %v9635_v5 }
 0x2ed   : > { %v4301_v4 = vshll.u32 %v6621_v17, 16  ;;  %v4440_v45 = vsel %vm9723_vm15, %v4312_v23, %v4439_v33  ;;  %v4433_v1 = vsel %vm9723_vm15, %v4295_v43, %v4432_v42  ;;  %v4058_v11 = vmax.f32 %v7483_v47, 0.0  ;;  %v4446_v12 = vld [vmem:[#allocation2 + $0x60] sm:$0xf]  ;;  %v4457_v6 = vld [vmem:[#allocation2 + $0x74] sm:$0x1] }
 0x2ee   : > { %v4056_v28 = vmax.f32 %v7484_v48, 0.0  ;;  %4441 = vst [vmem:[#allocation2 + $0x54] sm:$0xf] %v4440_v45  ;;  %4434 = vst [vmem:[#allocation2 + $0x48] sm:$0xf] %v4433_v1  ;;  %v4317_v21 = vrot.slane %v4315_v8, 7 }
 0x2ef   : > { %v4300_v18 = vrot.slane %v4298_v31, 7  ;;  %v4313_v9 = vrot.slane %v4309_v41, 4  ;;  %v4296_v55 = vrot.slane %v4292_v60, 4  ;;  %v6626_v57 = vpack.c.bf16 %v4058_v11, %v4058_v11  ;;  %v4450_v17 = vld [vmem:[#allocation2 + $0x68] sm:$0x1] }
 0x2f0   : > { %v6624_v44 = vpack.c.bf16 %v4056_v28, %v4056_v28  ;;  %v4320_v35 = vor.u32 %v4318_v19, %v4317_v21  ;;  %v4322_v53 = vrot.slane %v4317_v21, 4  ;;  %v4059_v13 = vmax.f32 %v7485_v34, 0.0 }
 0x2f1   : > { %v4303_v27 = vor.u32 %v4301_v4, %v4300_v18  ;;  %v4305_v49 = vrot.slane %v4300_v18, 4  ;;  %v4341_v36 = vshrl.u32 %v6626_v57, 16  ;;  %v4344_v22 = vshll.u32 %v6626_v57, 16 }
 0x2f2   : > { %v4324_v58 = vshrl.u32 %v6624_v44, 16  ;;  %v4327_v16 = vshll.u32 %v6624_v44, 16  ;;  %v4321_v61 = vsel %vm9730_vm0, %v4313_v9, %v4320_v35  ;;  %v4444_v62 = vsel %vm9666_vm10, %v4322_v53, %v4443_v15 }
 0x2f3   : > { %v4304_v5 = vsel %vm9730_vm0, %v4296_v55, %v4303_v27  ;;  %v4437_v29 = vsel %vm9666_vm10, %v4305_v49, %v4436_v0  ;;  %4442 = vst.msk [vmem:[#allocation2 + $0x58] sm:$0xf] %vm4387_vm13, %v4321_v61  ;;  %4445 = vst [vmem:[#allocation2 + $0x5c] sm:$0x1] %v4444_v62  ;;  %v4343_v30 = vrot.slane %v4341_v36, 7  ;;  %v4057_v7 = vmax.f32 %v7486_v3, 0.0 }
 0x2f4   : > { %4435 = vst.msk [vmem:[#allocation2 + $0x4c] sm:$0xf] %vm4387_vm13, %v4304_v5  ;;  %4438 = vst [vmem:[#allocation2 + $0x50] sm:$0x1] %v4437_v29  ;;  %v4326_v59 = vrot.slane %v4324_v58, 7  ;;  %v6627_v54 = vpack.c.bf16 %v4059_v13, %v4059_v13  ;;  %v8110_v43 = vmov (!%p6490_p7), 0  }
 0x2f5   : > { %v4346_v47 = vor.u32 %v4344_v22, %v4343_v30  ;;  %v6625_v14 = vpack.c.bf16 %v4057_v7, %v4057_v7  ;;  %v4347_v41 = vrot.slane %v4343_v30, 4  ;;  %4464 = vst.msk [vmem:[#allocation2] sm:$0xf] (!%p6490_p7), %vm4387_vm13, %v8110_v43  ;;  %4465 = vst.msk [vmem:[#allocation2 + $0x4] sm:$0xf] (!%p6490_p7), %vm4387_vm13, %v8110_v43 }
 0x2f6   : > { %v4329_v48 = vor.u32 %v4327_v16, %v4326_v59  ;;  %v4349_v56 = vshrl.u32 %v6627_v54, 16  ;;  %v4352_v25 = vshll.u32 %v6627_v54, 16  ;;  %v4330_v60 = vrot.slane %v4326_v59, 4  ;;  %4467 = vst.msk [vmem:[#allocation2 + $0x8] sm:$0x1] (!%p6490_p7), %vm4070_vm8, %v8110_v43 }
 0x2f7   : > { %v4454_v2 = vsel %vm9723_vm15, %v4346_v47, %v4453_v10  ;;  %v4332_v37 = vshrl.u32 %v6625_v14, 16  ;;  %v4335_v46 = vshll.u32 %v6625_v14, 16 }
 0x2f8   : > { %v4447_v20 = vsel %vm9723_vm15, %v4329_v48, %v4446_v12  ;;  %4455 = vst [vmem:[#allocation2 + $0x6c] sm:$0xf] %v4454_v2  ;;  %v4351_v38 = vrot.slane %v4349_v56, 7  ;;  %4463 = sbr.rel (%p6490_p7) target bundleno = 767 (0x2ff), region = 44 }
 0x2f9   : > { %4448 = vst [vmem:[#allocation2 + $0x60] sm:$0xf] %v4447_v20  ;;  %v4334_v40 = vrot.slane %v4332_v37, 7 }
 0x2fa   : > { %v4354_v39 = vor.u32 %v4352_v25, %v4351_v38  ;;  %v4356_v50 = vrot.slane %v4351_v38, 4 }
 0x2fb   : > { %v4337_v32 = vor.u32 %v4335_v46, %v4334_v40  ;;  %v4339_v52 = vrot.slane %v4334_v40, 4 }
 0x2fc   : > { %v4355_v26 = vsel %vm9730_vm0, %v4347_v41, %v4354_v39  ;;  %v4458_v33 = vsel %vm9666_vm10, %v4356_v50, %v4457_v6 }
 0x2fd   : > { %v4338_v42 = vsel %vm9730_vm0, %v4330_v60, %v4337_v32  ;;  %v4451_v23 = vsel %vm9666_vm10, %v4339_v52, %v4450_v17  ;;  %4456 = vst.msk [vmem:[#allocation2 + $0x70] sm:$0xf] %vm4387_vm13, %v4355_v26  ;;  %4459 = vst [vmem:[#allocation2 + $0x74] sm:$0x1] %v4458_v33 }
 0x2fe   : > { %4449 = vst.msk [vmem:[#allocation2 + $0x64] sm:$0xf] %vm4387_vm13, %v4338_v42  ;;  %4452 = vst [vmem:[#allocation2 + $0x68] sm:$0x1] %v4451_v23 }
 0x2ff PF: > { %p6491_p8 = scmp.ne.s32.totalorder %s8092_s18, 1 }
 0x300   : > { %v8111_v51 = vmov (!%p6491_p8), 0  }
 0x301   : > { %4471 = sbr.rel (%p6491_p8) target bundleno = 776 (0x308), region = 48  ;;  %4473 = vst.msk [vmem:[#allocation2 + $0x6c] sm:$0xf] (!%p6491_p8), %vm4387_vm13, %v8111_v51  ;;  %4474 = vst.msk [vmem:[#allocation2 + $0x70] sm:$0xf] (!%p6491_p8), %vm4387_vm13, %v8111_v51 }
 0x302   : > { %4476 = vst.msk [vmem:[#allocation2 + $0x74] sm:$0x1] (!%p6491_p8), %vm4070_vm8, %v8111_v51 }
 0x308 PF: > { %vm4748_vm1 = vcmask 1043456   ;;  %v9838_v63 = vld [vmem:[#allocation2] sm:$0xf]  ;;  %v9840_v8 = vld [vmem:[#allocation2 + $0x4] sm:$0xf]  ;;  %v10515_v19 = vld [vmem:[#allocation5_spill] sm:$0xff] }
 0x309   : > { %7954 = vmatprep.subr.msk.bf16.mxu1 %vm4748_vm1, %v10515_v19  ;;  %v4750_v31 = vsel %vm4748_vm1, %v10515_v19, 0  ;;  %v9846_v4 = vld [vmem:[#allocation2 + $0x8] sm:$0x1]  ;;  %v4508_v45 = vshrl.u32 %v9838_v63, 16  ;;  %v4511_v1 = vshll.u32 %v9838_v63, 16  ;;  %v4517_v11 = vshll.u32 %v9840_v8, 16 }
 0x30a   : > { %7304 = vmatpush3.bf16.msra.mxu1 %v4750_v31  ;;  %v4521_v28 = vshrl.u32 %v9840_v8, 16  ;;  %v4527_v21 = vshll.u32 %v9846_v4, 16  ;;  %vm4723_vm2 = vcmask 64512   ;;  %v9853_v18 = vld [vmem:[#allocation2 + $0xc] sm:$0xf]  ;;  %v10516_v34 = vld [vmem:[#allocation4_spill] sm:$0xff] }
 0x30b   : > { %v9857_v3 = vsel %vm4748_vm1, %v10516_v34, 0  ;;  %v4510_v9 = vrot.slane %v4508_v45, 4  ;;  %v4513_v55 = vrot.slane %v4511_v1, 5  ;;  %v4519_v15 = vrot.slane %v4517_v11, 5  ;;  %7955 = vmatprep.subr.msk.bf16.mxu1 %vm4748_vm1, %v10516_v34  ;;  %v9861_v0 = vld [vmem:[#allocation2 + $0x10] sm:$0xf] }
 0x30c   : > { %v4532_v57 = vshrl.u32 %v9853_v18, 16  ;;  %v4523_v44 = vrot.slane %v4521_v28, 4  ;;  %v4529_v35 = vrot.slane %v4527_v21, 5  ;;  %v4482_v53 = vld [vmem:[#allocation2 + $0x14] sm:$0x1]  ;;  %v4535_v27 = vshll.u32 %v9853_v18, 16 }
 0x30d   : > { %v4541_v49 = vshll.u32 %v9861_v0, 16  ;;  %v4514_v36 = vor.u32 %v4513_v55, %v4510_v9  ;;  %v4545_v58 = vshrl.u32 %v9861_v0, 16  ;;  %v4551_v16 = vshll.u32 %v4482_v53, 16  ;;  %v9867_v61 = vld [vmem:[#allocation2 + $0x18] sm:$0xf] }
 0x30e   : > { %v4534_v22 = vrot.slane %v4532_v57, 4  ;;  %v4524_v62 = vor.u32 %v4523_v44, %v4519_v15  ;;  %v4537_v5 = vrot.slane %v4535_v27, 5  ;;  %v6525_v30 = vrot.slane %v9853_v18, 9  ;;  %v9871_v54 = vld [vmem:[#allocation2 + $0x1c] sm:$0xf] }
 0x30f   : > { %v4543_v29 = vrot.slane %v4541_v49, 5  ;;  %v4515_v59 = vrot.slane %v4514_v36, 4  ;;  %v4547_v13 = vrot.slane %v4545_v58, 4  ;;  %v4553_v7 = vrot.slane %v4551_v16, 5  ;;  %v9878_v25 = vld [vmem:[#allocation2 + $0x20] sm:$0x1] }
 0x310   : > { %v5030_v10 = vrot.slane %v9861_v0, 5  ;;  %v4525_v12 = vrot.slane %v4524_v62, 4  ;;  %v4538_v47 = vor.u32 %v4537_v5, %v4534_v22  ;;  %v5033_v48 = vrot.slane %v4482_v53, 5  ;;  %v9883_v6 = vld [vmem:[#allocation2 + $0x24] sm:$0xf] }
 0x311   : > { %v4556_v14 = vshrl.u32 %v9867_v61, 16  ;;  %v4520_v2 = vsel %vm8625_vm7, %v4515_v59, %v4519_v15  ;;  %v4548_v20 = vor.u32 %v4547_v13, %v4543_v29  ;;  %v4559_v60 = vshll.u32 %v9867_v61, 16  ;;  %v9893_v23 = vld [vmem:[#allocation2 + $0x28] sm:$0xf]  ;;  %v9899_v31 = vld [vmem:[#allocation2 + $0x2c] sm:$0x1] }
 0x312   : > { %v5031_v37 = vsel %vm8236_vm3, %v6525_v30, %v5030_v10  ;;  %v5032_v38 = vrot.slane %v5030_v10, 4  ;;  %v4530_v40 = vsel %vm8625_vm7, %v4525_v12, %v4529_v35  ;;  %v4539_v46 = vrot.slane %v4538_v47, 4  ;;  %v9905_v34 = vld [vmem:[#allocation2 + $0x30] sm:$0xf]  ;;  %v9912_v49 = vld [vmem:[#allocation2 + $0x34] sm:$0xf] }
 0x313   : > { %v4558_v41 = vrot.slane %v4556_v14, 4  ;;  %v6492_v17 = vcombine.low %v4520_v2, %v4530_v40  ;;  %v4549_v39 = vrot.slane %v4548_v20, 4  ;;  %v4565_v32 = vshll.u32 %v9871_v54, 16  ;;  %v9915_v58 = vld [vmem:[#allocation2 + $0x38] sm:$0x1]  ;;  %v10518_v13 = vld [vmem:[#allocation6_spill] sm:$0xff] }
 0x314   : > { %v5034_v50 = vsel %vm8236_vm3, %v5032_v38, %v5033_v48  ;;  %v4544_v52 = vsel %vm8625_vm7, %v4539_v46, %v4543_v29  ;;  %v4561_v33 = vrot.slane %v4559_v60, 5  ;;  %v4569_v42 = vshrl.u32 %v9871_v54, 16  ;;  %v9924_v47 = vld [vmem:[#allocation2 + $0x3c] sm:$0xf] }
 0x315   : > { %v9890_v26 = vcombine.low %v5031_v37, %v5034_v50  ;;  %7305 = vmatprep.mubr.msk.bf16.mxu1 %vm4723_vm2, %v6492_v17  ;;  %v4554_v43 = vsel %vm8625_vm7, %v4549_v39, %v4553_v7  ;;  %v4567_v51 = vrot.slane %v4565_v32, 5  ;;  %v4575_v19 = vshll.u32 %v9878_v25, 16  ;;  %v9930_v37 = vld [vmem:[#allocation2 + $0x40] sm:$0xf]  ;;  %v9936_v50 = vld [vmem:[#allocation2 + $0x44] sm:$0x1] }
 0x316   : > { %v4580_v45 = vshrl.u32 %v9883_v6, 16  ;;  %v9902_v1 = vcombine.low %v4544_v52, %v4554_v43  ;;  %v4562_v11 = vor.u32 %v4561_v33, %v4558_v41  ;;  %v4571_v28 = vrot.slane %v4569_v42, 4 }
 0x317   : > { %v4583_v21 = vshll.u32 %v9883_v6, 16  ;;  %v4577_v9 = vrot.slane %v4575_v19, 5  ;;  %v4589_v15 = vshll.u32 %v9893_v23, 16  ;;  %v4593_v57 = vshrl.u32 %v9893_v23, 16 }
 0x318   : > { %v4582_v55 = vrot.slane %v4580_v45, 4  ;;  %7306 = vmatmul.mubr.msk.bf16.vlgmr.msra.gmra.mrb[20].mxu1 %vm4723_vm2, %v9902_v1  ;;  %v4563_v44 = vrot.slane %v4562_v11, 4  ;;  %v4572_v35 = vor.u32 %v4571_v28, %v4567_v51  ;;  %v4599_v27 = vshll.u32 %v9899_v31, 16 }
 0x319   : > { %v4585_v53 = vrot.slane %v4583_v21, 5  ;;  %7322 = vmatpush3.bf16.msra.mxu1 %v9857_v3  ;;  %v4591_v36 = vrot.slane %v4589_v15, 5  ;;  %v4595_v22 = vrot.slane %v4593_v57, 4  ;;  %v4604_v16 = vshrl.u32 %v9905_v34, 16  ;;  %v9950_v21 = vld [vmem:[#allocation2 + $0x4c] sm:$0xf] }
 0x31a   : > { %v4607_v62 = vshll.u32 %v9905_v34, 16  ;;  %v4568_v5 = vsel %vm8625_vm7, %v4563_v44, %v4567_v51  ;;  %v4573_v29 = vrot.slane %v4572_v35, 4  ;;  %v4601_v59 = vrot.slane %v4599_v27, 5  ;;  %7956 = vmatprep.subr.msk.bf16.mxu1 %vm4748_vm1, %v10518_v13  ;;  %v9945_v51 = vld [vmem:[#allocation2 + $0x48] sm:$0xf] }
 0x31b   : > { %v4586_v30 = vor.u32 %v4585_v53, %v4582_v55  ;;  %v4596_v7 = vor.u32 %v4595_v22, %v4591_v36  ;;  %v4606_v10 = vrot.slane %v4604_v16, 4  ;;  %v4613_v12 = vshll.u32 %v9912_v49, 16  ;;  %v9957_v53 = vld [vmem:[#allocation2 + $0x50] sm:$0x1] }
 0x31c   : > { %v4609_v3 = vrot.slane %v4607_v62, 5  ;;  %v4578_v48 = vsel %vm8625_vm7, %v4573_v29, %v4577_v9  ;;  %v4617_v2 = vshrl.u32 %v9912_v49, 16  ;;  %v4623_v20 = vshll.u32 %v9915_v58, 16  ;;  %v9963_v29 = vld [vmem:[#allocation2 + $0x54] sm:$0xf] }
 0x31d   : > { %v4587_v14 = vrot.slane %v4586_v30, 4  ;;  %v9932_v38 = vcombine.low %v4568_v5, %v4578_v48  ;;  %v4597_v40 = vrot.slane %v4596_v7, 4  ;;  %v4615_v41 = vrot.slane %v4613_v12, 5 }
 0x31e   : > { %v4610_v46 = vor.u32 %v4609_v3, %v4606_v10  ;;  %v4619_v17 = vrot.slane %v4617_v2, 4  ;;  %v4625_v39 = vrot.slane %v4623_v20, 5  ;;  %v4628_v32 = vshrl.u32 %v9924_v47, 16  ;;  %v9967_v3 = vld [vmem:[#allocation2 + $0x58] sm:$0xf] }
 0x31f   : > { %v4592_v60 = vsel %vm8625_vm7, %v4587_v14, %v4591_v36  ;;  %7309 = vmatprep.mubr.msk.bf16.mxu1 %vm4723_vm2, %v9932_v38  ;;  %v4602_v52 = vsel %vm8625_vm7, %v4597_v40, %v4601_v59  ;;  %v4631_v42 = vshll.u32 %v9924_v47, 16  ;;  %v4637_v43 = vshll.u32 %v9930_v37, 16 }
 0x320   : > { %v4611_v33 = vrot.slane %v4610_v46, 4  ;;  %v9947_v19 = vcombine.low %v4592_v60, %v4602_v52  ;;  %v4620_v45 = vor.u32 %v4619_v17, %v4615_v41  ;;  %v4630_v11 = vrot.slane %v4628_v32, 4 }
 0x321   : > { %v4641_v28 = vshrl.u32 %v9930_v37, 16  ;;  %v4633_v55 = vrot.slane %v4631_v42, 5  ;;  %v4639_v15 = vrot.slane %v4637_v43, 5  ;;  %v4647_v57 = vshll.u32 %v9936_v50, 16 }
 0x322   : > { %v4616_v9 = vsel %vm8625_vm7, %v4611_v33, %v4615_v41  ;;  %7310 = vmatmul.mubr.msk.bf16.gmra.mrb[24].mxu1 %vm4723_vm2, %v9947_v19  ;;  %v4621_v44 = vrot.slane %v4620_v45, 4  ;;  %v4652_v27 = vshrl.u32 %v9945_v51, 16  ;;  %v4655_v36 = vshll.u32 %v9945_v51, 16 }
 0x323   : > { %v4643_v35 = vrot.slane %v4641_v28, 4  ;;  %v4634_v22 = vor.u32 %v4633_v55, %v4630_v11  ;;  %v4649_v16 = vrot.slane %v4647_v57, 5  ;;  %v4661_v62 = vshll.u32 %v9950_v21, 16 }
 0x324   : > { %v4665_v5 = vshrl.u32 %v9950_v21, 16  ;;  %v4626_v30 = vsel %vm8625_vm7, %v4621_v44, %v4625_v39  ;;  %v4654_v7 = vrot.slane %v4652_v27, 4  ;;  %v4657_v10 = vrot.slane %v4655_v36, 5  ;;  %v9977_v39 = vld [vmem:[#allocation2 + $0x5c] sm:$0x1] }
 0x325   : > { %v4644_v59 = vor.u32 %v4643_v35, %v4639_v15  ;;  %v9969_v12 = vcombine.low %v4616_v9, %v4626_v30  ;;  %v4635_v48 = vrot.slane %v4634_v22, 4  ;;  %v4663_v14 = vrot.slane %v4661_v62, 5 }
 0x326   : > { %v4667_v2 = vrot.slane %v4665_v5, 4  ;;  %v4658_v40 = vor.u32 %v4657_v10, %v4654_v7  ;;  %v4671_v46 = vshll.u32 %v9957_v53, 16  ;;  %v4676_v41 = vshrl.u32 %v9963_v29, 16 }
 0x327   : > { %v4645_v20 = vrot.slane %v4644_v59, 4  ;;  %7313 = vmatprep.mubr.msk.bf16.mxu1 %vm4723_vm2, %v9969_v12  ;;  %v4640_v60 = vsel %vm8625_vm7, %v4635_v48, %v4639_v15  ;;  %v4679_v32 = vshll.u32 %v9963_v29, 16  ;;  %v4685_v52 = vshll.u32 %v9967_v3, 16 }
 0x328   : > { %v4668_v17 = vor.u32 %v4667_v2, %v4663_v14  ;;  %v4659_v42 = vrot.slane %v4658_v40, 4  ;;  %v4673_v43 = vrot.slane %v4671_v46, 5  ;;  %v4678_v45 = vrot.slane %v4676_v41, 4 }
 0x329   : > { %v4650_v33 = vsel %vm8625_vm7, %v4645_v20, %v4649_v16  ;;  %v4681_v9 = vrot.slane %v4679_v32, 5  ;;  %v4687_v15 = vrot.slane %v4685_v52, 5  ;;  %v4689_v57 = vshrl.u32 %v9967_v3, 16 }
 0x32a   : > { %v9983_v11 = vcombine.low %v4640_v60, %v4650_v33  ;;  %v4669_v28 = vrot.slane %v4668_v17, 4  ;;  %v4664_v55 = vsel %vm8625_vm7, %v4659_v42, %v4663_v14  ;;  %v4695_v44 = vshll.u32 %v9977_v39, 16 }
 0x32b   : > { %v4682_v27 = vor.u32 %v4681_v9, %v4678_v45  ;;  %v4691_v22 = vrot.slane %v4689_v57, 4  ;;  %v5026_v16 = vrot.slane %v9846_v4, 5  ;;  %v6508_v5 = vcombine.low %v9838_v63, %v9840_v8 }
 0x32c   : > { %7314 = vmatmul.mubr.msk.bf16.gmra.mrb[28].mxu1 %vm4723_vm2, %v9983_v11  ;;  %v4674_v35 = vsel %vm8625_vm7, %v4669_v28, %v4673_v43  ;;  %v4697_v59 = vrot.slane %v4695_v44, 5  ;;  %v10002_v7 = vcombine.low %v9853_v18, %v9861_v0  ;;  %v6524_v10 = vrot.slane %v9838_v63, 9 }
 0x32d   : > { %v9993_v36 = vcombine.low %v4664_v55, %v4674_v35  ;;  %v4683_v62 = vrot.slane %v4682_v27, 4  ;;  %v4692_v30 = vor.u32 %v4691_v22, %v4687_v15  ;;  %v10009_v4 = vcombine.low %v9867_v61, %v9871_v54 }
 0x32e   : > { %v5023_v14 = vrot.slane %v9840_v8, 5  ;;  %v6526_v2 = vrot.slane %v9867_v61, 9  ;;  %v5037_v40 = vrot.slane %v9871_v54, 5  ;;  %v5040_v46 = vrot.slane %v9878_v25, 5 }
 0x32f   : > { %7317 = vmatprep.mubr.msk.bf16.mxu1 %vm4723_vm2, %v9993_v36  ;;  %v4688_v48 = vsel %vm8625_vm7, %v4683_v62, %v4687_v15  ;;  %v4693_v20 = vrot.slane %v4692_v30, 4  ;;  %v6527_v18 = vrot.slane %v9883_v6, 9  ;;  %v5044_v41 = vrot.slane %v9893_v23, 5 }
 0x330   : > { %v5024_v63 = vsel %vm8236_vm3, %v6524_v10, %v5023_v14  ;;  %v5025_v0 = vrot.slane %v5023_v14, 4  ;;  %v5047_v60 = vrot.slane %v9899_v31, 5  ;;  %v5038_v61 = vsel %vm8236_vm3, %v6526_v2, %v5037_v40 }
 0x331   : > { %v4698_v8 = vsel %vm8625_vm7, %v4693_v20, %v4697_v59  ;;  %v5039_v17 = vrot.slane %v5037_v40, 4  ;;  %v6528_v54 = vrot.slane %v9905_v34, 9  ;;  %v5045_v52 = vsel %vm8236_vm3, %v6527_v18, %v5044_v41 }
 0x332   : > { %v10025_v25 = vcombine.low %v4688_v48, %v4698_v8  ;;  %v5027_v32 = vsel %vm8236_vm3, %v5025_v0, %v5026_v16  ;;  %v5046_v33 = vrot.slane %v5044_v41, 4  ;;  %v5051_v43 = vrot.slane %v9912_v49, 5 }
 0x333   : > { %v6532_v42 = vcombine.low %v5024_v63, %v5027_v32  ;;  %v5041_v31 = vsel %vm8236_vm3, %v5039_v17, %v5040_v46  ;;  %v5054_v45 = vrot.slane %v9915_v58, 5  ;;  %v6529_v55 = vrot.slane %v9924_v47, 9 }
 0x334   : > { %7318 = vmatmul.mubr.msk.bf16.gmra.mrb[32].mxu1 %vm4723_vm2, %v10025_v25  ;;  %v10037_v28 = vcombine.low %v5038_v61, %v5041_v31  ;;  %v5048_v9 = vsel %vm8236_vm3, %v5046_v33, %v5047_v60  ;;  %v5058_v15 = vrot.slane %v9930_v37, 5  ;;  %v5052_v44 = vsel %vm8236_vm3, %v6528_v54, %v5051_v43 }
 0x335   : > { %7323 = vmatprep.mubr.msk.bf16.mxu1 %vm4723_vm2, %v6508_v5  ;;  %v10044_v57 = vcombine.low %v5045_v52, %v5048_v9  ;;  %v5053_v58 = vrot.slane %v5051_v43, 4  ;;  %v5061_v35 = vrot.slane %v9936_v50, 5  ;;  %v6530_v16 = vrot.slane %v9945_v51, 9  ;;  %v10522_v52 = vld [vmem:[#allocation35_spill] sm:$0xff]  ;;  %v4503_v43 = vld [vmem:[#allocation2 + $0x68] sm:$0x1] }
 0x336   : > { %v5059_v27 = vsel %vm8236_vm3, %v6529_v55, %v5058_v15  ;;  %v5060_v22 = vrot.slane %v5058_v15, 4  ;;  %v5065_v62 = vrot.slane %v9950_v21, 5  ;;  %v5068_v5 = vrot.slane %v9957_v53, 5 }
 0x337   : > { %v5055_v30 = vsel %vm8236_vm3, %v5053_v58, %v5054_v45  ;;  %v6531_v59 = vrot.slane %v9963_v29, 9  ;;  %v5072_v10 = vrot.slane %v9967_v3, 5  ;;  %v5075_v53 = vrot.slane %v9977_v39, 5  ;;  %v10519_v39 = vld [vmem:[#allocation30_spill] sm:$0xff] }
 0x338   : > { %v10058_v48 = vcombine.low %v5052_v44, %v5055_v30  ;;  %v5062_v50 = vsel %vm8236_vm3, %v5060_v22, %v5061_v35  ;;  %v5066_v14 = vsel %vm8236_vm3, %v6530_v16, %v5065_v62  ;;  %v5067_v2 = vrot.slane %v5065_v62, 4  ;;  %v10523_v62 = vld [vmem:[#allocation36_spill] sm:$0xff] }
 0x339   : > { %v10064_v20 = vcombine.low %v5059_v27, %v5062_v50  ;;  %v5073_v40 = vsel %vm8236_vm3, %v6531_v59, %v5072_v10  ;;  %v5074_v46 = vrot.slane %v5072_v10, 4  ;;  %v5126_v18 = vsel %vm4748_vm1, %v10518_v13, 0 }
 0x33a   : > { %v5069_v63 = vsel %vm8236_vm3, %v5067_v2, %v5068_v5  ;;  %v10087_v13 = vcombine.low %v9883_v6, %v9893_v23  ;;  %v10091_v8 = vcombine.low %v9905_v34, %v9912_v49  ;;  %v10099_v61 = vcombine.low %v9924_v47, %v9930_v37  ;;  %v10520_v34 = vld [vmem:[#allocation32_spill] sm:$0xff]  ;;  %v10521_v47 = vld [vmem:[#allocation33_spill] sm:$0xff] }
 0x33b   : > { %v10073_v0 = vcombine.low %v5066_v14, %v5069_v63  ;;  %v5076_v41 = vsel %vm8236_vm3, %v5074_v46, %v5075_v53  ;;  %v10103_v17 = vcombine.low %v9945_v51, %v9950_v21  ;;  %v10111_v6 = vcombine.low %v9963_v29, %v9967_v3  ;;  %v4501_v37 = vld [vmem:[#allocation2 + $0x60] sm:$0xf]  ;;  %v4502_v51 = vld [vmem:[#allocation2 + $0x64] sm:$0xf]  ;;  %v4505_v46 = vld [vmem:[#allocation2 + $0x70] sm:$0xf] }
 0x33c   : > { %7324 = vmatmul.mubr.msk.bf16.vlgmr.msra.gmra.mrb[20].mxu1 %vm4723_vm2, %v10002_v7  ;;  %v10079_v60 = vcombine.low %v5073_v40, %v5076_v41  ;;  %v5250_v23 = vsel %vm4748_vm1, %v10519_v39, 0  ;;  %v5396_v49 = vsel %vm4748_vm1, %v10520_v34, 0  ;;  %v6548_v21 = vcombine.low %v4501_v37, %v4502_v51  ;;  %v10524_v40 = vld [vmem:[#allocation40_spill] sm:$0xff] }
 0x33d   : > { %7340 = vmatpush3.bf16.msra.mxu1 %v5126_v18  ;;  %7327 = vmatprep.mubr.msk.bf16.mxu1 %vm4723_vm2, %v10009_v4  ;;  %v5526_v29 = vsel %vm4748_vm1, %v10521_v47, 0  ;;  %v5366_v3 = vshrl.u32 %v4501_v37, 16  ;;  %v5375_v54 = vshll.u32 %v4502_v51, 16  ;;  %v5379_v32 = vshrl.u32 %v4502_v51, 16 }
 0x33e   : > { %7957 = vmatprep.subr.msk.bf16.mxu1 %vm4748_vm1, %v10519_v39  ;;  %v5385_v55 = vshll.u32 %v4503_v43, 16  ;;  %v5650_v16 = vsel %vm4748_vm1, %v10522_v52, 0  ;;  %v6566_v30 = vrot.slane %v4501_v37, 9  ;;  %v5517_v59 = vrot.slane %v4503_v43, 5 }
 0x33f   : > { %v5368_v33 = vrot.slane %v5366_v3, 4  ;;  %v5381_v31 = vrot.slane %v5379_v32, 4  ;;  %v5796_v2 = vsel %vm4748_vm1, %v10523_v62, 0  ;;  %v5926_v18 = vsel %vm4748_vm1, %v10524_v40, 0 }
 0x340   : > { %v5387_v58 = vrot.slane %v5385_v55, 5  ;;  %v5775_v39 = vshll.u32 %v4505_v46, 16  ;;  %v5914_v24 = vrot.slane %v4505_v46, 5 }
 0x344   : > { %7328 = vmatmul.mubr.msk.bf16.gmra.mrb[24].mxu1 %vm4723_vm2, %v10087_v13 }
 0x345   : > { %7331 = vmatprep.mubr.msk.bf16.mxu1 %vm4723_vm2, %v10091_v8 }
 0x34c   : > { %7332 = vmatmul.mubr.msk.bf16.gmra.mrb[28].mxu1 %vm4723_vm2, %v10099_v61 }
 0x34d   : > { %7335 = vmatprep.mubr.msk.bf16.mxu1 %vm4723_vm2, %v10103_v17 }
 0x354   : > { %7336 = vmatmul.mubr.msk.bf16.gmra.mrb[32].mxu1 %vm4723_vm2, %v10111_v6 }
 0x355   : > { %7341 = vmatprep.mubr.msk.bf16.mxu1 %vm4723_vm2, %v6532_v42 }
 0x35c   : > { %7342 = vmatmul.mubr.msk.bf16.vlgmr.msra.gmra.mrb[20].mxu1 %vm4723_vm2, %v9890_v26 }
 0x35d   : > { %7358 = vmatpush3.bf16.msra.mxu1 %v5250_v23  ;;  %7345 = vmatprep.mubr.msk.bf16.mxu1 %vm4723_vm2, %v10037_v28  ;;  %v4506_v23 = vld [vmem:[#allocation2 + $0x74] sm:$0x1] }
 0x35e   : > { %7958 = vmatprep.subr.msk.bf16.mxu1 %vm4748_vm1, %v10520_v34  ;;  %v5785_v34 = vshll.u32 %v4506_v23, 16 }
 0x364   : > { %7346 = vmatmul.mubr.msk.bf16.gmra.mrb[24].mxu1 %vm4723_vm2, %v10044_v57 }
 0x365   : > { %7349 = vmatprep.mubr.msk.bf16.mxu1 %vm4723_vm2, %v10058_v48 }
 0x36c   : > { %7350 = vmatmul.mubr.msk.bf16.gmra.mrb[28].mxu1 %vm4723_vm2, %v10064_v20 }
 0x36d   : > { %7353 = vmatprep.mubr.msk.bf16.mxu1 %vm4723_vm2, %v10073_v0 }
 0x374   : > { %7354 = vmatmul.mubr.msk.bf16.gmra.mrb[32].mxu1 %vm4723_vm2, %v10079_v60 }
 0x375   : > { %7359 = vmatprep.mubr.msk.bf16.mxu1 %vm4723_vm2, %v10002_v7  ;;  %v5369_v7 = vshll.u32 %v4501_v37, 16 }
 0x377   : > { %v5371_v42 = vrot.slane %v5369_v7, 5 }
 0x379   : > { %v5372_v45 = vor.u32 %v5371_v42, %v5368_v33 }
 0x37b   : > { %v5373_v15 = vrot.slane %v5372_v45, 4 }
 0x37c   : > { %7360 = vmatmul.mubr.msk.bf16.vlgmr.msra.gmra.mrb[20].mxu1 %vm4723_vm2, %v10009_v4 }
 0x37d   : > { %7376 = vmatpush3.bf16.msra.mxu1 %v5396_v49  ;;  %7363 = vmatprep.mubr.msk.bf16.mxu1 %vm4723_vm2, %v10087_v13 }
 0x37e   : > { %7959 = vmatprep.subr.msk.bf16.mxu1 %vm4748_vm1, %v10521_v47  ;;  %v5787_v47 = vrot.slane %v5785_v34, 5 }
 0x384   : > { %7364 = vmatmul.mubr.msk.bf16.gmra.mrb[24].mxu1 %vm4723_vm2, %v10091_v8 }
 0x385   : > { %7367 = vmatprep.mubr.msk.bf16.mxu1 %vm4723_vm2, %v10099_v61 }
 0x38c   : > { %7368 = vmatmul.mubr.msk.bf16.gmra.mrb[28].mxu1 %vm4723_vm2, %v10103_v17 }
 0x38d   : > { %7371 = vmatprep.mubr.msk.bf16.mxu1 %vm4723_vm2, %v10111_v6 }
 0x394   : > { %7372 = vmatmul.mubr.msk.bf16.gmra.mrb[32].mxu1 %vm4723_vm2, %v6548_v21 }
 0x395   : > { %7377 = vmatprep.mubr.msk.bf16.mxu1 %vm4723_vm2, %v9902_v1  ;;  %v5377_v1 = vrot.slane %v5375_v54, 5 }
 0x397   : > { %v5382_v9 = vor.u32 %v5381_v31, %v5377_v1  ;;  %v5378_v35 = vsel %vm8625_vm7, %v5373_v15, %v5377_v1 }
 0x399   : > { %v5383_v44 = vrot.slane %v5382_v9, 4 }
 0x39b   : > { %v5388_v27 = vsel %vm8625_vm7, %v5383_v44, %v5387_v58 }
 0x39c   : > { %7378 = vmatmul.mubr.msk.bf16.vlgmr.msra.gmra.mrb[20].mxu1 %vm4723_vm2, %v9932_v38  ;;  %v6557_v22 = vcombine.low %v5378_v35, %v5388_v27 }
 0x39d   : > { %7394 = vmatpush3.bf16.msra.mxu1 %v5526_v29  ;;  %7381 = vmatprep.mubr.msk.bf16.mxu1 %vm4723_vm2, %v9947_v19 }
 0x39e   : > { %7960 = vmatprep.subr.msk.bf16.mxu1 %vm4748_vm1, %v10522_v52 }
 0x3a4   : > { %7382 = vmatmul.mubr.msk.bf16.gmra.mrb[24].mxu1 %vm4723_vm2, %v9969_v12 }
 0x3a5   : > { %7385 = vmatprep.mubr.msk.bf16.mxu1 %vm4723_vm2, %v9983_v11 }
 0x3ac   : > { %7386 = vmatmul.mubr.msk.bf16.gmra.mrb[28].mxu1 %vm4723_vm2, %v9993_v36 }
 0x3ad   : > { %7389 = vmatprep.mubr.msk.bf16.mxu1 %vm4723_vm2, %v10025_v25 }
 0x3b4   : > { %7390 = vmatmul.mubr.msk.bf16.gmra.mrb[32].mxu1 %vm4723_vm2, %v6557_v22 }
 0x3b5   : > { %7395 = vmatprep.mubr.msk.bf16.mxu1 %vm4723_vm2, %v9890_v26  ;;  %v5514_v26 = vrot.slane %v4502_v51, 5 }
 0x3b7   : > { %v5516_v5 = vrot.slane %v5514_v26, 4  ;;  %v5515_v10 = vsel %vm8236_vm3, %v6566_v30, %v5514_v26 }
 0x3b9   : > { %v5518_v50 = vsel %vm8236_vm3, %v5516_v5, %v5517_v59 }
 0x3ba   : > { %v6567_v14 = vcombine.low %v5515_v10, %v5518_v50 }
 0x3bc   : > { %7396 = vmatmul.mubr.msk.bf16.vlgmr.msra.gmra.mrb[20].mxu1 %vm4723_vm2, %v10037_v28 }
 0x3bd   : > { %7412 = vmatpush3.bf16.msra.mxu1 %v5650_v16  ;;  %7399 = vmatprep.mubr.msk.bf16.mxu1 %vm4723_vm2, %v10044_v57 }
 0x3be   : > { %7961 = vmatprep.subr.msk.bf16.mxu1 %vm4748_vm1, %v10523_v62 }
 0x3c4   : > { %7400 = vmatmul.mubr.msk.bf16.gmra.mrb[24].mxu1 %vm4723_vm2, %v10058_v48 }
 0x3c5   : > { %7403 = vmatprep.mubr.msk.bf16.mxu1 %vm4723_vm2, %v10064_v20 }
 0x3cc   : > { %7404 = vmatmul.mubr.msk.bf16.gmra.mrb[28].mxu1 %vm4723_vm2, %v10073_v0 }
 0x3cd   : > { %7407 = vmatprep.mubr.msk.bf16.mxu1 %vm4723_vm2, %v10079_v60 }
 0x3d4   : > { %7408 = vmatmul.mubr.msk.bf16.gmra.mrb[32].mxu1 %vm4723_vm2, %v6567_v14 }
 0x3d5   : > { %7413 = vmatprep.mubr.msk.bf16.mxu1 %vm4723_vm2, %v10009_v4  ;;  %v4504_v4 = vld [vmem:[#allocation2 + $0x6c] sm:$0xf] }
 0x3d6   : > { %v6576_v53 = vcombine.low %v4504_v4, %v4505_v46  ;;  %v5766_v63 = vshrl.u32 %v4504_v4, 16  ;;  %v5769_v41 = vshll.u32 %v4504_v4, 16 }
 0x3dc   : > { %7414 = vmatmul.mubr.msk.bf16.vlgmr.msra.gmra.mrb[20].mxu1 %vm4723_vm2, %v10087_v13  ;;  %v5779_v13 = vshrl.u32 %v4505_v46, 16 }
 0x3dd   : > { %7430 = vmatpush3.bf16.msra.mxu1 %v5796_v2  ;;  %7417 = vmatprep.mubr.msk.bf16.mxu1 %vm4723_vm2, %v10091_v8  ;;  %v5768_v8 = vrot.slane %v5766_v63, 4 }
 0x3de   : > { %7962 = vmatprep.subr.msk.bf16.mxu1 %vm4748_vm1, %v10524_v40 }
 0x3e4   : > { %7418 = vmatmul.mubr.msk.bf16.gmra.mrb[24].mxu1 %vm4723_vm2, %v10099_v61  ;;  %v5771_v61 = vrot.slane %v5769_v41, 5 }
 0x3e5   : > { %7421 = vmatprep.mubr.msk.bf16.mxu1 %vm4723_vm2, %v10103_v17  ;;  %v5777_v17 = vrot.slane %v5775_v39, 5 }
 0x3ec   : > { %7422 = vmatmul.mubr.msk.bf16.gmra.mrb[28].mxu1 %vm4723_vm2, %v10111_v6  ;;  %v5781_v6 = vrot.slane %v5779_v13, 4 }
 0x3ed   : > { %7425 = vmatprep.mubr.msk.bf16.mxu1 %vm4723_vm2, %v6548_v21  ;;  %v5917_v21 = vrot.slane %v4506_v23, 5 }
 0x3f4   : > { %7426 = vmatmul.mubr.msk.bf16.gmra.mrb[32].mxu1 %vm4723_vm2, %v6576_v53 }
 0x3f5   : > { %7431 = vmatprep.mubr.msk.bf16.mxu1 %vm4723_vm2, %v9932_v38  ;;  %v5772_v38 = vor.u32 %v5771_v61, %v5768_v8 }
 0x3f7   : > { %v5773_v49 = vrot.slane %v5772_v38, 4 }
 0x3f9   : > { %v5778_v37 = vsel %vm8625_vm7, %v5773_v49, %v5777_v17 }
 0x3fc   : > { %7432 = vmatmul.mubr.msk.bf16.vlgmr.msra.gmra.mrb[20].mxu1 %vm4723_vm2, %v9947_v19  ;;  %v5782_v19 = vor.u32 %v5781_v6, %v5777_v17 }
 0x3fd   : > { %7448 = vmatpush3.bf16.msra.mxu1 %v5926_v18  ;;  %7435 = vmatprep.mubr.msk.bf16.mxu1 %vm4723_vm2, %v9969_v12 }
 0x3fe   : > { %v5783_v12 = vrot.slane %v5782_v19, 4 }
 0x404   : > { %7436 = vmatmul.mubr.msk.bf16.gmra.mrb[24].mxu1 %vm4723_vm2, %v9983_v11  ;;  %v5788_v11 = vsel %vm8625_vm7, %v5783_v12, %v5787_v47 }
 0x405   : > { %7439 = vmatprep.mubr.msk.bf16.mxu1 %vm4723_vm2, %v9993_v36  ;;  %v6585_v51 = vcombine.low %v5778_v37, %v5788_v11  ;;  %v6594_v36 = vrot.slane %v4504_v4, 9 }
 0x40c   : > { %7440 = vmatmul.mubr.msk.bf16.gmra.mrb[28].mxu1 %vm4723_vm2, %v10025_v25  ;;  %v5916_v25 = vrot.slane %v5914_v24, 4 }
 0x40d   : > { %7443 = vmatprep.mubr.msk.bf16.mxu1 %vm4723_vm2, %v6557_v22 }
 0x414   : > { %7444 = vmatmul.mubr.msk.bf16.gmra.mrb[32].mxu1 %vm4723_vm2, %v6585_v51 }
 0x415   : > { %7449 = vmatprep.mubr.msk.bf16.mxu1 %vm4723_vm2, %v10037_v28  ;;  %v5915_v28 = vsel %vm8236_vm3, %v6594_v36, %v5914_v24 }
 0x41c   : > { %7450 = vmatmul.mubr.msk.bf16.vlgmr.msra.gmra.mrb[20].mxu1 %vm4723_vm2, %v10044_v57  ;;  %v5918_v57 = vsel %vm8236_vm3, %v5916_v25, %v5917_v21 }
 0x41d   : > { %7453 = vmatprep.mubr.msk.bf16.mxu1 %vm4723_vm2, %v10058_v48  ;;  %v6595_v48 = vcombine.low %v5915_v28, %v5918_v57 }
 0x424   : > { %7454 = vmatmul.mubr.msk.bf16.gmra.mrb[24].mxu1 %vm4723_vm2, %v10064_v20 }
 0x425   : > { %7457 = vmatprep.mubr.msk.bf16.mxu1 %vm4723_vm2, %v10073_v0 }
 0x42c   : > { %7458 = vmatmul.mubr.msk.bf16.gmra.mrb[28].mxu1 %vm4723_vm2, %v10079_v60 }
 0x42d   : > { %7461 = vmatprep.mubr.msk.bf16.mxu1 %vm4723_vm2, %v6567_v14 }
 0x434   : > { %7462 = vmatmul.mubr.msk.bf16.gmra.mrb[32].mxu1 %vm4723_vm2, %v6595_v48 }
 0x4ef   : > { %v7451_v20 = vpop.f32.mrb[20].mxu1 }
 0x4f0   : > { %v6043_v0 = vmax.f32 %v7451_v20, 0.0  ;;  %v5962_v29 = vpop.f32.mrb[21].mxu1 }
 0x4f1   : > { %v6041_v3 = vmax.f32 %v5962_v29, 0.0  ;;  %v7452_v7 = vpop.f32.mrb[22].mxu1 }
 0x4f2   : > { %6059 = vst.msk [vmem:[%s8224_s9 + $0x10] sm:$0xff] %vm4723_vm2, %v6043_v0  ;;  %v6044_v60 = vmax.f32 %v7452_v7, 0.0  ;;  %v5965_v54 = vpop.f32.mrb[23].mxu1 }
 0x4f3   : > { %6057 = vst.msk [vmem:[%s8224_s9] sm:$0xff] %vm4723_vm2, %v6041_v3  ;;  %v6042_v56 = vmax.f32 %v5965_v54, 0.0 }
 0x4f4   : > { %6060 = vst.msk [vmem:[%s8224_s9 + $0x18] sm:$0xff] %vm4723_vm2, %v6044_v60 }
 0x4f5   : > { %6058 = vst.msk [vmem:[%s8224_s9 + $0x8] sm:$0xff] %vm4723_vm2, %v6042_v56 }
 0x4f7   : > { %v7455_v32 = vpop.f32.mrb[24].mxu1 }
 0x4f8   : > { %v6047_v52 = vmax.f32 %v7455_v32, 0.0  ;;  %v5978_v33 = vpop.f32.mrb[25].mxu1 }
 0x4f9   : > { %v6045_v42 = vmax.f32 %v5978_v33, 0.0  ;;  %v7456_v1 = vpop.f32.mrb[26].mxu1 }
 0x4fa   : > { %6063 = vst.msk [vmem:[%s8224_s9 + $0x30] sm:$0xff] %vm4723_vm2, %v6047_v52  ;;  %v6048_v31 = vmax.f32 %v7456_v1, 0.0  ;;  %v5981_v43 = vpop.f32.mrb[27].mxu1 }
 0x4fb   : > { %6061 = vst.msk [vmem:[%s8224_s9 + $0x20] sm:$0xff] %vm4723_vm2, %v6045_v42  ;;  %v6046_v45 = vmax.f32 %v5981_v43, 0.0 }
 0x4fc   : > { %6064 = vst.msk [vmem:[%s8224_s9 + $0x38] sm:$0xff] %vm4723_vm2, %v6048_v31 }
 0x4fd   : > { %6062 = vst.msk [vmem:[%s8224_s9 + $0x28] sm:$0xff] %vm4723_vm2, %v6046_v45 }
 0x4ff   : > { %v7459_v9 = vpop.f32.mrb[28].mxu1 }
 0x500   : > { %v6051_v55 = vmax.f32 %v7459_v9, 0.0  ;;  %v5994_v15 = vpop.f32.mrb[29].mxu1 }
 0x501   : > { %v6049_v44 = vmax.f32 %v5994_v15, 0.0  ;;  %v7460_v58 = vpop.f32.mrb[30].mxu1 }
 0x502   : > { %6067 = vst.msk [vmem:[%s8224_s9 + $0x50] sm:$0xff] %vm4723_vm2, %v6051_v55  ;;  %v6052_v35 = vmax.f32 %v7460_v58, 0.0  ;;  %v5997_v27 = vpop.f32.mrb[31].mxu1 }
 0x503   : > { %6065 = vst.msk [vmem:[%s8224_s9 + $0x40] sm:$0xff] %vm4723_vm2, %v6049_v44  ;;  %v6050_v22 = vmax.f32 %v5997_v27, 0.0 }
 0x504   : > { %6068 = vst.msk [vmem:[%s8224_s9 + $0x58] sm:$0xff] %vm4723_vm2, %v6052_v35 }
 0x505   : > { %6066 = vst.msk [vmem:[%s8224_s9 + $0x48] sm:$0xff] %vm4723_vm2, %v6050_v22 }
 0x507   : > { %v7463_v16 = vpop.f32.mrb[32].mxu1 }
 0x508   : > { %v6055_v62 = vmax.f32 %v7463_v16, 0.0  ;;  %v6010_v26 = vpop.f32.mrb[33].mxu1 }
 0x509   : > { %v6053_v30 = vmax.f32 %v6010_v26, 0.0  ;;  %v7464_v5 = vpop.f32.mrb[34].mxu1 }
 0x50a   : > { %6071 = vst.msk [vmem:[%s8224_s9 + $0x70] sm:$0xff] %vm4723_vm2, %v6055_v62  ;;  %v6056_v59 = vmax.f32 %v7464_v5, 0.0  ;;  %v6013_v10 = vpop.f32.mrb[35].mxu1 }
 0x50b   : > { %6069 = vst.msk [vmem:[%s8224_s9 + $0x60] sm:$0xff] %vm4723_vm2, %v6053_v30  ;;  %v6054_v50 = vmax.f32 %v6013_v10, 0.0 }
 0x50c   : > { %6072 = vst.msk [vmem:[%s8224_s9 + $0x78] sm:$0xff] %vm4723_vm2, %v6056_v59 }
 0x50d   : > { %6070 = vst.msk [vmem:[%s8224_s9 + $0x68] sm:$0xff] %vm4723_vm2, %v6054_v50 }
 0x50e PF: > { %s15_s22 = sadd.s32 1, %s8108_s22   ;;  %s10525_s18 = smov %s8100_s20 }
 0x50f   : > { %p12_p9 = scmp.ge.s32.totalorder %s15_s22, 6   ;;  %s10526_s19 = smov %s8104_s21 }
 0x510   : > { %s10527_s20 = smov %s10530_s23  ;;  %s10528_s21 = smov %s10534_s24 }
 0x511   :  { %14 = sbr.rel (!%p12_p9) target bundleno = 3 (0x3), region = 84 }

</bundles_post_ra>
